<compile_context>
chip_gen: v7x
topology: tpu7x:2x2x1
jax: 0.10.0
libtpu: 0.0.40
codegen_flags: <defaults>
</compile_context>

<pallas_src>
import functools

import jax
import jax.numpy as jnp
from jax.experimental import pallas as pl
from jax.experimental.pallas import tpu as pltpu

NEG_SLOPE = 0.01   # LeakyReLU(0.01)
PAD_L = 8          # left zero-pad offset inside the padded scratch


def _leaky_relu(x):
    return jnp.where(x > 0, x, NEG_SLOPE * x)


def _conv3x3(pad_ref, w_ref, pcol_ref, *, nb, H, W, C, use_im2col):
    """3x3 conv (stride 1, pad 1) over the padded bf16 buffer, f32 accumulation.

    Row layout of w_ref: row index = (ky*3 + kx)*C + cin, columns = Cout."""
    M = nb * H * W
    if use_im2col:
        # Small C: build one (M, 9C) patch matrix -> single MXU matmul.
        for ky in range(3):
            for kx in range(3):
                j = ky * 3 + kx
                piece = pad_ref[:, ky:ky + H, PAD_L - 1 + kx:PAD_L - 1 + kx + W, :]
                pcol_ref[:, j * C:(j + 1) * C] = piece.reshape(M, C)
        return jnp.dot(pcol_ref[...], w_ref[...],
                       preferred_element_type=jnp.float32)
    # Large C (>=128): nine accumulated K=C dots reading shifted windows
    # directly (no materialized im2col).
    acc = jnp.zeros((M, C), jnp.float32)
    for ky in range(3):
        for kx in range(3):
            j = ky * 3 + kx
            piece = pad_ref[:, ky:ky + H, PAD_L - 1 + kx:PAD_L - 1 + kx + W, :]
            acc = acc + jnp.dot(piece.reshape(M, C), w_ref[j * C:(j + 1) * C, :],
                                preferred_element_type=jnp.float32)
    return acc


def _residual_block_kernel(x_ref, w1_ref, b1_ref, w2_ref, b2_ref,
                           sw1_ref, sw2_ref, o_ref, pad_ref, *pcol,
                           nb, H, W, C, use_im2col):
    f32 = jnp.float32
    bf16 = jnp.bfloat16
    pcol_ref = pcol[0] if use_im2col else None

    # Zero ONLY the border cells read by the 3x3 taps (rows 0 / H+1 over the
    # read column window, and the two halo columns).  No full-buffer memset.
    zr = jnp.zeros((nb, 1, W + 2, C), pad_ref.dtype)
    zc = jnp.zeros((nb, H, 1, C), pad_ref.dtype)
    pad_ref[:, 0:1, PAD_L - 1:PAD_L + W + 1, :] = zr
    pad_ref[:, H + 1:H + 2, PAD_L - 1:PAD_L + W + 1, :] = zr
    pad_ref[:, 1:H + 1, PAD_L - 1:PAD_L, :] = zc
    pad_ref[:, 1:H + 1, PAD_L + W:PAD_L + W + 1, :] = zc

    # ---- conv1 (3x3, pad 1) + folded BN1 scale (in weights) + shift + LeakyReLU
    pad_ref[:, 1:H + 1, PAD_L:PAD_L + W, :] = x_ref[...].astype(bf16)
    h = _conv3x3(pad_ref, w1_ref, pcol_ref, nb=nb, H=H, W=W, C=C,
                 use_im2col=use_im2col)
    h = _leaky_relu(h + b1_ref[...])                                # (M, C) f32

    # ---- conv2 (3x3, pad 1) + folded BN2 scale + shift -------------------------
    pad_ref[:, 1:H + 1, PAD_L:PAD_L + W, :] = h.astype(bf16).reshape(nb, H, W, C)
    h2 = _conv3x3(pad_ref, w2_ref, pcol_ref, nb=nb, H=H, W=W, C=C,
                  use_im2col=use_im2col) + b2_ref[...]              # (M, C) f32

    # ---- SE block + residual add + final LeakyReLU ------------------------------
    h2i = h2.reshape(nb, H * W, C)
    y = jnp.mean(h2i, axis=1)                                       # (nb, C) avg pool
    t = jnp.maximum(jnp.dot(y, sw1_ref[...], preferred_element_type=f32), 0.0)
    s = jax.nn.sigmoid(jnp.dot(t, sw2_ref[...], preferred_element_type=f32))
    identity = x_ref[...].astype(f32).reshape(nb, H * W, C)         # re-read at use
    o_ref[...] = _leaky_relu(h2i * s[:, None, :] + identity).astype(o_ref.dtype)


# ---------------------------------------------------------------------------
# Wrapper / parameter preprocessing
# ---------------------------------------------------------------------------
def fold_bn(gamma, beta, mean, var, eps=1e-5):
    scale = gamma / jnp.sqrt(var + eps)
    shift = beta - mean * scale
    return scale.reshape(1, -1), shift.reshape(1, -1)


def conv_weight_to_taps(w_oihw):
    """(Cout, Cin, 3, 3) -> (9*Cin, Cout); row index = (ky*3 + kx)*Cin + cin."""
    Cout, Cin, _, _ = w_oihw.shape
    return jnp.transpose(w_oihw, (2, 3, 1, 0)).reshape(9 * Cin, Cout)


def _has_two_tensorcores():
    """Heuristic: chips with 2 TensorCores sharing HBM (v4 / v5p / v7x)."""
    try:
        kind = jax.devices()[0].device_kind.lower()
    except Exception:
        return False
    return any(tok in kind for tok in ("v4", "v5p", "v7", "7x"))


def _vmem_estimate_bytes(nb, H, W, C, hid, use_im2col):
    M = nb * H * W
    blk = nb * H * W * C * 4                       # one (nb,H,W,C) f32 block
    pad = nb * (H + 2) * (PAD_L + W + 1) * C * 2   # bf16 padded scratch
    pcol = M * 9 * C * 2 if use_im2col else 0      # bf16 im2col scratch
    wts = 2 * 9 * C * C * 2 + 2 * C * 4 + 2 * C * hid * 4
    return 2 * blk + 2 * blk + pad + pcol + 2 * wts  # double-buffered in/out


def _pick_images_per_step(N, H, W, C, hid, use_im2col, two_cores,
                          vmem_budget=36 * 1024 * 1024):
    """Largest nb (divisor of N) whose per-step footprint fits the VMEM budget.
    Only on dual-TC chips do we additionally keep >= 2 grid steps so both
    TensorCores get work; on single-TC chips bigger blocks win."""
    best = 1
    for d in range(1, N + 1):
        if N % d:
            continue
        if _vmem_estimate_bytes(d, H, W, C, hid, use_im2col) > vmem_budget:
            continue
        if two_cores and N >= 2 and (N // d) < 2:
            continue
        best = d
    return best


def residual_block_forward(x_nchw, params):
    N, C, H, W = x_nchw.shape
    hid = params["se_w1"].shape[0]

    # NCHW -> NHWC so channels map to the lane axis (glue only).
    x = jnp.transpose(x_nchw, (0, 2, 3, 1)).astype(jnp.float32)

    s1, b1 = fold_bn(params["bn1_gamma"], params["bn1_beta"],
                     params["bn1_mean"], params["bn1_var"])
    s2, b2 = fold_bn(params["bn2_gamma"], params["bn2_beta"],
                     params["bn2_mean"], params["bn2_var"])
    # Fold BN scale into the conv weights; MXU operands are bf16.
    w1 = (conv_weight_to_taps(params["conv1_w"]) * s1).astype(jnp.bfloat16)
    w2 = (conv_weight_to_taps(params["conv2_w"]) * s2).astype(jnp.bfloat16)
    sw1 = params["se_w1"].T.astype(jnp.float32)   # (C, C//r)
    sw2 = params["se_w2"].T.astype(jnp.float32)   # (C//r, C)

    use_im2col = C < 128
    two_cores = _has_two_tensorcores()
    nb = _pick_images_per_step(N, H, W, C, hid, use_im2col, two_cores)
    M = nb * H * W
    kern = functools.partial(_residual_block_kernel, nb=nb, H=H, W=W, C=C,
                             use_im2col=use_im2col)

    scratch = [pltpu.VMEM((nb, H + 2, PAD_L + W + 1, C), jnp.bfloat16)]
    if use_im2col:
        scratch.append(pltpu.VMEM((M, 9 * C), jnp.bfloat16))

    flops = (2 * 2 * (N * H * W) * (9 * C) * C     # two 3x3 convs as matmuls
             + 2 * 2 * N * C * hid                  # SE fc1 + fc2
             + 12 * N * H * W * C)                  # elementwise epilogues
    bytes_accessed = (2 * N * H * W * C * 4         # x in + out (f32)
                      + 2 * 9 * C * C * 2           # conv weights (bf16)
                      + 2 * C * 4 + 2 * C * hid * 4)
    cost = pl.CostEstimate(flops=int(flops), transcendentals=int(N * C),
                           bytes_accessed=int(bytes_accessed))

    out = pl.pallas_call(
        kern,
        out_shape=jax.ShapeDtypeStruct((N, H * W, C), jnp.float32),
        grid_spec=pltpu.PrefetchScalarGridSpec(
            num_scalar_prefetch=0,
            grid=(N // nb,),
            in_specs=[
                pl.BlockSpec((nb, H, W, C), lambda i: (i, 0, 0, 0)),   # x (f32)
                pl.BlockSpec((9 * C, C), lambda i: (0, 0)),            # w1 taps (bf16)
                pl.BlockSpec((1, C), lambda i: (0, 0)),                # BN1 shift
                pl.BlockSpec((9 * C, C), lambda i: (0, 0)),            # w2 taps (bf16)
                pl.BlockSpec((1, C), lambda i: (0, 0)),                # BN2 shift
                pl.BlockSpec((C, hid), lambda i: (0, 0)),              # SE fc1
                pl.BlockSpec((hid, C), lambda i: (0, 0)),              # SE fc2
            ],
            out_specs=pl.BlockSpec((nb, H * W, C), lambda i: (i, 0, 0)),
            scratch_shapes=scratch,
        ),
        compiler_params=pltpu.CompilerParams(
            dimension_semantics=("parallel",),
            vmem_limit_bytes=48 * 1024 * 1024),
        cost_estimate=cost,
    )(x, w1, b1, w2, b2, sw1, sw2)

    out = out.reshape(N, H, W, C)
    return jnp.transpose(out, (0, 3, 1, 2))   # NHWC -> NCHW


# ---------------------------------------------------------------------------
# References (for correctness checks)
# ---------------------------------------------------------------------------
def reference_forward_f32(x_nchw, params):
    """Exact float32 eval-mode semantics of the PyTorch ResidualBlock."""
    def conv(x, w):
        return jax.lax.conv_general_dilated(
            x, w, window_strides=(1, 1), padding=((1, 1), (1, 1)),
            dimension_numbers=("NCHW", "OIHW", "NCHW"))

    def bn(x, g, b, m, v, eps=1e-5):
        g, b, m, v = [a.reshape(1, -1, 1, 1) for a in (g, b, m, v)]
        return (x - m) / jnp.sqrt(v + eps) * g + b

    lrelu = lambda t: jnp.where(t > 0, t, NEG_SLOPE * t)

    out = lrelu(bn(conv(x_nchw, params["conv1_w"]),
                   params["bn1_gamma"], params["bn1_beta"],
                   params["bn1_mean"], params["bn1_var"]))
    out = bn(conv(out, params["conv2_w"]),
             params["bn2_gamma"], params["bn2_beta"],
             params["bn2_mean"], params["bn2_var"])
    y = jnp.mean(out, axis=(2, 3))
    h = jnp.maximum(y @ params["se_w1"].T, 0.0)
    s = jax.nn.sigmoid(h @ params["se_w2"].T)
    out = out * s[:, :, None, None] + x_nchw
    return lrelu(out)


def reference_forward_matched(x_nchw, params):
    """Mirrors the kernel's arithmetic (folded BN, bf16 conv operands, f32
    accumulation) with lax ops, for a tight numerical check of the kernel."""
    x = jnp.transpose(x_nchw, (0, 2, 3, 1)).astype(jnp.float32)
    s1, b1 = fold_bn(params["bn1_gamma"], params["bn1_beta"],
                     params["bn1_mean"], params["bn1_var"])
    s2, b2 = fold_bn(params["bn2_gamma"], params["bn2_beta"],
                     params["bn2_mean"], params["bn2_var"])

    def conv(inp, w_oihw, scale):
        w = jnp.transpose(w_oihw, (2, 3, 1, 0)) * scale.reshape(1, 1, 1, -1)
        return jax.lax.conv_general_dilated(
            inp.astype(jnp.bfloat16), w.astype(jnp.bfloat16),
            window_strides=(1, 1), padding=((1, 1), (1, 1)),
            dimension_numbers=("NHWC", "HWIO", "NHWC"),
            preferred_element_type=jnp.float32)

    lrelu = lambda t: jnp.where(t > 0, t, NEG_SLOPE * t)
    h = lrelu(conv(x, params["conv1_w"], s1) + b1.reshape(1, 1, 1, -1))
    h2 = conv(h, params["conv2_w"], s2) + b2.reshape(1, 1, 1, -1)
    y = jnp.mean(h2, axis=(1, 2))
    t = jnp.maximum(y @ params["se_w1"].T, 0.0)
    s = jax.nn.sigmoid(t @ params["se_w2"].T)
    out = lrelu(h2 * s[:, None, None, :] + x)
    return jnp.transpose(out, (0, 3, 1, 2))


if __name__ == "__main__":
    # Small shapes consistent with the module; out_channels >= 16 so that
    # channel // reduction >= 1 inside the SEBlock (reduction defaults to 16).
    N, C, H, W = 2, 32, 8, 8
    reduction = 16
    hid = C // reduction

    key = jax.random.PRNGKey(0)
    ks = jax.random.split(key, 13)

    params = {
        "conv1_w": 0.1 * jax.random.normal(ks[0], (C, C, 3, 3), jnp.float32),
        "conv2_w": 0.1 * jax.random.normal(ks[1], (C, C, 3, 3), jnp.float32),
        "bn1_gamma": 1.0 + 0.05 * jax.random.normal(ks[2], (C,), jnp.float32),
        "bn1_beta": 0.05 * jax.random.normal(ks[3], (C,), jnp.float32),
        "bn1_mean": 0.02 * jax.random.normal(ks[4], (C,), jnp.float32),
        "bn1_var": 1.0 + 0.1 * jnp.abs(jax.random.normal(ks[5], (C,), jnp.float32)),
        "bn2_gamma": 1.0 + 0.05 * jax.random.normal(ks[6], (C,), jnp.float32),
        "bn2_beta": 0.05 * jax.random.normal(ks[7], (C,), jnp.float32),
        "bn2_mean": 0.02 * jax.random.normal(ks[8], (C,), jnp.float32),
        "bn2_var": 1.0 + 0.1 * jnp.abs(jax.random.normal(ks[9], (C,), jnp.float32)),
        "se_w1": 0.2 * jax.random.normal(ks[10], (hid, C), jnp.float32),
        "se_w2": 0.2 * jax.random.normal(ks[11], (C, hid), jnp.float32),
    }
    x = jax.random.normal(ks[12], (N, C, H, W), jnp.float32)

    out = jax.jit(residual_block_forward)(x, params)
    out = jax.block_until_ready(out)
    assert out.shape == (N, C, H, W)

    # Tight check against a reference that mirrors the kernel's arithmetic.
    ref_m = reference_forward_matched(x, params)
    assert jnp.allclose(out, ref_m, atol=2e-3, rtol=2e-3), \
        float(jnp.max(jnp.abs(out - ref_m)))

    # Loose check against exact f32 eval-mode semantics (slack covers the bf16
    # rounding of the conv MXU operands).
    ref_f = reference_forward_f32(x, params)
    assert jnp.allclose(out, ref_f, atol=1e-1, rtol=1e-1), \
        float(jnp.max(jnp.abs(out - ref_f)))

    print("KERNEL_OK")
</pallas_src>

<mosaic_0001>
module attributes {stable_mosaic.version = 11 : i64} {
  func.func @_residual_block_kernel(%arg0: i32, %arg1: memref<2x8x8x32xf32, #tpu.memory_space<vmem>>, %arg2: memref<288x32xbf16, #tpu.memory_space<vmem>>, %arg3: memref<1x32xf32, #tpu.memory_space<vmem>>, %arg4: memref<288x32xbf16, #tpu.memory_space<vmem>>, %arg5: memref<1x32xf32, #tpu.memory_space<vmem>>, %arg6: memref<32x2xf32, #tpu.memory_space<vmem>>, %arg7: memref<2x32xf32, #tpu.memory_space<vmem>>, %arg8: memref<2x64x32xf32, #tpu.memory_space<vmem>>, %arg9: memref<2x10x17x32xbf16, #tpu.memory_space<vmem>>, %arg10: memref<128x288xbf16, #tpu.memory_space<vmem>>) attributes {dimension_semantics = [#tpu.dimension_semantics<parallel>], iteration_bounds = array<i64: 1>, scalar_prefetch = 0 : i64, scratch_operands = 2 : i64, tpu.core_type = #tpu.core_type<tc>, window_params = [{transform_indices = @transform_0, window_bounds = array<i64: 2, 8, 8, 32>}, {pipeline_mode = #tpu.pipeline_mode<synchronous>, transform_indices = @transform_1, window_bounds = array<i64: 288, 32>}, {pipeline_mode = #tpu.pipeline_mode<synchronous>, transform_indices = @transform_2, window_bounds = array<i64: 1, 32>}, {pipeline_mode = #tpu.pipeline_mode<synchronous>, transform_indices = @transform_3, window_bounds = array<i64: 288, 32>}, {pipeline_mode = #tpu.pipeline_mode<synchronous>, transform_indices = @transform_4, window_bounds = array<i64: 1, 32>}, {pipeline_mode = #tpu.pipeline_mode<synchronous>, transform_indices = @transform_5, window_bounds = array<i64: 32, 2>}, {pipeline_mode = #tpu.pipeline_mode<synchronous>, transform_indices = @transform_6, window_bounds = array<i64: 2, 32>}, {transform_indices = @transform_7, window_bounds = array<i64: 2, 64, 32>}]} {
    %cst = arith.constant 0.000000e+00 : bf16
    %0 = vector.broadcast %cst : bf16 to vector<2x1x10x32xbf16>
    %cst_0 = arith.constant 0.000000e+00 : bf16
    %1 = vector.broadcast %cst_0 : bf16 to vector<2x8x1x32xbf16>
    %c0 = arith.constant 0 : index
    %c0_1 = arith.constant 0 : index
    %c7 = arith.constant 7 : index
    %c0_2 = arith.constant 0 : index
    %2 = vector.load %arg9[%c0, %c0_1, %c7, %c0_2] : memref<2x10x17x32xbf16, #tpu.memory_space<vmem>>, vector<2x1x10x32xbf16>
    tpu.vector_store %arg9[%c0, %c0_1, %c7, %c0_2], %0 {strides = array<i32>} : memref<2x10x17x32xbf16, #tpu.memory_space<vmem>>, vector<2x1x10x32xbf16>,
    %c0_3 = arith.constant 0 : index
    %c9 = arith.constant 9 : index
    %c7_4 = arith.constant 7 : index
    %c0_5 = arith.constant 0 : index
    %3 = vector.load %arg9[%c0_3, %c9, %c7_4, %c0_5] : memref<2x10x17x32xbf16, #tpu.memory_space<vmem>>, vector<2x1x10x32xbf16>
    tpu.vector_store %arg9[%c0_3, %c9, %c7_4, %c0_5], %0 {strides = array<i32>} : memref<2x10x17x32xbf16, #tpu.memory_space<vmem>>, vector<2x1x10x32xbf16>,
    %c0_6 = arith.constant 0 : index
    %c1 = arith.constant 1 : index
    %c7_7 = arith.constant 7 : index
    %c0_8 = arith.constant 0 : index
    %4 = vector.load %arg9[%c0_6, %c1, %c7_7, %c0_8] : memref<2x10x17x32xbf16, #tpu.memory_space<vmem>>, vector<2x8x1x32xbf16>
    tpu.vector_store %arg9[%c0_6, %c1, %c7_7, %c0_8], %1 {strides = array<i32>} : memref<2x10x17x32xbf16, #tpu.memory_space<vmem>>, vector<2x8x1x32xbf16>,
    %c0_9 = arith.constant 0 : index
    %c1_10 = arith.constant 1 : index
    %c16 = arith.constant 16 : index
    %c0_11 = arith.constant 0 : index
    %5 = vector.load %arg9[%c0_9, %c1_10, %c16, %c0_11] : memref<2x10x17x32xbf16, #tpu.memory_space<vmem>>, vector<2x8x1x32xbf16>
    tpu.vector_store %arg9[%c0_9, %c1_10, %c16, %c0_11], %1 {strides = array<i32>} : memref<2x10x17x32xbf16, #tpu.memory_space<vmem>>, vector<2x8x1x32xbf16>,
    %c0_12 = arith.constant 0 : index
    %c0_13 = arith.constant 0 : index
    %c0_14 = arith.constant 0 : index
    %c0_15 = arith.constant 0 : index
    %6 = vector.load %arg1[%c0_12, %c0_13, %c0_14, %c0_15] : memref<2x8x8x32xf32, #tpu.memory_space<vmem>>, vector<2x8x8x32xf32>
    %7 = arith.truncf %6 : vector<2x8x8x32xf32> to vector<2x8x8x32xbf16>
    %c0_16 = arith.constant 0 : index
    %c1_17 = arith.constant 1 : index
    %c8 = arith.constant 8 : index
    %c0_18 = arith.constant 0 : index
    %8 = vector.load %arg9[%c0_16, %c1_17, %c8, %c0_18] : memref<2x10x17x32xbf16, #tpu.memory_space<vmem>>, vector<2x8x8x32xbf16>
    tpu.vector_store %arg9[%c0_16, %c1_17, %c8, %c0_18], %7 {strides = array<i32>} : memref<2x10x17x32xbf16, #tpu.memory_space<vmem>>, vector<2x8x8x32xbf16>,
    %c0_19 = arith.constant 0 : index
    %c0_20 = arith.constant 0 : index
    %c7_21 = arith.constant 7 : index
    %c0_22 = arith.constant 0 : index
    %9 = vector.load %arg9[%c0_19, %c0_20, %c7_21, %c0_22] : memref<2x10x17x32xbf16, #tpu.memory_space<vmem>>, vector<2x8x8x32xbf16>
    %10 = vector.shape_cast %9 : vector<2x8x8x32xbf16> to vector<128x32xbf16>
    %c0_23 = arith.constant 0 : index
    %c0_24 = arith.constant 0 : index
    %11 = vector.load %arg10[%c0_23, %c0_24] : memref<128x288xbf16, #tpu.memory_space<vmem>>, vector<128x32xbf16>
    tpu.vector_store %arg10[%c0_23, %c0_24], %10 {strides = array<i32>} : memref<128x288xbf16, #tpu.memory_space<vmem>>, vector<128x32xbf16>,
    %c0_25 = arith.constant 0 : index
    %c0_26 = arith.constant 0 : index
    %c8_27 = arith.constant 8 : index
    %c0_28 = arith.constant 0 : index
    %12 = vector.load %arg9[%c0_25, %c0_26, %c8_27, %c0_28] : memref<2x10x17x32xbf16, #tpu.memory_space<vmem>>, vector<2x8x8x32xbf16>
    %13 = vector.shape_cast %12 : vector<2x8x8x32xbf16> to vector<128x32xbf16>
    %c0_29 = arith.constant 0 : index
    %c32 = arith.constant 32 : index
    %14 = vector.load %arg10[%c0_29, %c32] : memref<128x288xbf16, #tpu.memory_space<vmem>>, vector<128x32xbf16>
    tpu.vector_store %arg10[%c0_29, %c32], %13 {strides = array<i32>} : memref<128x288xbf16, #tpu.memory_space<vmem>>, vector<128x32xbf16>,
    %c0_30 = arith.constant 0 : index
    %c0_31 = arith.constant 0 : index
    %c9_32 = arith.constant 9 : index
    %c0_33 = arith.constant 0 : index
    %15 = vector.load %arg9[%c0_30, %c0_31, %c9_32, %c0_33] : memref<2x10x17x32xbf16, #tpu.memory_space<vmem>>, vector<2x8x8x32xbf16>
    %16 = vector.shape_cast %15 : vector<2x8x8x32xbf16> to vector<128x32xbf16>
    %c0_34 = arith.constant 0 : index
    %c64 = arith.constant 64 : index
    %17 = vector.load %arg10[%c0_34, %c64] : memref<128x288xbf16, #tpu.memory_space<vmem>>, vector<128x32xbf16>
    tpu.vector_store %arg10[%c0_34, %c64], %16 {strides = array<i32>} : memref<128x288xbf16, #tpu.memory_space<vmem>>, vector<128x32xbf16>,
    %c0_35 = arith.constant 0 : index
    %c1_36 = arith.constant 1 : index
    %c7_37 = arith.constant 7 : index
    %c0_38 = arith.constant 0 : index
    %18 = vector.load %arg9[%c0_35, %c1_36, %c7_37, %c0_38] : memref<2x10x17x32xbf16, #tpu.memory_space<vmem>>, vector<2x8x8x32xbf16>
    %19 = vector.shape_cast %18 : vector<2x8x8x32xbf16> to vector<128x32xbf16>
    %c0_39 = arith.constant 0 : index
    %c96 = arith.constant 96 : index
    %20 = vector.load %arg10[%c0_39, %c96] : memref<128x288xbf16, #tpu.memory_space<vmem>>, vector<128x32xbf16>
    tpu.vector_store %arg10[%c0_39, %c96], %19 {strides = array<i32>} : memref<128x288xbf16, #tpu.memory_space<vmem>>, vector<128x32xbf16>,
    %c0_40 = arith.constant 0 : index
    %c1_41 = arith.constant 1 : index
    %c8_42 = arith.constant 8 : index
    %c0_43 = arith.constant 0 : index
    %21 = vector.load %arg9[%c0_40, %c1_41, %c8_42, %c0_43] : memref<2x10x17x32xbf16, #tpu.memory_space<vmem>>, vector<2x8x8x32xbf16>
    %22 = vector.shape_cast %21 : vector<2x8x8x32xbf16> to vector<128x32xbf16>
    %c0_44 = arith.constant 0 : index
    %c128 = arith.constant 128 : index
    %23 = vector.load %arg10[%c0_44, %c128] : memref<128x288xbf16, #tpu.memory_space<vmem>>, vector<128x32xbf16>
    tpu.vector_store %arg10[%c0_44, %c128], %22 {strides = array<i32>} : memref<128x288xbf16, #tpu.memory_space<vmem>>, vector<128x32xbf16>,
    %c0_45 = arith.constant 0 : index
    %c1_46 = arith.constant 1 : index
    %c9_47 = arith.constant 9 : index
    %c0_48 = arith.constant 0 : index
    %24 = vector.load %arg9[%c0_45, %c1_46, %c9_47, %c0_48] : memref<2x10x17x32xbf16, #tpu.memory_space<vmem>>, vector<2x8x8x32xbf16>
    %25 = vector.shape_cast %24 : vector<2x8x8x32xbf16> to vector<128x32xbf16>
    %c0_49 = arith.constant 0 : index
    %c160 = arith.constant 160 : index
    %26 = vector.load %arg10[%c0_49, %c160] : memref<128x288xbf16, #tpu.memory_space<vmem>>, vector<128x32xbf16>
    tpu.vector_store %arg10[%c0_49, %c160], %25 {strides = array<i32>} : memref<128x288xbf16, #tpu.memory_space<vmem>>, vector<128x32xbf16>,
    %c0_50 = arith.constant 0 : index
    %c2 = arith.constant 2 : index
    %c7_51 = arith.constant 7 : index
    %c0_52 = arith.constant 0 : index
    %27 = vector.load %arg9[%c0_50, %c2, %c7_51, %c0_52] : memref<2x10x17x32xbf16, #tpu.memory_space<vmem>>, vector<2x8x8x32xbf16>
    %28 = vector.shape_cast %27 : vector<2x8x8x32xbf16> to vector<128x32xbf16>
    %c0_53 = arith.constant 0 : index
    %c192 = arith.constant 192 : index
    %29 = vector.load %arg10[%c0_53, %c192] : memref<128x288xbf16, #tpu.memory_space<vmem>>, vector<128x32xbf16>
    tpu.vector_store %arg10[%c0_53, %c192], %28 {strides = array<i32>} : memref<128x288xbf16, #tpu.memory_space<vmem>>, vector<128x32xbf16>,
    %c0_54 = arith.constant 0 : index
    %c2_55 = arith.constant 2 : index
    %c8_56 = arith.constant 8 : index
    %c0_57 = arith.constant 0 : index
    %30 = vector.load %arg9[%c0_54, %c2_55, %c8_56, %c0_57] : memref<2x10x17x32xbf16, #tpu.memory_space<vmem>>, vector<2x8x8x32xbf16>
    %31 = vector.shape_cast %30 : vector<2x8x8x32xbf16> to vector<128x32xbf16>
    %c0_58 = arith.constant 0 : index
    %c224 = arith.constant 224 : index
    %32 = vector.load %arg10[%c0_58, %c224] : memref<128x288xbf16, #tpu.memory_space<vmem>>, vector<128x32xbf16>
    tpu.vector_store %arg10[%c0_58, %c224], %31 {strides = array<i32>} : memref<128x288xbf16, #tpu.memory_space<vmem>>, vector<128x32xbf16>,
    %c0_59 = arith.constant 0 : index
    %c2_60 = arith.constant 2 : index
    %c9_61 = arith.constant 9 : index
    %c0_62 = arith.constant 0 : index
    %33 = vector.load %arg9[%c0_59, %c2_60, %c9_61, %c0_62] : memref<2x10x17x32xbf16, #tpu.memory_space<vmem>>, vector<2x8x8x32xbf16>
    %34 = vector.shape_cast %33 : vector<2x8x8x32xbf16> to vector<128x32xbf16>
    %c0_63 = arith.constant 0 : index
    %c256 = arith.constant 256 : index
    %35 = vector.load %arg10[%c0_63, %c256] : memref<128x288xbf16, #tpu.memory_space<vmem>>, vector<128x32xbf16>
    tpu.vector_store %arg10[%c0_63, %c256], %34 {strides = array<i32>} : memref<128x288xbf16, #tpu.memory_space<vmem>>, vector<128x32xbf16>,
    %c0_64 = arith.constant 0 : index
    %c0_65 = arith.constant 0 : index
    %36 = vector.load %arg10[%c0_64, %c0_65] : memref<128x288xbf16, #tpu.memory_space<vmem>>, vector<128x288xbf16>
    %c0_66 = arith.constant 0 : index
    %c0_67 = arith.constant 0 : index
    %37 = vector.load %arg2[%c0_66, %c0_67] : memref<288x32xbf16, #tpu.memory_space<vmem>>, vector<288x32xbf16>
    %cst_68 = arith.constant dense<0.000000e+00> : vector<128x32xf32>
    %38 = tpu.matmul %36, %37, %cst_68 {dimension_numbers = #tpu.dot_dimension_numbers<[1], [0], [0], [1], [0, 0, 1, 1], [], []>} : vector<128x288xbf16>, vector<288x32xbf16>, vector<128x32xf32> -> vector<128x32xf32>
    %c0_69 = arith.constant 0 : index
    %c0_70 = arith.constant 0 : index
    %39 = vector.load %arg3[%c0_69, %c0_70] : memref<1x32xf32, #tpu.memory_space<vmem>>, vector<1x32xf32>
    %40 = vector.broadcast %39 : vector<1x32xf32> to vector<128x32xf32>
    %41 = arith.addf %38, %40 : vector<128x32xf32>
    %cst_71 = arith.constant 0.000000e+00 : f32
    %42 = vector.broadcast %cst_71 : f32 to vector<128x32xf32>
    %43 = arith.cmpf ogt, %41, %42 : vector<128x32xf32>
    %cst_72 = arith.constant 0.00999999977 : f32
    %44 = vector.broadcast %cst_72 : f32 to vector<128x32xf32>
    %45 = arith.mulf %44, %41 : vector<128x32xf32>
    %46 = arith.select %43, %41, %45 : vector<128x32xi1>, vector<128x32xf32>
    %47 = arith.truncf %46 : vector<128x32xf32> to vector<128x32xbf16>
    %48 = vector.shape_cast %47 : vector<128x32xbf16> to vector<2x8x8x32xbf16>
    %c0_73 = arith.constant 0 : index
    %c1_74 = arith.constant 1 : index
    %c8_75 = arith.constant 8 : index
    %c0_76 = arith.constant 0 : index
    %49 = vector.load %arg9[%c0_73, %c1_74, %c8_75, %c0_76] : memref<2x10x17x32xbf16, #tpu.memory_space<vmem>>, vector<2x8x8x32xbf16>
    tpu.vector_store %arg9[%c0_73, %c1_74, %c8_75, %c0_76], %48 {strides = array<i32>} : memref<2x10x17x32xbf16, #tpu.memory_space<vmem>>, vector<2x8x8x32xbf16>,
    %c0_77 = arith.constant 0 : index
    %c0_78 = arith.constant 0 : index
    %c7_79 = arith.constant 7 : index
    %c0_80 = arith.constant 0 : index
    %50 = vector.load %arg9[%c0_77, %c0_78, %c7_79, %c0_80] : memref<2x10x17x32xbf16, #tpu.memory_space<vmem>>, vector<2x8x8x32xbf16>
    %51 = vector.shape_cast %50 : vector<2x8x8x32xbf16> to vector<128x32xbf16>
    %c0_81 = arith.constant 0 : index
    %c0_82 = arith.constant 0 : index
    %52 = vector.load %arg10[%c0_81, %c0_82] : memref<128x288xbf16, #tpu.memory_space<vmem>>, vector<128x32xbf16>
    tpu.vector_store %arg10[%c0_81, %c0_82], %51 {strides = array<i32>} : memref<128x288xbf16, #tpu.memory_space<vmem>>, vector<128x32xbf16>,
    %c0_83 = arith.constant 0 : index
    %c0_84 = arith.constant 0 : index
    %c8_85 = arith.constant 8 : index
    %c0_86 = arith.constant 0 : index
    %53 = vector.load %arg9[%c0_83, %c0_84, %c8_85, %c0_86] : memref<2x10x17x32xbf16, #tpu.memory_space<vmem>>, vector<2x8x8x32xbf16>
    %54 = vector.shape_cast %53 : vector<2x8x8x32xbf16> to vector<128x32xbf16>
    %c0_87 = arith.constant 0 : index
    %c32_88 = arith.constant 32 : index
    %55 = vector.load %arg10[%c0_87, %c32_88] : memref<128x288xbf16, #tpu.memory_space<vmem>>, vector<128x32xbf16>
    tpu.vector_store %arg10[%c0_87, %c32_88], %54 {strides = array<i32>} : memref<128x288xbf16, #tpu.memory_space<vmem>>, vector<128x32xbf16>,
    %c0_89 = arith.constant 0 : index
    %c0_90 = arith.constant 0 : index
    %c9_91 = arith.constant 9 : index
    %c0_92 = arith.constant 0 : index
    %56 = vector.load %arg9[%c0_89, %c0_90, %c9_91, %c0_92] : memref<2x10x17x32xbf16, #tpu.memory_space<vmem>>, vector<2x8x8x32xbf16>
    %57 = vector.shape_cast %56 : vector<2x8x8x32xbf16> to vector<128x32xbf16>
    %c0_93 = arith.constant 0 : index
    %c64_94 = arith.constant 64 : index
    %58 = vector.load %arg10[%c0_93, %c64_94] : memref<128x288xbf16, #tpu.memory_space<vmem>>, vector<128x32xbf16>
    tpu.vector_store %arg10[%c0_93, %c64_94], %57 {strides = array<i32>} : memref<128x288xbf16, #tpu.memory_space<vmem>>, vector<128x32xbf16>,
    %c0_95 = arith.constant 0 : index
    %c1_96 = arith.constant 1 : index
    %c7_97 = arith.constant 7 : index
    %c0_98 = arith.constant 0 : index
    %59 = vector.load %arg9[%c0_95, %c1_96, %c7_97, %c0_98] : memref<2x10x17x32xbf16, #tpu.memory_space<vmem>>, vector<2x8x8x32xbf16>
    %60 = vector.shape_cast %59 : vector<2x8x8x32xbf16> to vector<128x32xbf16>
    %c0_99 = arith.constant 0 : index
    %c96_100 = arith.constant 96 : index
    %61 = vector.load %arg10[%c0_99, %c96_100] : memref<128x288xbf16, #tpu.memory_space<vmem>>, vector<128x32xbf16>
    tpu.vector_store %arg10[%c0_99, %c96_100], %60 {strides = array<i32>} : memref<128x288xbf16, #tpu.memory_space<vmem>>, vector<128x32xbf16>,
    %c0_101 = arith.constant 0 : index
    %c1_102 = arith.constant 1 : index
    %c8_103 = arith.constant 8 : index
    %c0_104 = arith.constant 0 : index
    %62 = vector.load %arg9[%c0_101, %c1_102, %c8_103, %c0_104] : memref<2x10x17x32xbf16, #tpu.memory_space<vmem>>, vector<2x8x8x32xbf16>
    %63 = vector.shape_cast %62 : vector<2x8x8x32xbf16> to vector<128x32xbf16>
    %c0_105 = arith.constant 0 : index
    %c128_106 = arith.constant 128 : index
    %64 = vector.load %arg10[%c0_105, %c128_106] : memref<128x288xbf16, #tpu.memory_space<vmem>>, vector<128x32xbf16>
    tpu.vector_store %arg10[%c0_105, %c128_106], %63 {strides = array<i32>} : memref<128x288xbf16, #tpu.memory_space<vmem>>, vector<128x32xbf16>,
    %c0_107 = arith.constant 0 : index
    %c1_108 = arith.constant 1 : index
    %c9_109 = arith.constant 9 : index
    %c0_110 = arith.constant 0 : index
    %65 = vector.load %arg9[%c0_107, %c1_108, %c9_109, %c0_110] : memref<2x10x17x32xbf16, #tpu.memory_space<vmem>>, vector<2x8x8x32xbf16>
    %66 = vector.shape_cast %65 : vector<2x8x8x32xbf16> to vector<128x32xbf16>
    %c0_111 = arith.constant 0 : index
    %c160_112 = arith.constant 160 : index
    %67 = vector.load %arg10[%c0_111, %c160_112] : memref<128x288xbf16, #tpu.memory_space<vmem>>, vector<128x32xbf16>
    tpu.vector_store %arg10[%c0_111, %c160_112], %66 {strides = array<i32>} : memref<128x288xbf16, #tpu.memory_space<vmem>>, vector<128x32xbf16>,
    %c0_113 = arith.constant 0 : index
    %c2_114 = arith.constant 2 : index
    %c7_115 = arith.constant 7 : index
    %c0_116 = arith.constant 0 : index
    %68 = vector.load %arg9[%c0_113, %c2_114, %c7_115, %c0_116] : memref<2x10x17x32xbf16, #tpu.memory_space<vmem>>, vector<2x8x8x32xbf16>
    %69 = vector.shape_cast %68 : vector<2x8x8x32xbf16> to vector<128x32xbf16>
    %c0_117 = arith.constant 0 : index
    %c192_118 = arith.constant 192 : index
    %70 = vector.load %arg10[%c0_117, %c192_118] : memref<128x288xbf16, #tpu.memory_space<vmem>>, vector<128x32xbf16>
    tpu.vector_store %arg10[%c0_117, %c192_118], %69 {strides = array<i32>} : memref<128x288xbf16, #tpu.memory_space<vmem>>, vector<128x32xbf16>,
    %c0_119 = arith.constant 0 : index
    %c2_120 = arith.constant 2 : index
    %c8_121 = arith.constant 8 : index
    %c0_122 = arith.constant 0 : index
    %71 = vector.load %arg9[%c0_119, %c2_120, %c8_121, %c0_122] : memref<2x10x17x32xbf16, #tpu.memory_space<vmem>>, vector<2x8x8x32xbf16>
    %72 = vector.shape_cast %71 : vector<2x8x8x32xbf16> to vector<128x32xbf16>
    %c0_123 = arith.constant 0 : index
    %c224_124 = arith.constant 224 : index
    %73 = vector.load %arg10[%c0_123, %c224_124] : memref<128x288xbf16, #tpu.memory_space<vmem>>, vector<128x32xbf16>
    tpu.vector_store %arg10[%c0_123, %c224_124], %72 {strides = array<i32>} : memref<128x288xbf16, #tpu.memory_space<vmem>>, vector<128x32xbf16>,
    %c0_125 = arith.constant 0 : index
    %c2_126 = arith.constant 2 : index
    %c9_127 = arith.constant 9 : index
    %c0_128 = arith.constant 0 : index
    %74 = vector.load %arg9[%c0_125, %c2_126, %c9_127, %c0_128] : memref<2x10x17x32xbf16, #tpu.memory_space<vmem>>, vector<2x8x8x32xbf16>
    %75 = vector.shape_cast %74 : vector<2x8x8x32xbf16> to vector<128x32xbf16>
    %c0_129 = arith.constant 0 : index
    %c256_130 = arith.constant 256 : index
    %76 = vector.load %arg10[%c0_129, %c256_130] : memref<128x288xbf16, #tpu.memory_space<vmem>>, vector<128x32xbf16>
    tpu.vector_store %arg10[%c0_129, %c256_130], %75 {strides = array<i32>} : memref<128x288xbf16, #tpu.memory_space<vmem>>, vector<128x32xbf16>,
    %c0_131 = arith.constant 0 : index
    %c0_132 = arith.constant 0 : index
    %77 = vector.load %arg10[%c0_131, %c0_132] : memref<128x288xbf16, #tpu.memory_space<vmem>>, vector<128x288xbf16>
    %c0_133 = arith.constant 0 : index
    %c0_134 = arith.constant 0 : index
    %78 = vector.load %arg4[%c0_133, %c0_134] : memref<288x32xbf16, #tpu.memory_space<vmem>>, vector<288x32xbf16>
    %cst_135 = arith.constant dense<0.000000e+00> : vector<128x32xf32>
    %79 = tpu.matmul %77, %78, %cst_135 {dimension_numbers = #tpu.dot_dimension_numbers<[1], [0], [0], [1], [0, 0, 1, 1], [], []>} : vector<128x288xbf16>, vector<288x32xbf16>, vector<128x32xf32> -> vector<128x32xf32>
    %c0_136 = arith.constant 0 : index
    %c0_137 = arith.constant 0 : index
    %80 = vector.load %arg5[%c0_136, %c0_137] : memref<1x32xf32, #tpu.memory_space<vmem>>, vector<1x32xf32>
    %81 = vector.broadcast %80 : vector<1x32xf32> to vector<128x32xf32>
    %82 = arith.addf %79, %81 : vector<128x32xf32>
    %83 = vector.shape_cast %82 : vector<128x32xf32> to vector<2x64x32xf32>
    %cst_138 = arith.constant dense<0.000000e+00> : vector<2x32xf32>
    %84 = vector.multi_reduction <add>, %83, %cst_138 [1] : vector<2x64x32xf32> to vector<2x32xf32>
    %cst_139 = arith.constant 6.400000e+01 : f32
    %85 = vector.broadcast %cst_139 : f32 to vector<2x32xf32>
    %86 = arith.divf %84, %85 : vector<2x32xf32>
    %c0_140 = arith.constant 0 : index
    %c0_141 = arith.constant 0 : index
    %87 = vector.load %arg6[%c0_140, %c0_141] : memref<32x2xf32, #tpu.memory_space<vmem>>, vector<32x2xf32>
    %cst_142 = arith.constant dense<0.000000e+00> : vector<2x2xf32>
    %88 = tpu.matmul %86, %87, %cst_142 {dimension_numbers = #tpu.dot_dimension_numbers<[1], [0], [0], [1], [0, 0, 1, 1], [], []>} : vector<2x32xf32>, vector<32x2xf32>, vector<2x2xf32> -> vector<2x2xf32>
    %cst_143 = arith.constant 0.000000e+00 : f32
    %89 = vector.broadcast %cst_143 : f32 to vector<2x2xf32>
    %90 = arith.maximumf %88, %89 : vector<2x2xf32>
    %c0_144 = arith.constant 0 : index
    %c0_145 = arith.constant 0 : index
    %91 = vector.load %arg7[%c0_144, %c0_145] : memref<2x32xf32, #tpu.memory_space<vmem>>, vector<2x32xf32>
    %cst_146 = arith.constant dense<0.000000e+00> : vector<2x32xf32>
    %92 = tpu.matmul %90, %91, %cst_146 {dimension_numbers = #tpu.dot_dimension_numbers<[1], [0], [0], [1], [0, 0, 1, 1], [], []>} : vector<2x2xf32>, vector<2x32xf32>, vector<2x32xf32> -> vector<2x32xf32>
    %93 = arith.negf %92 : vector<2x32xf32>
    %94 = math.exp %93 : vector<2x32xf32>
    %cst_147 = arith.constant 1.000000e+00 : f32
    %95 = vector.broadcast %cst_147 : f32 to vector<2x32xf32>
    %96 = arith.addf %95, %94 : vector<2x32xf32>
    %97 = arith.divf %95, %96 : vector<2x32xf32>
    %c0_148 = arith.constant 0 : index
    %c0_149 = arith.constant 0 : index
    %c0_150 = arith.constant 0 : index
    %c0_151 = arith.constant 0 : index
    %98 = vector.load %arg1[%c0_148, %c0_149, %c0_150, %c0_151] : memref<2x8x8x32xf32, #tpu.memory_space<vmem>>, vector<2x8x8x32xf32>
    %99 = vector.shape_cast %98 : vector<2x8x8x32xf32> to vector<2x64x32xf32>
    %100 = vector.shape_cast %97 : vector<2x32xf32> to vector<2x1x32xf32>
    %101 = vector.broadcast %100 : vector<2x1x32xf32> to vector<2x64x32xf32>
    %102 = arith.mulf %83, %101 : vector<2x64x32xf32>
    %103 = arith.addf %102, %99 : vector<2x64x32xf32>
    %cst_152 = arith.constant 0.000000e+00 : f32
    %104 = vector.broadcast %cst_152 : f32 to vector<2x64x32xf32>
    %105 = arith.cmpf ogt, %103, %104 : vector<2x64x32xf32>
    %cst_153 = arith.constant 0.00999999977 : f32
    %106 = vector.broadcast %cst_153 : f32 to vector<2x64x32xf32>
    %107 = arith.mulf %106, %103 : vector<2x64x32xf32>
    %108 = arith.select %105, %103, %107 : vector<2x64x32xi1>, vector<2x64x32xf32>
    %c0_154 = arith.constant 0 : index
    %c0_155 = arith.constant 0 : index
    %c0_156 = arith.constant 0 : index
    %109 = vector.load %arg8[%c0_154, %c0_155, %c0_156] : memref<2x64x32xf32, #tpu.memory_space<vmem>>, vector<2x64x32xf32>
    tpu.vector_store %arg8[%c0_154, %c0_155, %c0_156], %108 {strides = array<i32>} : memref<2x64x32xf32, #tpu.memory_space<vmem>>, vector<2x64x32xf32>,
    return
  }
  func.func @transform_0(%arg0: i32) -> (i32, i32, i32, i32) {
    %c0_i32 = arith.constant 0 : i32
    %c0_i32_0 = arith.constant 0 : i32
    %c0_i32_1 = arith.constant 0 : i32
    %c0_i32_2 = arith.constant 0 : i32
    return %arg0, %c0_i32, %c0_i32_0, %c0_i32_1 : i32, i32, i32, i32
  }
  func.func @transform_1(%arg0: i32) -> (i32, i32) {
    %c0_i32 = arith.constant 0 : i32
    %c0_i32_0 = arith.constant 0 : i32
    %c0_i32_1 = arith.constant 0 : i32
    return %c0_i32, %c0_i32_0 : i32, i32
  }
  func.func @transform_2(%arg0: i32) -> (i32, i32) {
    %c0_i32 = arith.constant 0 : i32
    %c0_i32_0 = arith.constant 0 : i32
    %c0_i32_1 = arith.constant 0 : i32
    return %c0_i32, %c0_i32_0 : i32, i32
  }
  func.func @transform_3(%arg0: i32) -> (i32, i32) {
    %c0_i32 = arith.constant 0 : i32
    %c0_i32_0 = arith.constant 0 : i32
    %c0_i32_1 = arith.constant 0 : i32
    return %c0_i32, %c0_i32_0 : i32, i32
  }
  func.func @transform_4(%arg0: i32) -> (i32, i32) {
    %c0_i32 = arith.constant 0 : i32
    %c0_i32_0 = arith.constant 0 : i32
    %c0_i32_1 = arith.constant 0 : i32
    return %c0_i32, %c0_i32_0 : i32, i32
  }
  func.func @transform_5(%arg0: i32) -> (i32, i32) {
    %c0_i32 = arith.constant 0 : i32
    %c0_i32_0 = arith.constant 0 : i32
    %c0_i32_1 = arith.constant 0 : i32
    return %c0_i32, %c0_i32_0 : i32, i32
  }
  func.func @transform_6(%arg0: i32) -> (i32, i32) {
    %c0_i32 = arith.constant 0 : i32
    %c0_i32_0 = arith.constant 0 : i32
    %c0_i32_1 = arith.constant 0 : i32
    return %c0_i32, %c0_i32_0 : i32, i32
  }
  func.func @transform_7(%arg0: i32) -> (i32, i32, i32) {
    %c0_i32 = arith.constant 0 : i32
    %c0_i32_0 = arith.constant 0 : i32
    %c0_i32_1 = arith.constant 0 : i32
    return %arg0, %c0_i32, %c0_i32_0 : i32, i32, i32
  }
}

</mosaic_0001>

<bundles_post_ra>
// kernel: residual_block_forward.1
= control target key start
LH: loop header
LB: loop body
LE: loop exit
PB: predicated region body
PF: predicated region fallthrough
CT: control target
= control target key end

     0   :  { %vm34_vm0 = vcmask 257024   ;;  %v6263_v3 = vmov 0   ;;  %vm28_vm1 = vcmask 257027   ;;  %v68_v7 = vld [vmem:[#allocation2 + $0x18] sm:$0x8]  ;;  %vm36_vm5 = vcmask 253952   ;;  %s7903_s0 = inlined_call_operand.vmem [shape: f32[2,8,8,32], index: 0, kind: input, shape index: {}]   ;;  %s7904_s1 = inlined_call_operand.vmem [shape: bf16[288,32], index: 1, kind: input, shape index: {}]   ;;  %s7905_s2 = inlined_call_operand.vmem [shape: f32[1,32], index: 2, kind: input, shape index: {}]   ;;  %s7906_s3 = inlined_call_operand.vmem [shape: bf16[288,32], index: 3, kind: input, shape index: {}]   ;;  %s7907_s4 = inlined_call_operand.vmem [shape: f32[1,32], index: 4, kind: input, shape index: {}]   ;;  %s7908_s5 = inlined_call_operand.vmem [shape: f32[32,2], index: 5, kind: input, shape index: {}]   ;;  %s7909_s6 = inlined_call_operand.vmem [shape: f32[2,32], index: 6, kind: input, shape index: {}]   ;;  %s7910_s7 = inlined_call_operand.hbm [shape: f32[2,64,32], index: 7, kind: output, shape index: {}]  }
   0x1   :  { %v161_v0 = vld [vmem:[%s7903_s0] sm:$0xff]  ;;  %v162_v1 = vld [vmem:[%s7903_s0 + $0x8] sm:$0xff]  ;;  %v163_v2 = vld [vmem:[%s7903_s0 + $0x10] sm:$0xff]  ;;  %35 = vst.msk [vmem:[#allocation2 + $0x4] sm:$0xf] %vm34_vm0, %v6263_v3  ;;  %s6264_s11 = smov 32  }
   0x2   :  { %53 = vst.msk [vmem:[#allocation2 + $0x70] sm:$0xf] %vm34_vm0, %v6263_v3  ;;  %60 = vst.msk [vmem:[#allocation2 + $0xe8] sm:$0xf] %vm34_vm0, %v6263_v3  ;;  %v177_v4 = vpack.c.bf16 %v161_v0, %v161_v0  ;;  %v178_v5 = vpack.c.bf16 %v162_v1, %v162_v1  ;;  %v179_v6 = vpack.c.bf16 %v163_v2, %v163_v2  ;;  %v71_v8 = vld [vmem:[#allocation2 + $0x24] sm:$0x8] }
   0x3   :  { %45 = vst.msk [vmem:[#allocation2 + $0x7c] sm:$0xf] %vm34_vm0, %v6263_v3  ;;  %vm29_vm2 = vsmask.f32 7950  ;;  %vm37_vm3 = vsmask.f32 256 }
   0x4   :  { %193 = vst.msk [vmem:[#allocation2 + $0x10] sm:$0xf] %vm34_vm0, %v177_v4  ;;  %194 = vst.msk [vmem:[#allocation2 + $0x1c] sm:$0xf] %vm34_vm0, %v178_v5  ;;  %v164_v10 = vld [vmem:[%s7903_s0 + $0x18] sm:$0xff]  ;;  %v165_v11 = vld [vmem:[%s7903_s0 + $0x20] sm:$0xff] }
   0x5   :  { %195 = vst.msk [vmem:[#allocation2 + $0x28] sm:$0xf] %vm34_vm0, %v179_v6  ;;  %vm6330_vm4 = vmand %vm28_vm1, %vm29_vm2  ;;  %v180_v14 = vpack.c.bf16 %v164_v10, %v164_v10  ;;  %v181_v15 = vpack.c.bf16 %v165_v11, %v165_v11  ;;  %v65_v16 = vld [vmem:[#allocation2 + $0xc] sm:$0x8]  ;;  %v74_v17 = vld [vmem:[#allocation2 + $0x30] sm:$0x8] }
   0x6   :  { %v69_v12 = vsel %vm6330_vm4, 0, %v68_v7  ;;  %v72_v13 = vsel %vm6330_vm4, 0, %v71_v8  ;;  %v66_v18 = vsel %vm6330_vm4, 0, %v65_v16  ;;  %v75_v19 = vsel %vm6330_vm4, 0, %v74_v17  ;;  %v77_v20 = vld [vmem:[#allocation2 + $0x3c] sm:$0x8]  ;;  %vm6349_vm6 = vmand %vm36_vm5, %vm37_vm3 }
   0x7   :  { %70 = vst [vmem:[#allocation2 + $0x18] sm:$0x8] %v69_v12  ;;  %73 = vst [vmem:[#allocation2 + $0x24] sm:$0x8] %v72_v13  ;;  %v113_v22 = vld [vmem:[#allocation2 + $0x14] sm:$0x1] }
   0x8   :  { %196 = vst.msk [vmem:[#allocation2 + $0x34] sm:$0xf] %vm34_vm0, %v180_v14  ;;  %197 = vst.msk [vmem:[#allocation2 + $0x40] sm:$0xf] %vm34_vm0, %v181_v15  ;;  %v78_v23 = vsel %vm6330_vm4, 0, %v77_v20  ;;  %v114_v24 = vsel %vm6349_vm6, 0, %v113_v22 }
   0x9   :  { %67 = vst [vmem:[#allocation2 + $0xc] sm:$0x8] %v66_v18  ;;  %76 = vst [vmem:[#allocation2 + $0x30] sm:$0x8] %v75_v19  ;;  %v116_v25 = vld [vmem:[#allocation2 + $0x20] sm:$0x1] }
   0xa   :  { %79 = vst [vmem:[#allocation2 + $0x3c] sm:$0x8] %v78_v23  ;;  %115 = vst [vmem:[#allocation2 + $0x14] sm:$0x1] %v114_v24  ;;  %v117_v26 = vsel %vm6349_vm6, 0, %v116_v25  ;;  %s6265_s12 = smov 96  }
   0xb   :  { %v39_v27 = vld [vmem:[#allocation2 + $0x8] sm:$0x1]  ;;  %v119_v28 = vld [vmem:[#allocation2 + $0x2c] sm:$0x1]  ;;  %118 = vst [vmem:[#allocation2 + $0x20] sm:$0x1] %v117_v26 }
   0xc   :  { %v40_v29 = vsel %vm6349_vm6, 0, %v39_v27  ;;  %v6363_v30 = vld [vmem:[#allocation2 + $0x4] sm:$0xf]  ;;  %v120_v31 = vsel %vm6349_vm6, 0, %v119_v28  ;;  %vm241_vm7 = vsmask.f32 4368 }
   0xd   :  { %41 = vst [vmem:[#allocation2 + $0x8] sm:$0x1] %v40_v29  ;;  %v617_v32 = vshrl.u32 %v6363_v30, 16  ;;  %v620_v33 = vshll.u32 %v6363_v30, 16  ;;  %121 = vst [vmem:[#allocation2 + $0x2c] sm:$0x1] %v120_v31 }
   0xe   :  { %v6147_v34 = vld [vmem:[#allocation2 + $0x4] ss:$12 sps:$4 sm:$0xff]   ;;  %v6148_v35 = vld [vmem:[#allocation2 + $0x1c] ss:$12 sps:$4 sm:$0xff]   ;;  %v1579_v37 = vld [vmem:[#allocation2 + $0x18] sm:$0x8] }
   0xf   :  { %548 = vrot.lane.b32.xlu0 %v6147_v34, %s6264_s11  ;;  %v6149_v36 = vld [vmem:[#allocation2 + $0x1c] ss:$12 sps:$4 sm:$0xff]   ;;  %550 = vrot.lane.b32.xlu1 %v6148_v35, %s6264_s11  ;;  %v1581_v39 = vld [vmem:[#allocation2 + $0x24] sm:$0x8]  ;;  %v1612_v41 = vshrl.u32 %v1579_v37, 16  ;;  %v6372_v52 = vrot.slane %v617_v32, 4  ;;  %vm6376_vm8 = vmor %vm37_vm3, %vm241_vm7 }
  0x10   :  { %v1580_v38 = vld [vmem:[#allocation2 + $0x1c] sm:$0xf]  ;;  %v1582_v40 = vld [vmem:[#allocation2 + $0x28] sm:$0xf]  ;;  %v1625_v44 = vshrl.u32 %v1581_v39, 16  ;;  %s6266_s15 = smov 64  }
  0x11   :  { %v1617_v42 = vshrl.u32 %v1580_v38, 16  ;;  %v1620_v43 = vshll.u32 %v1580_v38, 16  ;;  %v1630_v45 = vshrl.u32 %v1582_v40, 16  ;;  %v1633_v46 = vshll.u32 %v1582_v40, 16  ;;  %v6150_v47 = vld [vmem:[#allocation2 + $0x34] ss:$12 sps:$4 sm:$0xff]  }
  0x12   :  { %v5665_v48 = vrot.slane %v1612_v41, 11  ;;  %v5666_v50 = vrot.slane %v1625_v44, 11  ;;  %v897_v51 = vld [vmem:[#allocation2 + $0xc] sm:$0x8]  ;;  %v898_v55 = vld [vmem:[#allocation2 + $0x10] sm:$0xf] }
  0x13   :  { %1931 = vrot.lane.b32.xlu0 %v6149_v36, %s6265_s12  ;;  %v1619_v49 = vrot.slane %v1617_v42, 7  ;;  %v1632_v54 = vrot.slane %v1630_v45, 7  ;;  %v899_v56 = vld [vmem:[#allocation2 + $0x18] sm:$0x8]  ;;  %v930_v57 = vshrl.u32 %v897_v51, 16  ;;  %v935_v60 = vshrl.u32 %v898_v55, 16 }
  0x14   :  { %v900_v59 = vld [vmem:[#allocation2 + $0x1c] sm:$0xf]  ;;  %v938_v61 = vshll.u32 %v898_v55, 16  ;;  %v943_v62 = vshrl.u32 %v899_v56, 16  ;;  %v166_v63 = vld [vmem:[%s7903_s0 + $0x28] sm:$0xff]  ;;  %vm7915_vm12 = vcmask 261120  }
  0x15   :  { %v1622_v58 = vor.u32 %v1620_v43, %v1619_v49  ;;  %v1635_v0 = vor.u32 %v1633_v46, %v1632_v54  ;;  %v5625_v1 = vrot.slane %v930_v57, 11  ;;  %v948_v2 = vshrl.u32 %v900_v59, 16  ;;  %v1583_v4 = vld [vmem:[#allocation2 + $0x30] sm:$0x8]  ;;  %v1584_v8 = vld [vmem:[#allocation2 + $0x34] sm:$0xf] }
  0x16   :  { %v951_v3 = vshll.u32 %v900_v59, 16  ;;  %v937_v6 = vrot.slane %v935_v60, 7  ;;  %v5626_v7 = vrot.slane %v943_v62, 11  ;;  %v1585_v10 = vld [vmem:[#allocation2 + $0x3c] sm:$0x8]  ;;  %v182_v11 = vpack.c.bf16 %v166_v63, %v166_v63 }
  0x17   :  { %v1623_v5 = vsel %vm6376_vm8, %v5665_v48, %v1622_v58  ;;  %1933 = vrot.lane.b32.xlu0 %v6150_v47, %s6265_s12  ;;  %v1636_v12 = vsel %vm6376_vm8, %v5666_v50, %v1635_v0  ;;  %v950_v13 = vrot.slane %v948_v2, 7  ;;  %v1586_v14 = vld [vmem:[#allocation2 + $0x40] sm:$0xf]  ;;  %v1638_v15 = vshrl.u32 %v1583_v4, 16  ;;  %v901_v22 = vld [vmem:[#allocation2 + $0x24] sm:$0x8] }
  0x18   :  { %v1643_v16 = vshrl.u32 %v1584_v8, 16  ;;  %v5681_v17 = vcombine.low %v1623_v5, %v1636_v12  ;;  %v940_v18 = vor.u32 %v938_v61, %v937_v6  ;;  %v1646_v19 = vshll.u32 %v1584_v8, 16  ;;  %v902_v23 = vld [vmem:[#allocation2 + $0x28] sm:$0xf]  ;;  %198 = vst.msk [vmem:[#allocation2 + $0x4c] sm:$0xf] %vm34_vm0, %v182_v11 }
  0x19   :  { %v1651_v20 = vshrl.u32 %v1585_v10, 16  ;;  %vm613_vm9 = vsmask.f32 3328  ;;  %vm614_vm10 = vsmask.f32 7440  ;;  %v953_v24 = vor.u32 %v951_v3, %v950_v13 }
  0x1a   :  { %v5667_v25 = vrot.slane %v1638_v15, 11  ;;  %v1645_v26 = vrot.slane %v1643_v16, 7  ;;  %v1656_v27 = vshrl.u32 %v1586_v14, 16  ;;  %v903_v28 = vld [vmem:[#allocation2 + $0x30] sm:$0x8]  ;;  %1843 = vrot.lane.b32.xlu1 %v5681_v17, %s6266_s15  ;;  %v941_v29 = vsel %vm6376_vm8, %v5625_v1, %v940_v18  ;;  %vm6408_vm11 = vmor %vm613_vm9, %vm614_vm10 }
  0x1b   :  { %v5668_v31 = vrot.slane %v1651_v20, 11  ;;  %v1659_v32 = vshll.u32 %v1586_v14, 16  ;;  %v904_v34 = vld [vmem:[#allocation2 + $0x34] sm:$0xf]  ;;  %v956_v35 = vshrl.u32 %v901_v22, 16  ;;  %v954_v36 = vsel %vm6376_vm8, %v5626_v7, %v953_v24 }
  0x1c   :  { %v1648_v37 = vor.u32 %v1646_v19, %v1645_v26  ;;  %v1658_v38 = vrot.slane %v1656_v27, 7  ;;  %v961_v39 = vshrl.u32 %v902_v23, 16  ;;  %v1266_v40 = vld [vmem:[#allocation2 + $0x10] sm:$0xf]  ;;  %v5641_v41 = vcombine.low %v941_v29, %v954_v36  ;;  %v1267_v45 = vld [vmem:[#allocation2 + $0x14] sm:$0x1] }
  0x1d   :  { %v5627_v42 = vrot.slane %v956_v35, 11  ;;  %v964_v43 = vshll.u32 %v902_v23, 16  ;;  %v969_v44 = vshrl.u32 %v903_v28, 16  ;;  %v974_v49 = vshrl.u32 %v904_v34, 16  ;;  %v1268_v50 = vld [vmem:[#allocation2 + $0x1c] sm:$0xf] }
  0x1e   :  { %v1649_v46 = vsel %vm6376_vm8, %v5667_v25, %v1648_v37  ;;  %v1661_v47 = vor.u32 %v1659_v32, %v1658_v38  ;;  %v963_v48 = vrot.slane %v961_v39, 7  ;;  %1161 = vrot.lane.b32.xlu1 %v5641_v41, %s6265_s12  ;;  %v977_v54 = vshll.u32 %v904_v34, 16  ;;  %v1269_v60 = vld [vmem:[#allocation2 + $0x20] sm:$0x1]  ;;  %v582_v62 = vld [vmem:[#allocation2 + $0x8] sm:$0x1] }
  0x1f   :  { %v5628_v51 = vrot.slane %v969_v44, 11  ;;  %v1299_v55 = vshrl.u32 %v1266_v40, 16  ;;  %v1302_v56 = vshll.u32 %v1266_v40, 16  ;;  %v976_v59 = vrot.slane %v974_v49, 7  ;;  %v583_v3 = vld [vmem:[#allocation2 + $0x10] sm:$0xf] }
  0x20   :  { %v1662_v57 = vsel %vm6376_vm8, %v5668_v31, %v1661_v47  ;;  %v966_v58 = vor.u32 %v964_v43, %v963_v48  ;;  %v1308_v61 = vshll.u32 %v1267_v45, 16  ;;  %v1313_v2 = vshrl.u32 %v1268_v50, 16  ;;  %v122_v13 = vld [vmem:[#allocation2 + $0x38] sm:$0x1]  ;;  %v584_v17 = vld [vmem:[#allocation2 + $0x14] sm:$0x1] }
  0x21   :  { %v5682_v63 = vcombine.low %v1649_v46, %v1662_v57  ;;  %v1301_v0 = vrot.slane %v1299_v55, 4  ;;  %v1304_v1 = vrot.slane %v1302_v56, 5  ;;  %v979_v5 = vor.u32 %v977_v54, %v976_v59  ;;  %v1271_v24 = vld [vmem:[#allocation2 + $0x2c] sm:$0x1]  ;;  %v1272_v29 = vld [vmem:[#allocation2 + $0x34] sm:$0xf] }
  0x22   :  { %v967_v4 = vsel %vm6376_vm8, %v5627_v42, %v966_v58  ;;  %v1310_v6 = vrot.slane %v1308_v61, 5  ;;  %v1316_v7 = vshll.u32 %v1268_v50, 16  ;;  %v1315_v10 = vrot.slane %v1313_v2, 4  ;;  %v585_v36 = vld [vmem:[#allocation2 + $0x1c] sm:$0xf]  ;;  %v6163_v56 = vld [vmem:[%s7904_s1 + $0x40] sm:$0xff]  }
  0x23   :  { %1845 = vrot.lane.b32.xlu0 %v5682_v63, %s6266_s15  ;;  %v1305_v8 = vor.u32 %v1304_v1, %v1301_v0  ;;  %v1322_v11 = vshll.u32 %v1269_v60, 16  ;;  %v622_v12 = vrot.slane %v620_v33, 5  ;;  %v980_v14 = vsel %vm6376_vm8, %v5628_v51, %v979_v5  ;;  %v1270_v33 = vld [vmem:[#allocation2 + $0x28] sm:$0xf]  ;;  %v586_v48 = vld [vmem:[#allocation2 + $0x20] sm:$0x1]  ;;  %5915 = vmatprep.subr.bf16.mxu0 %v6163_v56 }
  0x24   :  { %v1318_v16 = vrot.slane %v1316_v7, 5  ;;  %v626_v18 = vshll.u32 %v582_v62, 16  ;;  %v631_v19 = vshrl.u32 %v583_v3, 16  ;;  %v5642_v20 = vcombine.low %v967_v4, %v980_v14  ;;  %v587_v49 = vld [vmem:[#allocation2 + $0x28] sm:$0xf]  ;;  %v6164_v62 = vld [vmem:[%s7904_s1] sm:$0xff]  }
  0x25   :  { %v1306_v22 = vrot.slane %v1305_v8, 4  ;;  %v1324_v23 = vrot.slane %v1322_v11, 5  ;;  %v623_v30 = vor.u32 %v622_v12, %v6372_v52  ;;  %v634_v28 = vshll.u32 %v583_v3, 16  ;;  %v125_v61 = vld [vmem:[#allocation2 + $0x44] sm:$0x1]  ;;  %5916 = vmatpush3.bf16.msra.mxu0 %v6164_v62 }
  0x26   :  { %v1319_v25 = vor.u32 %v1318_v16, %v1315_v10  ;;  %v628_v26 = vrot.slane %v626_v18, 5  ;;  %v633_v27 = vrot.slane %v631_v19, 4  ;;  %1163 = vrot.lane.b32.xlu1 %v5642_v20, %s6265_s12  ;;  %v640_v34 = vshll.u32 %v584_v17, 16  ;;  %v588_v0 = vld [vmem:[#allocation2 + $0x2c] sm:$0x1]  ;;  %v169_v56 = vld [vmem:[%s7903_s0 + $0x40] sm:$0xff] }
  0x27   :  { %v1311_v31 = vsel %vm6408_vm11, %v1306_v22, %v1310_v6  ;;  %v624_v32 = vrot.slane %v623_v30, 4  ;;  %v123_v35 = vsel %vm6349_vm6, 0, %v122_v13  ;;  %v636_v52 = vrot.slane %v634_v28, 5  ;;  %v128_v8 = vld [vmem:[#allocation2 + $0x50] sm:$0x1] }
  0x28   :  { %v1320_v37 = vrot.slane %v1319_v25, 4  ;;  %124 = vst [vmem:[#allocation2 + $0x38] sm:$0x1] %v123_v35  ;;  %v1327_v38 = vshrl.u32 %v1270_v33, 16  ;;  %v1330_v39 = vshll.u32 %v1270_v33, 16  ;;  %v642_v41 = vrot.slane %v640_v34, 5 }
  0x29   :  { %v629_v40 = vsel %vm6408_vm11, %v624_v32, %v628_v26  ;;  %v1336_v42 = vshll.u32 %v1271_v24, 16  ;;  %v1341_v43 = vshrl.u32 %v1272_v29, 16  ;;  %v637_v45 = vor.u32 %v636_v52, %v633_v27  ;;  %v1274_v16 = vld [vmem:[#allocation2 + $0x40] sm:$0xf]  ;;  %v1276_v22 = vld [vmem:[#allocation2 + $0x4c] sm:$0xf] }
  0x2a   :  { %v1325_v44 = vsel %vm6408_vm11, %v1320_v37, %v1324_v23  ;;  %v1329_v46 = vrot.slane %v1327_v38, 4  ;;  %v1332_v47 = vrot.slane %v1330_v39, 5  ;;  %v1344_v55 = vshll.u32 %v1272_v29, 16  ;;  %v80_v25 = vld [vmem:[#allocation2 + $0x48] sm:$0x8]  ;;  %v167_v32 = vld [vmem:[%s7903_s0 + $0x30] sm:$0xff] }
  0x2b   :  { %v5657_v50 = vcombine.low %v1311_v31, %v1325_v44  ;;  %v1338_v51 = vrot.slane %v1336_v42, 5  ;;  %v1343_v54 = vrot.slane %v1341_v43, 4  ;;  %v638_v57 = vrot.slane %v637_v45, 4  ;;  %v83_v31 = vld [vmem:[#allocation2 + $0x54] sm:$0x8] }
  0x2c   :  { %v1333_v58 = vor.u32 %v1332_v47, %v1329_v46  ;;  %v645_v59 = vshrl.u32 %v585_v36, 16  ;;  %v648_v60 = vshll.u32 %v585_v36, 16  ;;  %v1346_v63 = vrot.slane %v1344_v55, 5  ;;  %v1588_v52 = vld [vmem:[#allocation2 + $0x4c] sm:$0xf]  ;;  %v168_v55 = vld [vmem:[%s7903_s0 + $0x38] sm:$0xff] }
  0x2d   :  { %1546 = vrot.lane.b32.xlu0 %v5657_v50, %s6264_s11  ;;  %v654_v1 = vshll.u32 %v586_v48, 16  ;;  %v659_v2 = vshrl.u32 %v587_v49, 16  ;;  %v662_v3 = vshll.u32 %v587_v49, 16  ;;  %v643_v4 = vsel %vm6408_vm11, %v638_v57, %v642_v41  ;;  %v589_v42 = vld [vmem:[#allocation2 + $0x34] sm:$0xf]  ;;  %v6165_v48 = vld [vmem:[%s7904_s1 + $0x48] sm:$0xff]  }
  0x2e   :  { %v1334_v5 = vrot.slane %v1333_v58, 4  ;;  %v647_v6 = vrot.slane %v645_v59, 4  ;;  %v650_v7 = vrot.slane %v648_v60, 5  ;;  %v5617_v10 = vcombine.low %v629_v40, %v643_v4  ;;  %v6151_v60 = vld [vmem:[#allocation2 + $0x34] ss:$12 sps:$4 sm:$0xff]   ;;  %5917 = vmatprep.subr.bf16.mxu0 %v6165_v48 }
  0x2f   :  { %v1273_v11 = vld [vmem:[#allocation2 + $0x38] sm:$0x1]  ;;  %v1347_v12 = vor.u32 %v1346_v63, %v1343_v54  ;;  %v656_v13 = vrot.slane %v654_v1, 5  ;;  %v661_v14 = vrot.slane %v659_v2, 4  ;;  %v664_v20 = vrot.slane %v662_v3, 5  ;;  %v6166_v63 = vld [vmem:[%s7904_s1 + $0x8] sm:$0xff]  }
  0x30   :  { %v1339_v17 = vsel %vm6408_vm11, %v1334_v5, %v1338_v51  ;;  %v1350_v18 = vshll.u32 %v1273_v11, 16  ;;  %v651_v19 = vor.u32 %v650_v7, %v647_v6  ;;  %864 = vrot.lane.b32.xlu1 %v5617_v10, %s6266_s15  ;;  %v668_v30 = vshll.u32 %v588_v0, 16  ;;  %v590_v47 = vld [vmem:[#allocation2 + $0x38] sm:$0x1]  ;;  %v591_v62 = vld [vmem:[#allocation2 + $0x40] sm:$0xf]  ;;  %5918 = vmatpush3.bf16.msra.mxu0 %v6166_v63 }
  0x31   :  { %v1348_v23 = vrot.slane %v1347_v12, 4  ;;  %v126_v33 = vsel %vm6349_vm6, 0, %v125_v61  ;;  %v129_v24 = vsel %vm6349_vm6, 0, %v128_v8  ;;  %v665_v28 = vor.u32 %v664_v20, %v661_v14  ;;  %v905_v4 = vld [vmem:[#allocation2 + $0x3c] sm:$0x8] }
  0x32   :  { %v1352_v26 = vrot.slane %v1350_v18, 5  ;;  %v652_v27 = vrot.slane %v651_v19, 4  ;;  %127 = vst [vmem:[#allocation2 + $0x44] sm:$0x1] %v126_v33  ;;  %130 = vst [vmem:[#allocation2 + $0x50] sm:$0x1] %v129_v24  ;;  %v183_v54 = vpack.c.bf16 %v167_v32, %v167_v32  ;;  %v184_v10 = vpack.c.bf16 %v168_v55, %v168_v55 }
  0x33   :  { %v1355_v29 = vshrl.u32 %v1274_v16, 16  ;;  %v670_v34 = vrot.slane %v668_v30, 5  ;;  %v1358_v35 = vshll.u32 %v1274_v16, 16  ;;  %v1369_v36 = vshrl.u32 %v1276_v22, 16 }
  0x34   :  { %v1372_v37 = vshll.u32 %v1276_v22, 16  ;;  %v1353_v38 = vsel %vm6408_vm11, %v1348_v23, %v1352_v26  ;;  %v657_v39 = vsel %vm6408_vm11, %v652_v27, %v656_v13  ;;  %v666_v40 = vrot.slane %v665_v28, 4  ;;  %199 = vst.msk [vmem:[#allocation2 + $0x58] sm:$0xf] %vm34_vm0, %v183_v54  ;;  %v906_v23 = vld [vmem:[#allocation2 + $0x40] sm:$0xf] }
  0x35   :  { %v1357_v41 = vrot.slane %v1355_v29, 4  ;;  %v5658_v43 = vcombine.low %v1339_v17, %v1353_v38  ;;  %v1360_v44 = vrot.slane %v1358_v35, 5  ;;  %v1371_v45 = vrot.slane %v1369_v36, 4  ;;  %200 = vst.msk [vmem:[#allocation2 + $0x64] sm:$0xf] %vm34_vm0, %v184_v10  ;;  %v170_v26 = vld [vmem:[%s7903_s0 + $0x48] sm:$0xff] }
  0x36   :  { %v1374_v46 = vrot.slane %v1372_v37, 5  ;;  %v671_v49 = vsel %vm6408_vm11, %v666_v40, %v670_v34  ;;  %v81_v50 = vsel %vm6330_vm4, 0, %v80_v25  ;;  %v84_v51 = vsel %vm6330_vm4, 0, %v83_v31  ;;  %v6167_v27 = vld [vmem:[%s7904_s1 + $0x50] sm:$0xff]  }
  0x37   :  { %1548 = vrot.lane.b32.xlu0 %v5658_v43, %s6264_s11  ;;  %v5618_v57 = vcombine.low %v657_v39, %v671_v49  ;;  %v1361_v58 = vor.u32 %v1360_v44, %v1357_v41  ;;  %82 = vst [vmem:[#allocation2 + $0x48] sm:$0x8] %v81_v50  ;;  %85 = vst [vmem:[#allocation2 + $0x54] sm:$0x8] %v84_v51  ;;  %v1669_v61 = vshrl.u32 %v1588_v52, 16  ;;  %v1672_v0 = vshll.u32 %v1588_v52, 16 }
  0x38   :  { %v1375_v59 = vor.u32 %v1374_v46, %v1371_v45  ;;  %v673_v1 = vshrl.u32 %v589_v42, 16  ;;  %v676_v2 = vshll.u32 %v589_v42, 16  ;;  %v682_v3 = vshll.u32 %v590_v47, 16  ;;  %v6168_v34 = vld [vmem:[%s7904_s1 + $0x10] sm:$0xff]   ;;  %v908_v39 = vld [vmem:[#allocation2 + $0x4c] sm:$0xf]  ;;  %5919 = vmatprep.subr.bf16.mxu0 %v6167_v27 }
  0x39   :  { %866 = vrot.lane.b32.xlu1 %v5618_v57, %s6266_s15  ;;  %v1275_v5 = vld [vmem:[#allocation2 + $0x44] sm:$0x1]  ;;  %v1277_v6 = vld [vmem:[#allocation2 + $0x50] sm:$0x1]  ;;  %v1362_v7 = vrot.slane %v1361_v58, 4  ;;  %v185_v11 = vpack.c.bf16 %v169_v56, %v169_v56  ;;  %v1671_v14 = vrot.slane %v1669_v61, 7  ;;  %5920 = vmatpush3.bf16.msra.mxu0 %v6168_v34  ;;  %v186_v51 = vpack.c.bf16 %v170_v26, %v170_v26 }
  0x3a   :  { %v1376_v8 = vrot.slane %v1375_v59, 4  ;;  %v1364_v12 = vshll.u32 %v1275_v5, 16  ;;  %v1378_v13 = vshll.u32 %v1277_v6, 16  ;;  %v592_v16 = vld [vmem:[#allocation2 + $0x44] sm:$0x1]  ;;  %v675_v17 = vrot.slane %v673_v1, 4 }
  0x3b   :  { %v678_v18 = vrot.slane %v676_v2, 5  ;;  %v6466_v19 = vrot.slane %v682_v3, 5  ;;  %v687_v20 = vshrl.u32 %v591_v62, 16  ;;  %v690_v22 = vshll.u32 %v591_v62, 16  ;;  %201 = vst.msk [vmem:[#allocation2 + $0x88] sm:$0xf] %vm34_vm0, %v185_v11 }
  0x3c   :  { %v1366_v30 = vrot.slane %v1364_v12, 5  ;;  %v1380_v33 = vrot.slane %v1378_v13, 5  ;;  %v6470_v24 = vor.u32 %v1672_v0, %v1671_v14  ;;  %v696_v25 = vshll.u32 %v592_v16, 16  ;;  %v1590_v42 = vld [vmem:[#allocation2 + $0x58] sm:$0xf]  ;;  %v6172_v14 = vld [vmem:[%s7904_s1 + $0x20] sm:$0xff]  }
  0x3d   :  { %552 = vrot.lane.b32.xlu1 %v6151_v60, %s6264_s11  ;;  %v679_v28 = vor.u32 %v678_v18, %v675_v17  ;;  %v689_v29 = vrot.slane %v687_v20, 4  ;;  %v692_v31 = vrot.slane %v690_v22, 5  ;;  %v982_v32 = vshrl.u32 %v905_v4, 16  ;;  %v6169_v46 = vld [vmem:[%s7904_s1 + $0x58] sm:$0xff]   ;;  %v134_v0 = vld [vmem:[#allocation2 + $0x68] sm:$0x1] }
  0x3e   :  { %v1367_v35 = vsel %vm6408_vm11, %v1362_v7, %v1366_v30  ;;  %v1381_v36 = vsel %vm6408_vm11, %v1376_v8, %v1380_v33  ;;  %v1587_v37 = vld [vmem:[#allocation2 + $0x48] sm:$0x8]  ;;  %v1589_v52 = vld [vmem:[#allocation2 + $0x54] sm:$0x8]  ;;  %v698_v38 = vrot.slane %v696_v25, 5  ;;  %v987_v40 = vshrl.u32 %v906_v23, 16  ;;  %5921 = vmatprep.subr.bf16.mxu0 %v6169_v46 }
  0x3f   :  { %v5659_v41 = vcombine.low %v1367_v35, %v1381_v36  ;;  %v1664_v43 = vshrl.u32 %v1587_v37, 16  ;;  %v1677_v44 = vshrl.u32 %v1589_v52, 16  ;;  %v680_v45 = vrot.slane %v679_v28, 4  ;;  %v131_v50 = vld [vmem:[#allocation2 + $0x5c] sm:$0x1]  ;;  %v6171_v7 = vld [vmem:[%s7904_s1 + $0x60] sm:$0xff]  }
  0x40   :  { %v1682_v47 = vshrl.u32 %v1590_v42, 16  ;;  %v1685_v48 = vshll.u32 %v1590_v42, 16  ;;  %v693_v49 = vor.u32 %v692_v31, %v689_v29  ;;  %v907_v57 = vld [vmem:[#allocation2 + $0x48] sm:$0x8]  ;;  %v6493_v58 = vrot.slane %v982_v32, 11  ;;  %v6170_v59 = vld [vmem:[%s7904_s1 + $0x18] sm:$0xff]  }
  0x41   :  { %1550 = vrot.lane.b32.xlu0 %v5659_v41, %s6264_s11  ;;  %v5669_v54 = vrot.slane %v1664_v43, 11  ;;  %v5670_v55 = vrot.slane %v1677_v44, 11  ;;  %v685_v56 = vsel %vm6408_vm11, %v680_v45, %v6466_v19  ;;  %v989_v62 = vrot.slane %v987_v40, 7  ;;  %202 = vst.msk [vmem:[#allocation2 + $0x94] sm:$0xf] %vm34_vm0, %v186_v51  ;;  %5922 = vmatpush3.bf16.msra.mxu0 %v6170_v59  ;;  %v6174_v22 = vld [vmem:[%s7904_s1 + $0x68] sm:$0xff]  }
  0x42   :  { %v1684_v60 = vrot.slane %v1682_v47, 7  ;;  %v694_v61 = vrot.slane %v693_v49, 4  ;;  %v990_v63 = vshll.u32 %v906_v23, 16  ;;  %v995_v2 = vshrl.u32 %v907_v57, 16  ;;  %v1278_v5 = vld [vmem:[#allocation2 + $0x58] sm:$0xf]  ;;  %5923 = vmatprep.subr.bf16.mxu0 %v6171_v7 }
  0x43   :  { %v1675_v1 = vsel %vm6376_vm8, %v5669_v54, %v6470_v24  ;;  %v1000_v3 = vshrl.u32 %v908_v39, 16  ;;  %v1003_v4 = vshll.u32 %v908_v39, 16  ;;  %v50_v6 = vld [vmem:[#allocation2 + $0x6c] sm:$0x8]  ;;  %v132_v12 = vsel %vm6349_vm6, 0, %v131_v50  ;;  %v171_v32 = vld [vmem:[%s7903_s0 + $0x50] sm:$0xff] }
  0x44   :  { %v1687_v8 = vor.u32 %v1685_v48, %v1684_v60  ;;  %v699_v10 = vsel %vm6408_vm11, %v694_v61, %v698_v38  ;;  %v992_v11 = vor.u32 %v990_v63, %v989_v62  ;;  %v1280_v13 = vld [vmem:[#allocation2 + $0x64] sm:$0xf]  ;;  %v5630_v17 = vrot.slane %v995_v2, 11  ;;  %133 = vst [vmem:[#allocation2 + $0x5c] sm:$0x1] %v132_v12  ;;  %v172_v34 = vld [vmem:[%s7903_s0 + $0x58] sm:$0xff] }
  0x45   :  { %v5619_v16 = vcombine.low %v685_v56, %v699_v10  ;;  %v1002_v18 = vrot.slane %v1000_v3, 7  ;;  %v135_v19 = vsel %vm6349_vm6, 0, %v134_v0  ;;  %v86_v20 = vld [vmem:[#allocation2 + $0x60] sm:$0x8]  ;;  %v1383_v33 = vshrl.u32 %v1278_v5, 16  ;;  %5924 = vmatpush3.bf16.msra.mxu0 %v6172_v14  ;;  %v6175_v45 = vld [vmem:[%s7904_s1 + $0x28] sm:$0xff]  }
  0x46   :  { %v1688_v23 = vsel %vm6376_vm8, %v5670_v55, %v1687_v8  ;;  %v993_v30 = vsel %vm6376_vm8, %v6493_v58, %v992_v11  ;;  %136 = vst [vmem:[#allocation2 + $0x68] sm:$0x1] %v135_v19  ;;  %v1386_v24 = vshll.u32 %v1278_v5, 16  ;;  %v1592_v25 = vld [vmem:[#allocation2 + $0x64] sm:$0xf]  ;;  %v1397_v28 = vshrl.u32 %v1280_v13, 16  ;;  %5925 = vmatprep.subr.bf16.mxu0 %v6174_v22 }
  0x47   :  { %v5683_v26 = vcombine.low %v1675_v1, %v1688_v23  ;;  %868 = vrot.lane.b32.xlu1 %v5619_v16, %s6266_s15  ;;  %v1005_v27 = vor.u32 %v1003_v4, %v1002_v18  ;;  %v1400_v29 = vshll.u32 %v1280_v13, 16  ;;  %v1594_v31 = vld [vmem:[#allocation2 + $0x70] sm:$0xf]  ;;  %v1385_v35 = vrot.slane %v1383_v33, 4  ;;  %v593_v38 = vld [vmem:[#allocation2 + $0x4c] sm:$0xf] }
  0x48   :  { %v1388_v36 = vrot.slane %v1386_v24, 5  ;;  %v51_v37 = vsel %vm6330_vm4, 0, %v50_v6  ;;  %v87_v52 = vsel %vm6330_vm4, 0, %v86_v20  ;;  %v6152_v39 = vld [vmem:[#allocation2 + $0x4c] ss:$12 sps:$4 sm:$0xff]   ;;  %v1399_v41 = vrot.slane %v1397_v28, 4 }
  0x49   :  { %1847 = vrot.lane.b32.xlu0 %v5683_v26, %s6266_s15  ;;  %v1006_v40 = vsel %vm6376_vm8, %v5630_v17, %v1005_v27  ;;  %v1402_v42 = vrot.slane %v1400_v29, 5  ;;  %52 = vst [vmem:[#allocation2 + $0x6c] sm:$0x8] %v51_v37  ;;  %88 = vst [vmem:[#allocation2 + $0x60] sm:$0x8] %v87_v52  ;;  %v1695_v43 = vshrl.u32 %v1592_v25, 16  ;;  %5926 = vmatpush3.bf16.msra.mxu0 %v6175_v45 }
  0x4a   :  { %v594_v44 = vld [vmem:[#allocation2 + $0x50] sm:$0x1]  ;;  %v5643_v46 = vcombine.low %v993_v30, %v1006_v40  ;;  %v1389_v47 = vor.u32 %v1388_v36, %v1385_v35  ;;  %v6153_v48 = vld [vmem:[#allocation2 + $0x4c] ss:$12 sps:$4 sm:$0xff]   ;;  %v1698_v49 = vshll.u32 %v1592_v25, 16  ;;  %v1708_v50 = vshrl.u32 %v1594_v31, 16 }
  0x4b   :  { %v595_v51 = vld [vmem:[#allocation2 + $0x58] sm:$0xf]  ;;  %v1403_v54 = vor.u32 %v1402_v42, %v1399_v41  ;;  %v1697_v55 = vrot.slane %v1695_v43, 7  ;;  %v1711_v56 = vshll.u32 %v1594_v31, 16  ;;  %v701_v57 = vshrl.u32 %v593_v38, 16  ;;  %v173_v58 = vld [vmem:[%s7903_s0 + $0x60] sm:$0xff] }
  0x4c   :  { %v174_v59 = vld [vmem:[%s7903_s0 + $0x68] sm:$0xff]  ;;  %v6177_v60 = vld [vmem:[%s7904_s1 + $0x70] sm:$0xff]   ;;  %1165 = vrot.lane.b32.xlu1 %v5643_v46, %s6265_s12  ;;  %v1279_v61 = vld [vmem:[#allocation2 + $0x5c] sm:$0x1]  ;;  %v1390_v62 = vrot.slane %v1389_v47, 4  ;;  %v1710_v63 = vrot.slane %v1708_v50, 7  ;;  %v187_v1 = vpack.c.bf16 %v171_v32, %v171_v32  ;;  %v188_v2 = vpack.c.bf16 %v172_v34, %v172_v34 }
  0x4d   :  { %v596_v0 = vld [vmem:[#allocation2 + $0x5c] sm:$0x1]  ;;  %1935 = vrot.lane.b32.xlu0 %v6152_v39, %s6265_s12  ;;  %v1281_v3 = vld [vmem:[#allocation2 + $0x68] sm:$0x1]  ;;  %v1392_v4 = vshll.u32 %v1279_v61, 16  ;;  %v1404_v5 = vrot.slane %v1403_v54, 4  ;;  %v1700_v6 = vor.u32 %v1698_v49, %v1697_v55  ;;  %5927 = vmatprep.subr.bf16.mxu0 %v6177_v60  ;;  %v189_v24 = vpack.c.bf16 %v173_v58, %v173_v58 }
  0x4e   :  { %v703_v7 = vrot.slane %v701_v57, 4  ;;  %v6178_v8 = vld [vmem:[%s7904_s1 + $0x30] sm:$0xff]   ;;  %v1406_v10 = vshll.u32 %v1281_v3, 16  ;;  %v1713_v11 = vor.u32 %v1711_v56, %v1710_v63  ;;  %v704_v12 = vshll.u32 %v593_v38, 16  ;;  %203 = vst.msk [vmem:[#allocation2 + $0xa0] sm:$0xf] %vm34_vm0, %v187_v1 }
  0x4f   :  { %v710_v13 = vshll.u32 %v594_v44, 16  ;;  %204 = vst.msk [vmem:[#allocation2 + $0xac] sm:$0xf] %vm34_vm0, %v188_v2  ;;  %v6179_v14 = vld [vmem:[%s7904_s1 + $0x80] sm:$0xff]   ;;  %v1394_v16 = vrot.slane %v1392_v4, 5  ;;  %v715_v17 = vshrl.u32 %v595_v51, 16  ;;  %5928 = vmatpush3.bf16.msra.mxu0 %v6178_v8  ;;  %v190_v25 = vpack.c.bf16 %v174_v59, %v174_v59 }
  0x50   :  { %v718_v18 = vshll.u32 %v595_v51, 16  ;;  %v724_v19 = vshll.u32 %v596_v0, 16  ;;  %v909_v20 = vld [vmem:[#allocation2 + $0x54] sm:$0x8]  ;;  %v1408_v22 = vrot.slane %v1406_v10, 5  ;;  %554 = vrot.lane.b32.xlu1 %v6153_v48, %s6264_s11  ;;  %v706_v33 = vrot.slane %v704_v12, 5  ;;  %6070 = vmatprep.subr.bf16.mxu1 %v6179_v14 }
  0x51   :  { %v1591_v23 = vld [vmem:[#allocation2 + $0x60] sm:$0x8]  ;;  %v1593_v30 = vld [vmem:[#allocation2 + $0x6c] sm:$0x8]  ;;  %v1395_v26 = vsel %vm6408_vm11, %v1390_v62, %v1394_v16  ;;  %v712_v29 = vrot.slane %v710_v13, 5  ;;  %6071 = vmatpush3.bf16.msra.mxu1 %v6179_v14  ;;  %v6180_v32 = vld [vmem:[%s7904_s1 + $0x78] sm:$0xff]  }
  0x52   :  { %v1690_v27 = vshrl.u32 %v1591_v23, 16  ;;  %v1703_v28 = vshrl.u32 %v1593_v30, 16  ;;  %v910_v31 = vld [vmem:[#allocation2 + $0x58] sm:$0xf]  ;;  %v1409_v34 = vsel %vm6408_vm11, %v1404_v5, %v1408_v22  ;;  %v707_v35 = vor.u32 %v706_v33, %v703_v7  ;;  %v911_v52 = vld [vmem:[#allocation2 + $0x60] sm:$0x8]  ;;  %5929 = vmatprep.subr.bf16.mxu0 %v6180_v32 }
  0x53   :  { %v717_v36 = vrot.slane %v715_v17, 4  ;;  %v720_v37 = vrot.slane %v718_v18, 5  ;;  %205 = vst.msk [vmem:[#allocation2 + $0xb8] sm:$0xf] %vm34_vm0, %v189_v24  ;;  %206 = vst.msk [vmem:[#allocation2 + $0xc4] sm:$0xf] %vm34_vm0, %v190_v25  ;;  %v5660_v38 = vcombine.low %v1395_v26, %v1409_v34 }
  0x54   :  { %v5671_v39 = vrot.slane %v1690_v27, 11  ;;  %v5672_v40 = vrot.slane %v1703_v28, 11  ;;  %v726_v41 = vrot.slane %v724_v19, 5  ;;  %v137_v42 = vld [vmem:[#allocation2 + $0x8c] sm:$0x1]  ;;  %v6181_v44 = vld [vmem:[%s7904_s1 + $0x38] sm:$0xff]  }
  0x55   :  { %v140_v43 = vld [vmem:[#allocation2 + $0x98] sm:$0x1]  ;;  %v708_v45 = vrot.slane %v707_v35, 4  ;;  %v721_v46 = vor.u32 %v720_v37, %v717_v36  ;;  %v912_v47 = vld [vmem:[#allocation2 + $0x64] sm:$0xf]  ;;  %v1008_v48 = vshrl.u32 %v909_v20, 16  ;;  %1552 = vrot.lane.b32.xlu0 %v5660_v38, %s6264_s11  ;;  %5930 = vmatpush3.bf16.msra.mxu0 %v6181_v44 }
  0x56   :  { %v1013_v49 = vshrl.u32 %v910_v31, 16  ;;  %v6183_v50 = vld [vmem:[%s7904_s1 + $0x88] sm:$0xff]   ;;  %v1701_v51 = vsel %vm6376_vm8, %v5671_v39, %v1700_v6  ;;  %v1714_v54 = vsel %vm6376_vm8, %v5672_v40, %v1713_v11  ;;  %v1016_v55 = vshll.u32 %v910_v31, 16  ;;  %v1284_v58 = vld [vmem:[#allocation2 + $0x94] sm:$0xf] }
  0x57   :  { %v1021_v56 = vshrl.u32 %v911_v52, 16  ;;  %v1282_v57 = vld [vmem:[#allocation2 + $0x88] sm:$0xf]  ;;  %v5684_v59 = vcombine.low %v1701_v51, %v1714_v54  ;;  %v713_v60 = vsel %vm6408_vm11, %v708_v45, %v712_v29  ;;  %v722_v61 = vrot.slane %v721_v46, 4  ;;  %6072 = vmatprep.subr.bf16.mxu1 %v6183_v50  ;;  %v92_v3 = vld [vmem:[#allocation2 + $0x90] sm:$0x8] }
  0x58   :  { %v5631_v62 = vrot.slane %v1008_v48, 11  ;;  %v1015_v63 = vrot.slane %v1013_v49, 7  ;;  %v1026_v1 = vshrl.u32 %v912_v47, 16  ;;  %v1029_v2 = vshll.u32 %v912_v47, 16  ;;  %6073 = vmatpush3.bf16.msra.mxu1 %v6183_v50  ;;  %v95_v8 = vld [vmem:[#allocation2 + $0x9c] sm:$0x8] }
  0x59   :  { %v5632_v0 = vrot.slane %v1021_v56, 11  ;;  %v727_v4 = vsel %vm6408_vm11, %v722_v61, %v726_v41  ;;  %v138_v5 = vsel %vm6349_vm6, 0, %v137_v42  ;;  %v141_v6 = vsel %vm6349_vm6, 0, %v140_v43  ;;  %1849 = vrot.lane.b32.xlu0 %v5684_v59, %s6266_s15  ;;  %v6154_v11 = vld [vmem:[#allocation2 + $0x64] ss:$12 sps:$4 sm:$0xff]  }
  0x5a   :  { %v1411_v7 = vshrl.u32 %v1282_v57, 16  ;;  %v5620_v10 = vcombine.low %v713_v60, %v727_v4  ;;  %v1018_v12 = vor.u32 %v1016_v55, %v1015_v63  ;;  %v1028_v13 = vrot.slane %v1026_v1, 7  ;;  %139 = vst [vmem:[#allocation2 + $0x8c] sm:$0x1] %v138_v5  ;;  %142 = vst [vmem:[#allocation2 + $0x98] sm:$0x1] %v141_v6 }
  0x5b   :  { %v1414_v14 = vshll.u32 %v1282_v57, 16  ;;  %v1596_v16 = vld [vmem:[#allocation2 + $0x94] sm:$0xf]  ;;  %v1425_v18 = vshrl.u32 %v1284_v58, 16  ;;  %v1428_v19 = vshll.u32 %v1284_v58, 16  ;;  %v93_v20 = vsel %vm6330_vm4, 0, %v92_v3 }
  0x5c   :  { %v1413_v17 = vrot.slane %v1411_v7, 4  ;;  %v1598_v22 = vld [vmem:[#allocation2 + $0xa0] sm:$0xf]  ;;  %870 = vrot.lane.b32.xlu1 %v5620_v10, %s6266_s15  ;;  %v1019_v23 = vsel %vm6376_vm8, %v5631_v62, %v1018_v12  ;;  %v1031_v30 = vor.u32 %v1029_v2, %v1028_v13  ;;  %94 = vst [vmem:[#allocation2 + $0x90] sm:$0x8] %v93_v20  ;;  %v96_v24 = vsel %vm6330_vm4, 0, %v95_v8 }
  0x5d   :  { %v1416_v33 = vrot.slane %v1414_v14, 5  ;;  %v46_v25 = vld [vmem:[#allocation2 + $0x80] sm:$0x1]  ;;  %v597_v26 = vld [vmem:[#allocation2 + $0x7c] sm:$0xf]  ;;  %v175_v27 = vld [vmem:[%s7903_s0 + $0x70] sm:$0xff]  ;;  %1937 = vrot.lane.b32.xlu0 %v6154_v11, %s6265_s12 }
  0x5e   :  { %v1427_v28 = vrot.slane %v1425_v18, 4  ;;  %v1430_v29 = vrot.slane %v1428_v19, 5  ;;  %97 = vst [vmem:[#allocation2 + $0x9c] sm:$0x8] %v96_v24  ;;  %v1721_v31 = vshrl.u32 %v1596_v16, 16  ;;  %v1724_v32 = vshll.u32 %v1596_v16, 16 }
  0x5f   :  { %v599_v34 = vld [vmem:[#allocation2 + $0x88] sm:$0xf]  ;;  %v1032_v35 = vsel %vm6376_vm8, %v5632_v0, %v1031_v30  ;;  %v1417_v36 = vor.u32 %v1416_v33, %v1413_v17  ;;  %v1734_v37 = vshrl.u32 %v1598_v22, 16  ;;  %v1737_v52 = vshll.u32 %v1598_v22, 16  ;;  %v89_v47 = vld [vmem:[#allocation2 + $0x84] sm:$0x8] }
  0x60   :  { %v5644_v38 = vcombine.low %v1019_v23, %v1032_v35  ;;  %v1431_v39 = vor.u32 %v1430_v29, %v1427_v28  ;;  %v6155_v40 = vld [vmem:[#allocation2 + $0x7c] ss:$12 sps:$4 sm:$0xff]   ;;  %v1723_v41 = vrot.slane %v1721_v31, 7  ;;  %v47_v42 = vsel %vm6349_vm6, 0, %v46_v25  ;;  %v916_v13 = vld [vmem:[#allocation2 + $0x94] sm:$0xf] }
  0x61   :  { %v1418_v43 = vrot.slane %v1417_v36, 4  ;;  %v1736_v44 = vrot.slane %v1734_v37, 7  ;;  %48 = vst [vmem:[#allocation2 + $0x80] sm:$0x1] %v47_v42  ;;  %v729_v45 = vshrl.u32 %v597_v26, 16  ;;  %v732_v46 = vshll.u32 %v597_v26, 16 }
  0x62   :  { %1167 = vrot.lane.b32.xlu1 %v5644_v38, %s6265_s12  ;;  %v1283_v48 = vld [vmem:[#allocation2 + $0x8c] sm:$0x1]  ;;  %v1285_v49 = vld [vmem:[#allocation2 + $0x98] sm:$0x1]  ;;  %v1432_v50 = vrot.slane %v1431_v39, 4  ;;  %v1726_v51 = vor.u32 %v1724_v32, %v1723_v41  ;;  %v743_v54 = vshrl.u32 %v599_v34, 16  ;;  %v191_v56 = vpack.c.bf16 %v175_v27, %v175_v27 }
  0x63   :  { %v914_v55 = vld [vmem:[#allocation2 + $0x88] sm:$0xf]  ;;  %v1420_v57 = vshll.u32 %v1283_v48, 16  ;;  %v1434_v58 = vshll.u32 %v1285_v49, 16  ;;  %v1739_v59 = vor.u32 %v1737_v52, %v1736_v44  ;;  %v600_v60 = vld [vmem:[#allocation2 + $0x8c] sm:$0x1] }
  0x64   :  { %v731_v61 = vrot.slane %v729_v45, 4  ;;  %v1595_v62 = vld [vmem:[#allocation2 + $0x90] sm:$0x8]  ;;  %v734_v63 = vrot.slane %v732_v46, 5  ;;  %v745_v0 = vrot.slane %v743_v54, 4  ;;  %v746_v1 = vshll.u32 %v599_v34, 16 }
  0x65   :  { %v752_v2 = vshll.u32 %v600_v60, 16  ;;  %207 = vst.msk [vmem:[#allocation2 + $0xd0] sm:$0xf] %vm34_vm0, %v191_v56  ;;  %v1422_v3 = vrot.slane %v1420_v57, 5  ;;  %v1436_v4 = vrot.slane %v1434_v58, 5  ;;  %v1716_v6 = vshrl.u32 %v1595_v62, 16 }
  0x66   :  { %v1597_v5 = vld [vmem:[#allocation2 + $0x9c] sm:$0x8]  ;;  %v90_v7 = vsel %vm6330_vm4, 0, %v89_v47  ;;  %556 = vrot.lane.b32.xlu1 %v6155_v40, %s6264_s11  ;;  %v735_v10 = vor.u32 %v734_v63, %v731_v61  ;;  %v748_v11 = vrot.slane %v746_v1, 5  ;;  %v915_v18 = vld [vmem:[#allocation2 + $0x90] sm:$0x8] }
  0x67   :  { %v1729_v8 = vshrl.u32 %v1597_v5, 16  ;;  %v754_v12 = vrot.slane %v752_v2, 5  ;;  %91 = vst [vmem:[#allocation2 + $0x84] sm:$0x8] %v90_v7  ;;  %v1423_v14 = vsel %vm6408_vm11, %v1418_v43, %v1422_v3  ;;  %v1437_v16 = vsel %vm6408_vm11, %v1432_v50, %v1436_v4  ;;  %v143_v20 = vld [vmem:[#allocation2 + $0xa4] sm:$0x1] }
  0x68   :  { %v5673_v17 = vrot.slane %v1716_v6, 11  ;;  %v1039_v19 = vshrl.u32 %v914_v55, 16  ;;  %v5661_v22 = vcombine.low %v1423_v14, %v1437_v16  ;;  %v598_v30 = vld [vmem:[#allocation2 + $0x80] sm:$0x1]  ;;  %v736_v33 = vrot.slane %v735_v10, 4 }
  0x69   :  { %v5674_v23 = vrot.slane %v1729_v8, 11  ;;  %v749_v24 = vor.u32 %v748_v11, %v745_v0  ;;  %v146_v25 = vld [vmem:[#allocation2 + $0xb0] sm:$0x1]  ;;  %v1286_v26 = vld [vmem:[#allocation2 + $0xa0] sm:$0xf]  ;;  %v738_v28 = vshll.u32 %v598_v30, 16 }
  0x6a   :  { %v1727_v27 = vsel %vm6376_vm8, %v5673_v17, %v1726_v51  ;;  %v1041_v29 = vrot.slane %v1039_v19, 7  ;;  %v1042_v31 = vshll.u32 %v914_v55, 16  ;;  %v1288_v32 = vld [vmem:[#allocation2 + $0xac] sm:$0xf]  ;;  %1554 = vrot.lane.b32.xlu0 %v5661_v22, %s6264_s11  ;;  %v1047_v36 = vshrl.u32 %v915_v18, 16  ;;  %v176_v11 = vld [vmem:[%s7903_s0 + $0x78] sm:$0xff] }
  0x6b   :  { %v1740_v34 = vsel %vm6376_vm8, %v5674_v23, %v1739_v59  ;;  %v750_v35 = vrot.slane %v749_v24, 4  ;;  %v1052_v37 = vshrl.u32 %v916_v13, 16  ;;  %v98_v52 = vld [vmem:[#allocation2 + $0xa8] sm:$0x8]  ;;  %v740_v39 = vrot.slane %v738_v28, 5 }
  0x6c   :  { %v5685_v38 = vcombine.low %v1727_v27, %v1740_v34  ;;  %v1044_v40 = vor.u32 %v1042_v31, %v1041_v29  ;;  %v1055_v41 = vshll.u32 %v916_v13, 16  ;;  %v6156_v43 = vld [vmem:[#allocation2 + $0x94] ss:$12 sps:$4 sm:$0xff]   ;;  %v5634_v44 = vrot.slane %v1047_v36, 11  ;;  %v1600_v59 = vld [vmem:[#allocation2 + $0xac] sm:$0xf] }
  0x6d   :  { %v755_v42 = vsel %vm6408_vm11, %v750_v35, %v754_v12  ;;  %v1054_v45 = vrot.slane %v1052_v37, 7  ;;  %v144_v46 = vsel %vm6349_vm6, 0, %v143_v20  ;;  %v101_v47 = vld [vmem:[#allocation2 + $0xb4] sm:$0x8]  ;;  %v741_v48 = vsel %vm6408_vm11, %v736_v33, %v740_v39  ;;  %v1602_v60 = vld [vmem:[#allocation2 + $0xb8] sm:$0xf] }
  0x6e   :  { %v913_v49 = vld [vmem:[#allocation2 + $0x84] sm:$0x8]  ;;  %145 = vst [vmem:[#allocation2 + $0xa4] sm:$0x1] %v144_v46  ;;  %v147_v50 = vsel %vm6349_vm6, 0, %v146_v25  ;;  %v1439_v51 = vshrl.u32 %v1286_v26, 16  ;;  %1851 = vrot.lane.b32.xlu0 %v5685_v38, %s6266_s15  ;;  %v5621_v55 = vcombine.low %v741_v48, %v755_v42  ;;  %v192_v27 = vpack.c.bf16 %v176_v11, %v176_v11 }
  0x6f   :  { %v1442_v54 = vshll.u32 %v1286_v26, 16  ;;  %v1034_v56 = vshrl.u32 %v913_v49, 16  ;;  %v1057_v57 = vor.u32 %v1055_v41, %v1054_v45  ;;  %148 = vst [vmem:[#allocation2 + $0xb0] sm:$0x1] %v147_v50  ;;  %v1453_v58 = vshrl.u32 %v1288_v32, 16 }
  0x70   :  { %v1441_v61 = vrot.slane %v1439_v51, 4  ;;  %v1456_v63 = vshll.u32 %v1288_v32, 16  ;;  %v99_v0 = vsel %vm6330_vm4, 0, %v98_v52  ;;  %v601_v1 = vld [vmem:[#allocation2 + $0x94] sm:$0xf]  ;;  %872 = vrot.lane.b32.xlu1 %v5621_v55, %s6266_s15  ;;  %v102_v5 = vsel %vm6330_vm4, 0, %v101_v47 }
  0x71   :  { %v1444_v62 = vrot.slane %v1442_v54, 5  ;;  %v5633_v2 = vrot.slane %v1034_v56, 11  ;;  %v1058_v3 = vsel %vm6376_vm8, %v5634_v44, %v1057_v57  ;;  %v1455_v4 = vrot.slane %v1453_v58, 4  ;;  %100 = vst [vmem:[#allocation2 + $0xa8] sm:$0x8] %v99_v0 }
  0x72   :  { %v1458_v7 = vrot.slane %v1456_v63, 5  ;;  %103 = vst [vmem:[#allocation2 + $0xb4] sm:$0x8] %v102_v5  ;;  %v1747_v8 = vshrl.u32 %v1600_v59, 16  ;;  %v1750_v10 = vshll.u32 %v1600_v59, 16  ;;  %1939 = vrot.lane.b32.xlu0 %v6156_v43, %s6265_s12  ;;  %v1760_v13 = vshrl.u32 %v1602_v60, 16 }
  0x73   :  { %v1445_v6 = vor.u32 %v1444_v62, %v1441_v61  ;;  %v1045_v12 = vsel %vm6376_vm8, %v5633_v2, %v1044_v40  ;;  %v1763_v14 = vshll.u32 %v1602_v60, 16  ;;  %v602_v16 = vld [vmem:[#allocation2 + $0x98] sm:$0x1]  ;;  %v757_v17 = vshrl.u32 %v601_v1, 16  ;;  %v6157_v22 = vld [vmem:[#allocation2 + $0x94] ss:$12 sps:$4 sm:$0xff]  }
  0x74   :  { %v5645_v18 = vcombine.low %v1045_v12, %v1058_v3  ;;  %v1459_v20 = vor.u32 %v1458_v7, %v1455_v4  ;;  %v1749_v23 = vrot.slane %v1747_v8, 7  ;;  %v603_v30 = vld [vmem:[#allocation2 + $0xa0] sm:$0xf]  ;;  %v1762_v24 = vrot.slane %v1760_v13, 7  ;;  %v917_v35 = vld [vmem:[#allocation2 + $0x9c] sm:$0x8] }
  0x75   :  { %v1446_v19 = vrot.slane %v1445_v6, 4  ;;  %v1287_v33 = vld [vmem:[#allocation2 + $0xa4] sm:$0x1]  ;;  %v759_v26 = vrot.slane %v757_v17, 4  ;;  %v760_v34 = vshll.u32 %v601_v1, 16  ;;  %v766_v52 = vshll.u32 %v602_v16, 16 }
  0x76   :  { %v604_v25 = vld [vmem:[#allocation2 + $0xa4] sm:$0x1]  ;;  %1169 = vrot.lane.b32.xlu1 %v5645_v18, %s6265_s12  ;;  %v1289_v28 = vld [vmem:[#allocation2 + $0xb0] sm:$0x1]  ;;  %v1448_v29 = vshll.u32 %v1287_v33, 16  ;;  %v1460_v31 = vrot.slane %v1459_v20, 4  ;;  %v1752_v32 = vor.u32 %v1750_v10, %v1749_v23  ;;  %v1765_v37 = vor.u32 %v1763_v14, %v1762_v24 }
  0x77   :  { %v1462_v36 = vshll.u32 %v1289_v28, 16  ;;  %v771_v38 = vshrl.u32 %v603_v30, 16  ;;  %208 = vst.msk [vmem:[#allocation2 + $0xdc] sm:$0xf] %vm34_vm0, %v192_v27  ;;  %v762_v41 = vrot.slane %v760_v34, 5  ;;  %v774_v42 = vshll.u32 %v603_v30, 16 }
  0x78   :  { %v1450_v39 = vrot.slane %v1448_v29, 5  ;;  %v1599_v40 = vld [vmem:[#allocation2 + $0xa8] sm:$0x8]  ;;  %v780_v43 = vshll.u32 %v604_v25, 16  ;;  %v768_v47 = vrot.slane %v766_v52, 5  ;;  %v1060_v61 = vshrl.u32 %v917_v35, 16 }
  0x79   :  { %v1464_v44 = vrot.slane %v1462_v36, 5  ;;  %v1601_v45 = vld [vmem:[#allocation2 + $0xb4] sm:$0x8]  ;;  %v1742_v46 = vshrl.u32 %v1599_v40, 16  ;;  %v773_v48 = vrot.slane %v771_v38, 4  ;;  %v763_v51 = vor.u32 %v762_v41, %v759_v26 }
  0x7a   :  { %v1451_v49 = vsel %vm6408_vm11, %v1446_v19, %v1450_v39  ;;  %558 = vrot.lane.b32.xlu1 %v6157_v22, %s6264_s11  ;;  %v1755_v50 = vshrl.u32 %v1601_v45, 16  ;;  %v776_v54 = vrot.slane %v774_v42, 5  ;;  %v918_v55 = vld [vmem:[#allocation2 + $0xa0] sm:$0xf]  ;;  %v920_v56 = vld [vmem:[#allocation2 + $0xac] sm:$0xf] }
  0x7b   :  { %v1465_v57 = vsel %vm6408_vm11, %v1460_v31, %v1464_v44  ;;  %v5675_v58 = vrot.slane %v1742_v46, 11  ;;  %v782_v59 = vrot.slane %v780_v43, 5  ;;  %v919_v60 = vld [vmem:[#allocation2 + $0xa8] sm:$0x8]  ;;  %v764_v0 = vrot.slane %v763_v51, 4 }
  0x7c   :  { %v5662_v62 = vcombine.low %v1451_v49, %v1465_v57  ;;  %v5676_v63 = vrot.slane %v1755_v50, 11  ;;  %v777_v1 = vor.u32 %v776_v54, %v773_v48  ;;  %v149_v2 = vld [vmem:[#allocation2 + $0xbc] sm:$0x1]  ;;  %v152_v3 = vld [vmem:[#allocation2 + $0xc8] sm:$0x1]  ;;  %v5635_v5 = vrot.slane %v1060_v61, 11 }
  0x7d   :  { %v1753_v4 = vsel %vm6376_vm8, %v5675_v58, %v1752_v32  ;;  %v1065_v6 = vshrl.u32 %v918_v55, 16  ;;  %v1068_v7 = vshll.u32 %v918_v55, 16  ;;  %v1290_v8 = vld [vmem:[#allocation2 + $0xb8] sm:$0xf]  ;;  %v769_v11 = vsel %vm6408_vm11, %v764_v0, %v768_v47  ;;  %v1292_v14 = vld [vmem:[#allocation2 + $0xc4] sm:$0xf] }
  0x7e   :  { %1556 = vrot.lane.b32.xlu0 %v5662_v62, %s6264_s11  ;;  %v1766_v10 = vsel %vm6376_vm8, %v5676_v63, %v1765_v37  ;;  %v778_v12 = vrot.slane %v777_v1, 4  ;;  %v1073_v13 = vshrl.u32 %v919_v60, 16  ;;  %v104_v16 = vld [vmem:[#allocation2 + $0xc0] sm:$0x8]  ;;  %v1078_v19 = vshrl.u32 %v920_v56, 16 }
  0x7f   :  { %v5686_v17 = vcombine.low %v1753_v4, %v1766_v10  ;;  %v1067_v18 = vrot.slane %v1065_v6, 7  ;;  %v1081_v20 = vshll.u32 %v920_v56, 16  ;;  %v107_v22 = vld [vmem:[#allocation2 + $0xcc] sm:$0x8]  ;;  %v150_v24 = vsel %vm6349_vm6, 0, %v149_v2 }
  0x80   :  { %v783_v23 = vsel %vm6408_vm11, %v778_v12, %v782_v59  ;;  %v6158_v30 = vld [vmem:[#allocation2 + $0xac] ss:$12 sps:$4 sm:$0xff]   ;;  %v5636_v33 = vrot.slane %v1073_v13, 11  ;;  %v153_v25 = vsel %vm6349_vm6, 0, %v152_v3  ;;  %v1080_v28 = vrot.slane %v1078_v19, 7 }
  0x81   :  { %v5622_v26 = vcombine.low %v769_v11, %v783_v23  ;;  %v1070_v27 = vor.u32 %v1068_v7, %v1067_v18  ;;  %151 = vst [vmem:[#allocation2 + $0xbc] sm:$0x1] %v150_v24  ;;  %154 = vst [vmem:[#allocation2 + $0xc8] sm:$0x1] %v153_v25  ;;  %v1467_v29 = vshrl.u32 %v1290_v8, 16  ;;  %v1470_v32 = vshll.u32 %v1290_v8, 16 }
  0x82   :  { %v1604_v31 = vld [vmem:[#allocation2 + $0xc4] sm:$0xf]  ;;  %1853 = vrot.lane.b32.xlu0 %v5686_v17, %s6266_s15  ;;  %v1481_v34 = vshrl.u32 %v1292_v14, 16  ;;  %v1484_v35 = vshll.u32 %v1292_v14, 16  ;;  %v105_v36 = vsel %vm6330_vm4, 0, %v104_v16  ;;  %v1083_v38 = vor.u32 %v1081_v20, %v1080_v28 }
  0x83   :  { %v1606_v37 = vld [vmem:[#allocation2 + $0xd0] sm:$0xf]  ;;  %874 = vrot.lane.b32.xlu1 %v5622_v26, %s6266_s15  ;;  %v1071_v52 = vsel %vm6376_vm8, %v5635_v5, %v1070_v27  ;;  %v1469_v39 = vrot.slane %v1467_v29, 4  ;;  %106 = vst [vmem:[#allocation2 + $0xc0] sm:$0x8] %v105_v36  ;;  %v108_v40 = vsel %vm6330_vm4, 0, %v107_v22 }
  0x84   :  { %v605_v41 = vld [vmem:[#allocation2 + $0xac] sm:$0xf]  ;;  %v1472_v42 = vrot.slane %v1470_v32, 5  ;;  %v1483_v43 = vrot.slane %v1481_v34, 4  ;;  %v1486_v44 = vrot.slane %v1484_v35, 5  ;;  %v1773_v45 = vshrl.u32 %v1604_v31, 16 }
  0x85   :  { %109 = vst [vmem:[#allocation2 + $0xcc] sm:$0x8] %v108_v40  ;;  %v606_v46 = vld [vmem:[#allocation2 + $0xb0] sm:$0x1]  ;;  %v1084_v47 = vsel %vm6376_vm8, %v5636_v33, %v1083_v38  ;;  %v1776_v48 = vshll.u32 %v1604_v31, 16  ;;  %v1786_v49 = vshrl.u32 %v1606_v37, 16 }
  0x86   :  { %v1789_v50 = vshll.u32 %v1606_v37, 16  ;;  %1941 = vrot.lane.b32.xlu0 %v6158_v30, %s6265_s12  ;;  %v5646_v51 = vcombine.low %v1071_v52, %v1084_v47  ;;  %v1473_v54 = vor.u32 %v1472_v42, %v1469_v39  ;;  %v1487_v55 = vor.u32 %v1486_v44, %v1483_v43  ;;  %v6159_v56 = vld [vmem:[#allocation2 + $0xac] ss:$12 sps:$4 sm:$0xff]   ;;  %v921_v16 = vld [vmem:[#allocation2 + $0xb4] sm:$0x8] }
  0x87   :  { %v1775_v57 = vrot.slane %v1773_v45, 7  ;;  %v607_v58 = vld [vmem:[#allocation2 + $0xb8] sm:$0xf]  ;;  %v1788_v59 = vrot.slane %v1786_v49, 7  ;;  %v785_v60 = vshrl.u32 %v605_v41, 16  ;;  %v788_v61 = vshll.u32 %v605_v41, 16 }
  0x88   :  { %v794_v62 = vshll.u32 %v606_v46, 16  ;;  %1171 = vrot.lane.b32.xlu1 %v5646_v51, %s6265_s12  ;;  %v1291_v63 = vld [vmem:[#allocation2 + $0xbc] sm:$0x1]  ;;  %v1293_v0 = vld [vmem:[#allocation2 + $0xc8] sm:$0x1]  ;;  %v1474_v1 = vrot.slane %v1473_v54, 4 }
  0x89   :  { %v1488_v2 = vrot.slane %v1487_v55, 4  ;;  %v1778_v3 = vor.u32 %v1776_v48, %v1775_v57  ;;  %v1476_v4 = vshll.u32 %v1291_v63, 16  ;;  %v1490_v5 = vshll.u32 %v1293_v0, 16  ;;  %v608_v7 = vld [vmem:[#allocation2 + $0xbc] sm:$0x1] }
  0x8a   :  { %v1791_v6 = vor.u32 %v1789_v50, %v1788_v59  ;;  %v787_v8 = vrot.slane %v785_v60, 4  ;;  %v1603_v10 = vld [vmem:[#allocation2 + $0xc0] sm:$0x8]  ;;  %v790_v11 = vrot.slane %v788_v61, 5  ;;  %v796_v12 = vrot.slane %v794_v62, 5 }
  0x8b   :  { %v799_v13 = vshrl.u32 %v607_v58, 16  ;;  %v802_v14 = vshll.u32 %v607_v58, 16  ;;  %v922_v17 = vld [vmem:[#allocation2 + $0xb8] sm:$0xf]  ;;  %v1478_v18 = vrot.slane %v1476_v4, 5  ;;  %v1492_v19 = vrot.slane %v1490_v5, 5 }
  0x8c   :  { %v1605_v20 = vld [vmem:[#allocation2 + $0xcc] sm:$0x8]  ;;  %v1768_v22 = vshrl.u32 %v1603_v10, 16  ;;  %v808_v23 = vshll.u32 %v608_v7, 16  ;;  %560 = vrot.lane.b32.xlu1 %v6159_v56, %s6264_s11  ;;  %v791_v33 = vor.u32 %v790_v11, %v787_v8  ;;  %v924_v26 = vld [vmem:[#allocation2 + $0xc4] sm:$0xf] }
  0x8d   :  { %v1781_v30 = vshrl.u32 %v1605_v20, 16  ;;  %v801_v24 = vrot.slane %v799_v13, 4  ;;  %v804_v25 = vrot.slane %v802_v14, 5  ;;  %v1479_v27 = vsel %vm6408_vm11, %v1474_v1, %v1478_v18  ;;  %v923_v32 = vld [vmem:[#allocation2 + $0xc0] sm:$0x8]  ;;  %v6699_v14 = vpop.permute.xlu0 %548 }
  0x8e   :  { %v1493_v28 = vsel %vm6408_vm11, %v1488_v2, %v1492_v19  ;;  %v5677_v29 = vrot.slane %v1768_v22, 11  ;;  %v810_v31 = vrot.slane %v808_v23, 5  ;;  %v792_v36 = vrot.slane %v791_v33, 4  ;;  %v155_v52 = vld [vmem:[#allocation2 + $0xd4] sm:$0x1] }
  0x8f   :  { %v5663_v34 = vcombine.low %v1479_v27, %v1493_v28  ;;  %v5678_v35 = vrot.slane %v1781_v30, 11  ;;  %v805_v37 = vor.u32 %v804_v25, %v801_v24  ;;  %v158_v38 = vld [vmem:[#allocation2 + $0xe0] sm:$0x1]  ;;  %v1086_v40 = vshrl.u32 %v921_v16, 16  ;;  %v1294_v43 = vld [vmem:[#allocation2 + $0xd0] sm:$0xf] }
  0x90   :  { %v1779_v39 = vsel %vm6376_vm8, %v5677_v29, %v1778_v3  ;;  %v1091_v41 = vshrl.u32 %v922_v17, 16  ;;  %v1094_v42 = vshll.u32 %v922_v17, 16  ;;  %v797_v45 = vsel %vm6408_vm11, %v792_v36, %v796_v12  ;;  %v1296_v48 = vld [vmem:[#allocation2 + $0xdc] sm:$0xf]  ;;  %v57_v49 = vld [vmem:[#allocation2 + $0xe4] sm:$0x8]  ;;  %v6689_v3 = vpop.permute.xlu1 %550 }
  0x91   :  { %1558 = vrot.lane.b32.xlu0 %v5663_v34, %s6264_s11  ;;  %v1792_v44 = vsel %vm6376_vm8, %v5678_v35, %v1791_v6  ;;  %v806_v46 = vrot.slane %v805_v37, 4  ;;  %v1099_v47 = vshrl.u32 %v923_v32, 16  ;;  %v5637_v51 = vrot.slane %v1086_v40, 11  ;;  %v110_v56 = vld [vmem:[#allocation2 + $0xd8] sm:$0x8] }
  0x92   :  { %v5687_v50 = vcombine.low %v1779_v39, %v1792_v44  ;;  %v1093_v54 = vrot.slane %v1091_v41, 7  ;;  %v1104_v55 = vshrl.u32 %v924_v26, 16  ;;  %v6160_v58 = vld [vmem:[#allocation2 + $0xc4] ss:$12 sps:$4 sm:$0xff]   ;;  %v1107_v60 = vshll.u32 %v924_v26, 16 }
  0x93   :  { %v811_v57 = vsel %vm6408_vm11, %v806_v46, %v810_v31  ;;  %v5638_v59 = vrot.slane %v1099_v47, 11  ;;  %v156_v61 = vsel %vm6349_vm6, 0, %v155_v52  ;;  %v1608_v62 = vld [vmem:[#allocation2 + $0xdc] sm:$0xf]  ;;  %v159_v2 = vsel %vm6349_vm6, 0, %v158_v38 }
  0x94   :  { %v5623_v63 = vcombine.low %v797_v45, %v811_v57  ;;  %v1096_v0 = vor.u32 %v1094_v42, %v1093_v54  ;;  %v1106_v1 = vrot.slane %v1104_v55, 7  ;;  %157 = vst [vmem:[#allocation2 + $0xd4] sm:$0x1] %v156_v61  ;;  %160 = vst [vmem:[#allocation2 + $0xe0] sm:$0x1] %v159_v2  ;;  %v1495_v4 = vshrl.u32 %v1294_v43, 16  ;;  %v6704_v36 = vpop.permute.xlu1 %1843 }
  0x95   :  { %1855 = vrot.lane.b32.xlu0 %v5687_v50, %s6266_s15  ;;  %v1498_v5 = vshll.u32 %v1294_v43, 16  ;;  %v1509_v6 = vshrl.u32 %v1296_v48, 16  ;;  %v1512_v7 = vshll.u32 %v1296_v48, 16  ;;  %v1610_v8 = vld [vmem:[#allocation2 + $0xe8] sm:$0xf]  ;;  %v58_v12 = vsel %vm6330_vm4, 0, %v57_v49  ;;  %v6707_v43 = vpop.permute.xlu0 %1931 }
  0x96   :  { %876 = vrot.lane.b32.xlu1 %v5623_v63, %s6266_s15  ;;  %v1097_v10 = vsel %vm6376_vm8, %v5637_v51, %v1096_v0  ;;  %v1109_v11 = vor.u32 %v1107_v60, %v1106_v1  ;;  %v111_v13 = vsel %vm6330_vm4, 0, %v110_v56  ;;  %v1497_v16 = vrot.slane %v1495_v4, 4  ;;  %59 = vst [vmem:[#allocation2 + $0xe4] sm:$0x8] %v58_v12  ;;  %v609_v20 = vld [vmem:[#allocation2 + $0xc4] sm:$0xf] }
  0x97   :  { %v1500_v17 = vrot.slane %v1498_v5, 5  ;;  %v1511_v18 = vrot.slane %v1509_v6, 4  ;;  %v1514_v19 = vrot.slane %v1512_v7, 5  ;;  %112 = vst [vmem:[#allocation2 + $0xd8] sm:$0x8] %v111_v13  ;;  %v1799_v23 = vshrl.u32 %v1608_v62, 16 }
  0x98   :  { %v1110_v22 = vsel %vm6376_vm8, %v5638_v59, %v1109_v11  ;;  %v1802_v30 = vshll.u32 %v1608_v62, 16  ;;  %v1812_v33 = vshrl.u32 %v1610_v8, 16  ;;  %v610_v24 = vld [vmem:[#allocation2 + $0xc8] sm:$0x1]  ;;  %v611_v25 = vld [vmem:[#allocation2 + $0xd0] sm:$0xf]  ;;  %v6712_v5 = vpop.permute.xlu1 %1161 }
  0x99   :  { %1943 = vrot.lane.b32.xlu0 %v6160_v58, %s6265_s12  ;;  %v5647_v26 = vcombine.low %v1097_v10, %v1110_v22  ;;  %v1501_v27 = vor.u32 %v1500_v17, %v1497_v16  ;;  %v1515_v28 = vor.u32 %v1514_v19, %v1511_v18  ;;  %v1815_v29 = vshll.u32 %v1610_v8, 16  ;;  %v6161_v52 = vld [vmem:[#allocation2 + $0xc4] ss:$12 sps:$4 sm:$0xff]   ;;  %v925_v48 = vld [vmem:[#allocation2 + $0xcc] sm:$0x8]  ;;  %v6718_v19 = vpop.permute.xlu0 %1933 }
  0x9a   :  { %v1801_v31 = vrot.slane %v1799_v23, 7  ;;  %v1814_v32 = vrot.slane %v1812_v33, 7  ;;  %v813_v34 = vshrl.u32 %v609_v20, 16  ;;  %v816_v35 = vshll.u32 %v609_v20, 16  ;;  %v926_v57 = vld [vmem:[#allocation2 + $0xd0] sm:$0xf] }
  0x9b   :  { %1173 = vrot.lane.b32.xlu1 %v5647_v26, %s6265_s12  ;;  %v1295_v37 = vld [vmem:[#allocation2 + $0xd4] sm:$0x1]  ;;  %v1297_v38 = vld [vmem:[#allocation2 + $0xe0] sm:$0x1]  ;;  %v1502_v39 = vrot.slane %v1501_v27, 4  ;;  %v1516_v41 = vrot.slane %v1515_v28, 4 }
  0x9c   :  { %v1504_v40 = vshll.u32 %v1295_v37, 16  ;;  %v815_v42 = vrot.slane %v813_v34, 4  ;;  %v1518_v44 = vshll.u32 %v1297_v38, 16  ;;  %v818_v45 = vrot.slane %v816_v35, 5  ;;  %v612_v61 = vld [vmem:[#allocation2 + $0xd4] sm:$0x1] }
  0x9d   :  { %v822_v46 = vshll.u32 %v610_v24, 16  ;;  %v827_v47 = vshrl.u32 %v611_v25, 16  ;;  %v1609_v51 = vld [vmem:[#allocation2 + $0xe4] sm:$0x8]  ;;  %v1804_v54 = vor.u32 %v1802_v30, %v1801_v31  ;;  %v1817_v55 = vor.u32 %v1815_v29, %v1814_v32  ;;  %v928_v4 = vld [vmem:[#allocation2 + $0xdc] sm:$0xf] }
  0x9e   :  { %v1506_v49 = vrot.slane %v1504_v40, 5  ;;  %v1607_v50 = vld [vmem:[#allocation2 + $0xd8] sm:$0x8]  ;;  %v830_v56 = vshll.u32 %v611_v25, 16  ;;  %v1520_v58 = vrot.slane %v1518_v44, 5  ;;  %v1807_v60 = vshrl.u32 %v1609_v51, 16 }
  0x9f   :  { %562 = vrot.lane.b32.xlu1 %v6161_v52, %s6264_s11  ;;  %v1794_v59 = vshrl.u32 %v1607_v50, 16  ;;  %v819_v62 = vor.u32 %v818_v45, %v815_v42  ;;  %v824_v0 = vrot.slane %v822_v46, 5  ;;  %v829_v1 = vrot.slane %v827_v47, 4  ;;  %v927_v11 = vld [vmem:[#allocation2 + $0xd8] sm:$0x8]  ;;  %v6730_v42 = vpop.permute.xlu1 %1163 }
  0xa0   :  { %v1507_v63 = vsel %vm6408_vm11, %v1502_v39, %v1506_v49  ;;  %v832_v2 = vrot.slane %v830_v56, 5  ;;  %v1521_v6 = vsel %vm6408_vm11, %v1516_v41, %v1520_v58  ;;  %v5680_v8 = vrot.slane %v1807_v60, 11  ;;  %v6716_v12 = vld [vmem:[#allocation2 + $0x10] sm:$0xf]  ;;  %v31_v27 = vld [vmem:[#allocation2] sm:$0x8] }
  0xa1   :  { %v5679_v7 = vrot.slane %v1794_v59, 11  ;;  %v820_v10 = vrot.slane %v819_v62, 4  ;;  %v5664_v13 = vcombine.low %v1507_v63, %v1521_v6  ;;  %v836_v17 = vshll.u32 %v612_v61, 16  ;;  %v210_v34 = vld [vmem:[#allocation2 + $0x4] sm:$0xf] }
  0xa2   :  { %v833_v16 = vor.u32 %v832_v2, %v829_v1  ;;  %v1112_v18 = vshrl.u32 %v925_v48, 16  ;;  %v1818_v22 = vsel %vm6376_vm8, %v5680_v8, %v1817_v55  ;;  %v1117_v30 = vshrl.u32 %v926_v57, 16  ;;  %v6162_v37 = vld [vmem:[#allocation2 + $0xdc] ss:$12 sps:$4 sm:$0xff]   ;;  %v211_v39 = vld [vmem:[#allocation2 + $0xc] sm:$0x8] }
  0xa3   :  { %v1805_v20 = vsel %vm6376_vm8, %v5679_v7, %v1804_v54  ;;  %v825_v23 = vsel %vm6408_vm11, %v820_v10, %v824_v0  ;;  %1560 = vrot.lane.b32.xlu0 %v5664_v13, %s6264_s11  ;;  %v838_v25 = vrot.slane %v836_v17, 5  ;;  %v1120_v29 = vshll.u32 %v926_v57, 16  ;;  %v216_v40 = vld [vmem:[#allocation2 + $0x28] sm:$0xf]  ;;  %v213_v41 = vld [vmem:[#allocation2 + $0x18] sm:$0x8]  ;;  %v1846_v54 = vpop.permute.xlu0 %1845  ;;  %v865_v8 = vpop.permute.xlu1 %864 }
  0xa4   :  { %v5688_v33 = vcombine.low %v1805_v20, %v1818_v22  ;;  %v834_v24 = vrot.slane %v833_v16, 4  ;;  %v5639_v26 = vrot.slane %v1112_v18, 11  ;;  %v1119_v28 = vrot.slane %v1117_v30, 7  ;;  %v214_v48 = vld [vmem:[#allocation2 + $0x1c] sm:$0xf] }
  0xa5   :  { %v1125_v31 = vshrl.u32 %v927_v11, 16  ;;  %v1130_v32 = vshrl.u32 %v928_v4, 16  ;;  %v1133_v52 = vshll.u32 %v928_v4, 16  ;;  %v262_v38 = vshrl.u32 %v6716_v12, 16  ;;  %v215_v51 = vld [vmem:[#allocation2 + $0x24] sm:$0x8] }
  0xa6   :  { %v839_v35 = vsel %vm6408_vm11, %v834_v24, %v838_v25  ;;  %v1122_v45 = vor.u32 %v1120_v29, %v1119_v28  ;;  %v265_v49 = vshll.u32 %v6716_v12, 16  ;;  %v32_v50 = vsel %vm6330_vm4, 0, %v31_v27 }
  0xa7   :  { %v5624_v44 = vcombine.low %v825_v23, %v839_v35  ;;  %v5640_v46 = vrot.slane %v1125_v31, 11  ;;  %v1132_v47 = vrot.slane %v1130_v32, 7  ;;  %1857 = vrot.lane.b32.xlu0 %v5688_v33, %s6266_s15  ;;  %v264_v57 = vrot.slane %v262_v38, 7  ;;  %33 = vst [vmem:[#allocation2] sm:$0x8] %v32_v50  ;;  %v1547_v16 = vpop.permute.xlu0 %1546 }
  0xa8   :  { %v1123_v55 = vsel %vm6376_vm8, %v5639_v26, %v1122_v45  ;;  %v249_v58 = vshrl.u32 %v210_v34, 16  ;;  %v252_v59 = vshll.u32 %v210_v34, 16  ;;  %v288_v60 = vshrl.u32 %v216_v40, 16  ;;  %v6173_v26 = vld [vmem:[#allocation2 + $0x10] ss:$12 sps:$4 sm:$0xff]  }
  0xa9   :  { %878 = vrot.lane.b32.xlu1 %v5624_v44, %s6266_s15  ;;  %v1135_v56 = vor.u32 %v1133_v52, %v1132_v47  ;;  %v291_v61 = vshll.u32 %v216_v40, 16  ;;  %v257_v63 = vshrl.u32 %v211_v39, 16  ;;  %v270_v0 = vshrl.u32 %v213_v41, 16  ;;  %1258 = vst.msk [vmem:[#allocation3 + $0x8] sm:$0xff] %vm7915_vm12, %v6173_v26  ;;  %v6176_v32 = vld [vmem:[#allocation2 + $0x28] ss:$12 sps:$4 sm:$0xff]  }
  0xaa   :  { %v275_v1 = vshrl.u32 %v214_v48, 16  ;;  %v251_v4 = vrot.slane %v249_v58, 7  ;;  %v290_v6 = vrot.slane %v288_v60, 7  ;;  %v278_v7 = vshll.u32 %v214_v48, 16  ;;  %1259 = vst.msk [vmem:[#allocation3 + $0x20] sm:$0xff] %vm7915_vm12, %v6176_v32 }
  0xab   :  { %v1136_v62 = vsel %vm6376_vm8, %v5640_v46, %v1135_v56  ;;  %1945 = vrot.lane.b32.xlu0 %v6162_v37, %s6265_s12  ;;  %vm572_vm13 = vcmask 523520   ;;  %v5587_v10 = vrot.slane %v270_v0, 11  ;;  %v283_v12 = vshrl.u32 %v215_v51, 16  ;;  %v867_v28 = vpop.permute.xlu1 %866  ;;  %v1549_v34 = vpop.permute.xlu0 %1548  ;;  %v218_v38 = vld [vmem:[#allocation2 + $0x34] sm:$0xf] }
  0xac   :  { %v5648_v2 = vcombine.low %v1123_v55, %v1136_v62  ;;  %v277_v11 = vrot.slane %v275_v1, 7  ;;  %v293_v13 = vor.u32 %v291_v61, %v290_v6  ;;  %v267_v17 = vor.u32 %v265_v49, %v264_v57  ;;  %1570 = vst.msk [vmem:[#allocation3 + $0x8] sm:$0xff] %vm572_vm13, %v1547_v16  ;;  %1571 = vst.msk [vmem:[#allocation3 + $0x20] sm:$0xff] %vm572_vm13, %v1549_v34  ;;  %v219_v39 = vld [vmem:[#allocation2 + $0x3c] sm:$0x8] }
  0xad   :  { %v5586_v18 = vrot.slane %v257_v63, 11  ;;  %v5588_v22 = vrot.slane %v283_v12, 11  ;;  %v254_v30 = vor.u32 %v252_v59, %v251_v4  ;;  %vm888_vm14 = vcmask 785920   ;;  %v220_v40 = vld [vmem:[#allocation2 + $0x40] sm:$0xf] }
  0xae   :  { %1175 = vrot.lane.b32.xlu1 %v5648_v2, %s6265_s12  ;;  %v280_v20 = vor.u32 %v278_v7, %v277_v11  ;;  %v209_v23 = vld [vmem:[#allocation2] sm:$0x8]  ;;  %vm1185_vm15 = vcmask 1048320   ;;  %1867 = vst.msk [vmem:[#allocation3 + $0x8] sm:$0xff] %vm888_vm14, %v6704_v36  ;;  %1868 = vst.msk [vmem:[#allocation3 + $0x20] sm:$0xff] %vm888_vm14, %v1846_v54  ;;  %v309_v44 = vshrl.u32 %v219_v39, 16 }
  0xaf   :  { %v244_v33 = vshrl.u32 %v209_v23, 16  ;;  %v294_v25 = vsel %vm6376_vm8, %v5588_v22, %v293_v13  ;;  %v268_v31 = vsel %vm6376_vm8, %v5586_v18, %v267_v17  ;;  %1955 = vst.msk [vmem:[#allocation3 + $0x8] sm:$0xff] %vm1185_vm15, %v6707_v43  ;;  %v6767_v52 = vpop.permute.xlu1 %552  ;;  %1956 = vst.msk [vmem:[#allocation3 + $0x20] sm:$0xff] %vm1185_vm15, %v6718_v19  ;;  %v217_v43 = vld [vmem:[#allocation2 + $0x30] sm:$0x8]  ;;  %v314_v45 = vshrl.u32 %v220_v40, 16 }
  0xb0   :  { %v281_v24 = vsel %vm6376_vm8, %v5587_v10, %v280_v20  ;;  %v296_v41 = vshrl.u32 %v217_v43, 16  ;;  %v317_v19 = vshll.u32 %v220_v40, 16  ;;  %v1963_v46 = vld [vmem:[#allocation2 + $0x1c] sm:$0xf]  ;;  %v1964_v49 = vld [vmem:[#allocation2 + $0x20] sm:$0x1] }
  0xb1   :  { %v5602_v27 = vcombine.low %v281_v24, %v294_v25  ;;  %v5585_v29 = vrot.slane %v244_v33, 11  ;;  %v1965_v50 = vld [vmem:[#allocation2 + $0x28] sm:$0xf]  ;;  %v5590_v54 = vrot.slane %v309_v44, 11  ;;  %v316_v55 = vrot.slane %v314_v45, 7 }
  0xb2   :  { %v5589_v47 = vrot.slane %v296_v41, 11  ;;  %v1966_v56 = vld [vmem:[#allocation2 + $0x2c] sm:$0x1]  ;;  %v1996_v57 = vshrl.u32 %v1963_v46, 16  ;;  %v1999_v59 = vshll.u32 %v1963_v46, 16  ;;  %v2010_v60 = vshrl.u32 %v1965_v50, 16 }
  0xb3   :  { %485 = vst.msk [vmem:[#allocation3 + $0x18] sm:$0xff] %vm7915_vm12, %v5602_v27  ;;  %v255_v35 = vsel %vm6376_vm8, %v5585_v29, %v254_v30  ;;  %v1551_v36 = vpop.permute.xlu0 %1550  ;;  %v1967_v61 = vld [vmem:[#allocation2 + $0x34] sm:$0xf]  ;;  %v319_v63 = vor.u32 %v317_v19, %v316_v55  ;;  %v2013_v1 = vshll.u32 %v1965_v50, 16  ;;  %v2019_v2 = vshll.u32 %v1966_v56, 16 }
  0xb4   :  { %574 = vst.msk [vmem:[#allocation3 + $0x18] sm:$0xff] %vm572_vm13, %v6689_v3  ;;  %v5601_v37 = vcombine.low %v255_v35, %v268_v31  ;;  %v6182_v3 = vld [vmem:[#allocation2 + $0x40] ss:$12 sps:$4 sm:$0xff]   ;;  %v1998_v0 = vrot.slane %v1996_v57, 4  ;;  %v1968_v6 = vld [vmem:[#allocation2 + $0x38] sm:$0x1] }
  0xb5   :  { %890 = vst.msk [vmem:[#allocation3 + $0x18] sm:$0xff] %vm888_vm14, %v867_v28  ;;  %v2012_v11 = vrot.slane %v2010_v60, 4  ;;  %v1969_v12 = vld [vmem:[#allocation2 + $0x40] sm:$0xf]  ;;  %v320_v13 = vsel %vm6376_vm8, %v5590_v54, %v319_v63  ;;  %v2015_v16 = vrot.slane %v2013_v1, 5  ;;  %v2021_v17 = vrot.slane %v2019_v2, 5 }
  0xb6   :  { %1187 = vst.msk [vmem:[#allocation3 + $0x18] sm:$0xff] %vm1185_vm15, %v6730_v42  ;;  %v301_v42 = vshrl.u32 %v218_v38, 16  ;;  %v2260_v51 = vld [vmem:[#allocation3 + $0x8] sm:$0xff]  ;;  %v1970_v18 = vld [vmem:[#allocation2 + $0x44] sm:$0x1]  ;;  %v2024_v20 = vshrl.u32 %v1967_v61, 16 }
  0xb7   :  { %484 = vst.msk [vmem:[#allocation3] sm:$0xff] %vm7915_vm12, %v5601_v37  ;;  %1260 = vst.msk [vmem:[#allocation3 + $0x38] sm:$0xff] %vm7915_vm12, %v6182_v3  ;;  %2490 = vmatprep.mubr.bf16.mxu0 %v2260_v51  ;;  %v2263_v22 = vld [vmem:[#allocation3 + $0x20] sm:$0xff]  ;;  %v2027_v24 = vshll.u32 %v1967_v61, 16  ;;  %v2033_v25 = vshll.u32 %v1968_v6, 16  ;;  %v2016_v26 = vor.u32 %v2015_v16, %v2012_v11  ;;  %v2038_v28 = vshrl.u32 %v1969_v12, 16 }
  0xb8   :  { %573 = vst.msk [vmem:[#allocation3] sm:$0xff] %vm572_vm13, %v6699_v14  ;;  %1572 = vst.msk [vmem:[#allocation3 + $0x38] sm:$0xff] %vm572_vm13, %v1551_v36  ;;  %v304_v14 = vshll.u32 %v218_v38, 16  ;;  %v303_v48 = vrot.slane %v301_v42, 7  ;;  %v2026_v27 = vrot.slane %v2024_v20, 4  ;;  %v2041_v29 = vshll.u32 %v1969_v12, 16 }
  0xb9   :  { %889 = vst.msk [vmem:[#allocation3] sm:$0xff] %vm888_vm14, %v865_v8  ;;  %v869_v62 = vpop.permute.xlu1 %868  ;;  %v2001_v8 = vrot.slane %v1999_v59, 5  ;;  %v2029_v34 = vrot.slane %v2027_v24, 5  ;;  %v2047_v35 = vshll.u32 %v1970_v18, 16  ;;  %v6184_v3 = vld [vmem:[#allocation2 + $0x58] ss:$12 sps:$4 sm:$0xff]  }
  0xba   :  { %1186 = vst.msk [vmem:[#allocation3] sm:$0xff] %vm1185_vm15, %v6712_v5  ;;  %v306_v58 = vor.u32 %v304_v14, %v303_v48  ;;  %v2005_v5 = vshll.u32 %v1964_v49, 16  ;;  %v2017_v36 = vrot.slane %v2016_v26, 4  ;;  %v2035_v43 = vrot.slane %v2033_v25, 5  ;;  %v221_v40 = vld [vmem:[#allocation2 + $0x48] sm:$0x8] }
  0xbb   :  { %v1848_v4 = vpop.permute.xlu0 %1847  ;;  %v2002_v33 = vor.u32 %v2001_v8, %v1998_v0  ;;  %v2040_v38 = vrot.slane %v2038_v28, 4  ;;  %v2043_v39 = vrot.slane %v2041_v29, 5  ;;  %v2030_v42 = vor.u32 %v2029_v34, %v2026_v27  ;;  %1261 = vst.msk [vmem:[#allocation3 + $0x50] sm:$0xff] %vm7915_vm12, %v6184_v3  ;;  %v222_v44 = vld [vmem:[#allocation2 + $0x4c] sm:$0xf] }
  0xbc   :  { %v307_v7 = vsel %vm6376_vm8, %v5589_v47, %v306_v58  ;;  %v2007_v10 = vrot.slane %v2005_v5, 5  ;;  %1869 = vst.msk [vmem:[#allocation3 + $0x38] sm:$0xff] %vm888_vm14, %v1848_v4  ;;  %v2049_v14 = vrot.slane %v2047_v35, 5  ;;  %v223_v45 = vld [vmem:[#allocation2 + $0x54] sm:$0x8]  ;;  %v322_v19 = vshrl.u32 %v221_v40, 16 }
  0xbd   :  { %v5603_v23 = vcombine.low %v307_v7, %v320_v13  ;;  %v2003_v32 = vrot.slane %v2002_v33, 4  ;;  %v2044_v46 = vor.u32 %v2043_v39, %v2040_v38  ;;  %v224_v47 = vld [vmem:[#allocation2 + $0x58] sm:$0xf]  ;;  %v327_v48 = vshrl.u32 %v222_v44, 16  ;;  %v1971_v50 = vld [vmem:[#allocation2 + $0x4c] sm:$0xf] }
  0xbe   :  { %v1166_v37 = vpop.permute.xlu1 %1165  ;;  %v330_v49 = vshll.u32 %v222_v44, 16  ;;  %v2031_v54 = vrot.slane %v2030_v42, 4  ;;  %v5591_v55 = vrot.slane %v322_v19, 11  ;;  %v335_v56 = vshrl.u32 %v223_v45, 16  ;;  %v1972_v57 = vld [vmem:[#allocation2 + $0x50] sm:$0x1] }
  0xbf   :  { %v1936_v31 = vpop.permute.xlu0 %1935  ;;  %486 = vst.msk [vmem:[#allocation3 + $0x30] sm:$0xff] %vm7915_vm12, %v5603_v23  ;;  %v2008_v41 = vsel %vm6408_vm11, %v2003_v32, %v2007_v10  ;;  %v2045_v58 = vrot.slane %v2044_v46, 4  ;;  %v329_v59 = vrot.slane %v327_v48, 7  ;;  %v340_v5 = vshrl.u32 %v224_v47, 16  ;;  %v1973_v61 = vld [vmem:[#allocation2 + $0x58] sm:$0xf] }
  0xc0   :  { %1957 = vst.msk [vmem:[#allocation3 + $0x38] sm:$0xff] %vm1185_vm15, %v1936_v31  ;;  %v343_v60 = vshll.u32 %v224_v47, 16  ;;  %v2262_v63 = vld [vmem:[#allocation3 + $0x18] sm:$0xff]  ;;  %v5592_v0 = vrot.slane %v335_v56, 11  ;;  %v1974_v1 = vld [vmem:[#allocation2 + $0x5c] sm:$0x1] }
  0xc1   :  { %v2259_v30 = vld [vmem:[#allocation3] sm:$0xff]  ;;  %575 = vst.msk [vmem:[#allocation3 + $0x30] sm:$0xff] %vm572_vm13, %v6767_v52  ;;  %v2022_v52 = vsel %vm6408_vm11, %v2017_v36, %v2021_v17  ;;  %v2052_v2 = vshrl.u32 %v1971_v50, 16  ;;  %v2055_v4 = vshll.u32 %v1971_v50, 16  ;;  %v2050_v6 = vsel %vm6408_vm11, %v2045_v58, %v2049_v14  ;;  %v1975_v23 = vld [vmem:[#allocation2 + $0x64] sm:$0xf] }
  0xc2   :  { %2491 = vmatmul.mubr.bf16.vlgmr.msra.gmra.mrb[0].mxu0 %v2259_v30  ;;  %891 = vst.msk [vmem:[#allocation3 + $0x30] sm:$0xff] %vm888_vm14, %v869_v62  ;;  %v5697_v51 = vcombine.low %v2008_v41, %v2022_v52  ;;  %v2036_v62 = vsel %vm6408_vm11, %v2031_v54, %v2035_v43  ;;  %v332_v8 = vor.u32 %v330_v49, %v329_v59  ;;  %v342_v10 = vrot.slane %v340_v5, 7  ;;  %v555_v11 = vpop.permute.xlu1 %554  ;;  %v54_v16 = vld [vmem:[#allocation2 + $0x74] sm:$0x1]  ;;  %v1976_v26 = vld [vmem:[#allocation2 + $0x68] sm:$0x1] }
  0xc3   :  { %2498 = vmatprep.mubr.bf16.mxu0 %v2263_v22  ;;  %1188 = vst.msk [vmem:[#allocation3 + $0x30] sm:$0xff] %vm1185_vm15, %v1166_v37  ;;  %v2061_v13 = vshll.u32 %v1972_v57, 16  ;;  %v5698_v17 = vcombine.low %v2036_v62, %v2050_v6  ;;  %v2054_v18 = vrot.slane %v2052_v2, 4  ;;  %v2057_v20 = vrot.slane %v2055_v4, 5  ;;  %v1977_v27 = vld [vmem:[#allocation2 + $0x70] sm:$0xf] }
  0xc4   :  { %2251 = vst.msk [vmem:[#allocation3 + $0x10] sm:$0xff] %vm7915_vm12, %v5697_v51  ;;  %v2066_v22 = vshrl.u32 %v1973_v61, 16  ;;  %v333_v30 = vsel %vm6376_vm8, %v5591_v55, %v332_v8  ;;  %v345_v33 = vor.u32 %v343_v60, %v342_v10  ;;  %v2069_v25 = vshll.u32 %v1973_v61, 16  ;;  %v6185_v42 = vld [vmem:[#allocation2 + $0x88] ss:$12 sps:$4 sm:$0xff]  }
  0xc5   :  { %v2063_v24 = vrot.slane %v2061_v13, 5  ;;  %2252 = vst.msk [vmem:[#allocation3 + $0x28] sm:$0xff] %vm7915_vm12, %v5698_v17  ;;  %v2058_v28 = vor.u32 %v2057_v20, %v2054_v18  ;;  %v2075_v31 = vshll.u32 %v1974_v1, 16  ;;  %v55_v32 = vsel %vm6349_vm6, 0, %v54_v16  ;;  %1262 = vst.msk [vmem:[#allocation3 + $0x68] sm:$0xff] %vm7915_vm12, %v6185_v42 }
  0xc6   :  { %v2068_v29 = vrot.slane %v2066_v22, 4  ;;  %v346_v34 = vsel %vm6376_vm8, %v5592_v0, %v345_v33  ;;  %v2071_v37 = vrot.slane %v2069_v25, 5  ;;  %56 = vst [vmem:[#allocation2 + $0x74] sm:$0x1] %v55_v32  ;;  %v2080_v3 = vshrl.u32 %v1975_v23, 16 }
  0xc7   :  { %v1553_v7 = vpop.permute.xlu0 %1552  ;;  %v2266_v12 = vld [vmem:[#allocation3 + $0x38] sm:$0xff]  ;;  %v2083_v36 = vshll.u32 %v1975_v23, 16  ;;  %v5604_v43 = vcombine.low %v333_v30, %v346_v34  ;;  %v2059_v39 = vrot.slane %v2058_v28, 4  ;;  %v2077_v40 = vrot.slane %v2075_v31, 5  ;;  %v42_v50 = vld [vmem:[#allocation2 + $0x78] sm:$0x8] }
  0xc8   :  { %1573 = vst.msk [vmem:[#allocation3 + $0x50] sm:$0xff] %vm572_vm13, %v1553_v7  ;;  %v2089_v41 = vshll.u32 %v1976_v26, 16  ;;  %v2072_v45 = vor.u32 %v2071_v37, %v2068_v29  ;;  %v2082_v19 = vrot.slane %v2080_v3, 4  ;;  %v2094_v46 = vshrl.u32 %v1977_v27, 16  ;;  %v226_v51 = vld [vmem:[#allocation2 + $0x7c] sm:$0xf] }
  0xc9   :  { %v2085_v52 = vrot.slane %v2083_v36, 5  ;;  %487 = vst.msk [vmem:[#allocation3 + $0x48] sm:$0xff] %vm7915_vm12, %v5604_v43  ;;  %v2064_v47 = vsel %vm6408_vm11, %v2059_v39, %v2063_v24  ;;  %v2097_v49 = vshll.u32 %v1977_v27, 16  ;;  %v227_v54 = vld [vmem:[#allocation2 + $0x84] sm:$0x8]  ;;  %v353_v5 = vshrl.u32 %v226_v51, 16 }
  0xca   :  { %2499 = vmatmul.mubr.bf16.gmra.mrb[4].mxu0 %v2262_v63  ;;  %v2265_v38 = vld [vmem:[#allocation3 + $0x30] sm:$0xff]  ;;  %v6812_v48 = vrot.slane %v2089_v41, 5  ;;  %576 = vst.msk [vmem:[#allocation3 + $0x48] sm:$0xff] %vm572_vm13, %v555_v11  ;;  %v2073_v56 = vrot.slane %v2072_v45, 4  ;;  %v2096_v58 = vrot.slane %v2094_v46, 4  ;;  %v356_v61 = vshll.u32 %v226_v51, 16 }
  0xcb   :  { %2506 = vmatprep.mubr.bf16.mxu0 %v2266_v12  ;;  %v1850_v35 = vpop.permute.xlu0 %1849  ;;  %v2261_v14 = vld [vmem:[#allocation3 + $0x10] sm:$0xff]  ;;  %v2086_v57 = vor.u32 %v2085_v52, %v2082_v19  ;;  %v228_v59 = vld [vmem:[#allocation2 + $0x88] sm:$0xf]  ;;  %v2099_v60 = vrot.slane %v2097_v49, 5  ;;  %v361_v62 = vshrl.u32 %v227_v54, 16  ;;  %v355_v4 = vrot.slane %v353_v5, 7 }
  0xcc   :  { %1870 = vst.msk [vmem:[#allocation3 + $0x50] sm:$0xff] %vm888_vm14, %v1850_v35  ;;  %6074 = vmatprep.mubr.msk.bf16.mxu1 %vm7915_vm12, %v2261_v14  ;;  %v366_v63 = vshrl.u32 %v228_v59, 16  ;;  %v2264_v0 = vld [vmem:[#allocation3 + $0x28] sm:$0xff]  ;;  %v2078_v1 = vsel %vm6408_vm11, %v2073_v56, %v2077_v40  ;;  %v369_v6 = vshll.u32 %v228_v59, 16  ;;  %v6186_v16 = vld [vmem:[#allocation2 + $0xa0] ss:$12 sps:$4 sm:$0xff]  }
  0xcd   :  { %v2087_v2 = vrot.slane %v2086_v57, 4  ;;  %6075 = vmatmul.mubr.msk.bf16.vlgmr.msra.gmra.mrb[0].mxu1 %vm7915_vm12, %v2264_v0  ;;  %v5699_v8 = vcombine.low %v2064_v47, %v2078_v1  ;;  %v1978_v10 = vld [vmem:[#allocation2 + $0x74] sm:$0x1]  ;;  %v2100_v11 = vor.u32 %v2099_v60, %v2096_v58  ;;  %v6821_v12 = vrot.slane %v361_v62, 11  ;;  %v229_v22 = vld [vmem:[#allocation2 + $0x90] sm:$0x8] }
  0xce   :  { %v871_v44 = vpop.permute.xlu1 %870  ;;  %v368_v13 = vrot.slane %v366_v63, 7  ;;  %v2103_v18 = vshll.u32 %v1978_v10, 16  ;;  %v43_v20 = vsel %vm6330_vm4, 0, %v42_v50  ;;  %v230_v23 = vld [vmem:[#allocation2 + $0x94] sm:$0xf]  ;;  %v6830_v33 = vor.u32 %v356_v61, %v355_v4  ;;  %1263 = vst.msk [vmem:[#allocation3 + $0x80] sm:$0xff] %vm7915_vm12, %v6186_v16 }
  0xcf   :  { %v1938_v55 = vpop.permute.xlu0 %1937  ;;  %892 = vst.msk [vmem:[#allocation3 + $0x48] sm:$0xff] %vm888_vm14, %v871_v44  ;;  %v2092_v17 = vsel %vm6408_vm11, %v2087_v2, %v6812_v48  ;;  %v2101_v30 = vrot.slane %v2100_v11, 4  ;;  %44 = vst [vmem:[#allocation2 + $0x78] sm:$0x8] %v43_v20  ;;  %v231_v25 = vld [vmem:[#allocation2 + $0x9c] sm:$0x8] }
  0xd0   :  { %1958 = vst.msk [vmem:[#allocation3 + $0x50] sm:$0xff] %vm1185_vm15, %v1938_v55  ;;  %v6832_v24 = vor.u32 %v369_v6, %v368_v13  ;;  %v232_v26 = vld [vmem:[#allocation2 + $0xa0] sm:$0xf]  ;;  %v374_v27 = vshrl.u32 %v229_v22, 16  ;;  %v2105_v28 = vrot.slane %v2103_v18, 5  ;;  %v379_v29 = vshrl.u32 %v230_v23, 16 }
  0xd1   :  { %2253 = vst.msk [vmem:[#allocation3 + $0x40] sm:$0xff] %vm7915_vm12, %v5699_v8  ;;  %v382_v31 = vshll.u32 %v230_v23, 16  ;;  %v387_v9 = vshrl.u32 %v231_v25, 16  ;;  %v1979_v32 = vld [vmem:[#allocation2 + $0x94] sm:$0xf]  ;;  %v392_v37 = vshrl.u32 %v232_v26, 16 }
  0xd2   :  { %2507 = vmatmul.mubr.bf16.gmra.mrb[8].mxu0 %v2265_v38  ;;  %v372_v34 = vsel %vm6376_vm8, %v6821_v12, %v6832_v24  ;;  %v5595_v35 = vrot.slane %v374_v27, 11  ;;  %v395_v3 = vshll.u32 %v232_v26, 16  ;;  %v1980_v36 = vld [vmem:[#allocation2 + $0x98] sm:$0x1]  ;;  %v2106_v43 = vsel %vm6408_vm11, %v2101_v30, %v2105_v28  ;;  %v1981_v41 = vld [vmem:[#allocation2 + $0xa0] sm:$0xf] }
  0xd3   :  { %v381_v39 = vrot.slane %v379_v29, 7  ;;  %v5596_v40 = vrot.slane %v387_v9, 11  ;;  %v2108_v42 = vshrl.u32 %v1979_v32, 16  ;;  %v5700_v14 = vcombine.low %v2092_v17, %v2106_v43  ;;  %v1982_v45 = vld [vmem:[#allocation2 + $0xa4] sm:$0x1] }
  0xd4   :  { %v1168_v7 = vpop.permute.xlu1 %1167  ;;  %v394_v44 = vrot.slane %v392_v37, 7  ;;  %v2111_v19 = vshll.u32 %v1979_v32, 16  ;;  %v2117_v52 = vshll.u32 %v1980_v36, 16  ;;  %v2122_v48 = vshrl.u32 %v1981_v41, 16  ;;  %v1983_v50 = vld [vmem:[#allocation2 + $0xac] sm:$0xf] }
  0xd5   :  { %1189 = vst.msk [vmem:[#allocation3 + $0x48] sm:$0xff] %vm1185_vm15, %v1168_v7  ;;  %v384_v46 = vor.u32 %v382_v31, %v381_v39  ;;  %v2110_v47 = vrot.slane %v2108_v42, 4  ;;  %v2125_v49 = vshll.u32 %v1981_v41, 16  ;;  %v2131_v59 = vshll.u32 %v1982_v45, 16  ;;  %v1984_v5 = vld [vmem:[#allocation2 + $0xb0] sm:$0x1] }
  0xd6   :  { %2254 = vst.msk [vmem:[#allocation3 + $0x58] sm:$0xff] %vm7915_vm12, %v5700_v14  ;;  %v397_v56 = vor.u32 %v395_v3, %v394_v44  ;;  %v2113_v57 = vrot.slane %v2111_v19, 5  ;;  %v2119_v58 = vrot.slane %v2117_v52, 5  ;;  %v225_v61 = vld [vmem:[#allocation2 + $0x78] sm:$0x8]  ;;  %v2124_v63 = vrot.slane %v2122_v48, 4 }
  0xd7   :  { %v2269_v38 = vld [vmem:[#allocation3 + $0x50] sm:$0xff]  ;;  %v385_v62 = vsel %vm6376_vm8, %v5595_v35, %v384_v46  ;;  %v2127_v0 = vrot.slane %v2125_v49, 5  ;;  %v2136_v1 = vshrl.u32 %v1983_v50, 16  ;;  %v348_v2 = vshrl.u32 %v225_v61, 16  ;;  %v1985_v8 = vld [vmem:[#allocation2 + $0xb8] sm:$0xf] }
  0xd8   :  { %2514 = vmatprep.mubr.bf16.mxu0 %v2269_v38  ;;  %v6842_v54 = vpop.permute.xlu1 %556  ;;  %v2267_v60 = vld [vmem:[#allocation3 + $0x40] sm:$0xff]  ;;  %v398_v4 = vsel %vm6376_vm8, %v5596_v40, %v397_v56  ;;  %v2114_v6 = vor.u32 %v2113_v57, %v2110_v47  ;;  %v2133_v7 = vrot.slane %v2131_v59, 5  ;;  %v1986_v10 = vld [vmem:[#allocation2 + $0xbc] sm:$0x1]  ;;  %v2139_v17 = vshll.u32 %v1983_v50, 16 }
  0xd9   :  { %6078 = vmatprep.mubr.msk.bf16.mxu1 %vm7915_vm12, %v2267_v60  ;;  %v5606_v11 = vcombine.low %v385_v62, %v398_v4  ;;  %v2128_v13 = vor.u32 %v2127_v0, %v2124_v63  ;;  %v2138_v16 = vrot.slane %v2136_v1, 4  ;;  %v5593_v18 = vrot.slane %v348_v2, 11  ;;  %v6187_v25 = vld [vmem:[#allocation2 + $0xb8] ss:$12 sps:$4 sm:$0xff]   ;;  %v233_v31 = vld [vmem:[#allocation2 + $0xa8] sm:$0x8] }
  0xda   :  { %v2115_v22 = vrot.slane %v2114_v6, 4  ;;  %v2145_v23 = vshll.u32 %v1984_v5, 16  ;;  %v2150_v30 = vshrl.u32 %v1985_v8, 16  ;;  %v2141_v27 = vrot.slane %v2139_v17, 5  ;;  %1264 = vst.msk [vmem:[#allocation3 + $0x98] sm:$0xff] %vm7915_vm12, %v6187_v25 }
  0xdb   :  { %489 = vst.msk [vmem:[#allocation3 + $0x78] sm:$0xff] %vm7915_vm12, %v5606_v11  ;;  %v2129_v26 = vrot.slane %v2128_v13, 4  ;;  %v2153_v28 = vshll.u32 %v1985_v8, 16  ;;  %v2159_v29 = vshll.u32 %v1986_v10, 16  ;;  %v359_v9 = vsel %vm6376_vm8, %v5593_v18, %v6830_v33  ;;  %v234_v36 = vld [vmem:[#allocation2 + $0xac] sm:$0xf] }
  0xdc   :  { %v1555_v51 = vpop.permute.xlu0 %1554  ;;  %v2268_v55 = vld [vmem:[#allocation3 + $0x48] sm:$0xff]  ;;  %v2120_v35 = vsel %vm6408_vm11, %v2115_v22, %v2119_v58  ;;  %v2147_v37 = vrot.slane %v2145_v23, 5  ;;  %v2152_v3 = vrot.slane %v2150_v30, 4  ;;  %v235_v43 = vld [vmem:[#allocation2 + $0xb4] sm:$0x8]  ;;  %v5605_v39 = vcombine.low %v359_v9, %v372_v34 }
  0xdd   :  { %1574 = vst.msk [vmem:[#allocation3 + $0x68] sm:$0xff] %vm572_vm13, %v1555_v51  ;;  %2515 = vmatmul.mubr.bf16.gmra.mrb[12].mxu0 %v2268_v55  ;;  %v2270_v38 = vld [vmem:[#allocation3 + $0x58] sm:$0xff]  ;;  %v2134_v33 = vsel %vm6408_vm11, %v2129_v26, %v2133_v7  ;;  %v2142_v40 = vor.u32 %v2141_v27, %v2138_v16  ;;  %v2155_v41 = vrot.slane %v2153_v28, 5  ;;  %v236_v42 = vld [vmem:[#allocation2 + $0xb8] sm:$0xf]  ;;  %v2161_v45 = vrot.slane %v2159_v29, 5 }
  0xde   :  { %6079 = vmatmul.mubr.msk.bf16.gmra.mrb[4].mxu1 %vm7915_vm12, %v2270_v38  ;;  %v5701_v44 = vcombine.low %v2120_v35, %v2134_v33  ;;  %v400_v19 = vshrl.u32 %v233_v31, 16  ;;  %v405_v52 = vshrl.u32 %v234_v36, 16  ;;  %488 = vst.msk [vmem:[#allocation3 + $0x60] sm:$0xff] %vm7915_vm12, %v5605_v39  ;;  %v408_v24 = vshll.u32 %v234_v36, 16  ;;  %v6188_v47 = vld [vmem:[#allocation2 + $0xd0] ss:$12 sps:$4 sm:$0xff]  }
  0xdf   :  { %v2143_v46 = vrot.slane %v2142_v40, 4  ;;  %v2156_v12 = vor.u32 %v2155_v41, %v2152_v3  ;;  %v413_v34 = vshrl.u32 %v235_v43, 16  ;;  %577 = vst.msk [vmem:[#allocation3 + $0x60] sm:$0xff] %vm572_vm13, %v6842_v54  ;;  %v418_v50 = vshrl.u32 %v236_v42, 16  ;;  %v237_v55 = vld [vmem:[#allocation2 + $0xc0] sm:$0x8] }
  0xe0   :  { %v1852_v20 = vpop.permute.xlu0 %1851  ;;  %2255 = vst.msk [vmem:[#allocation3 + $0x70] sm:$0xff] %vm7915_vm12, %v5701_v44  ;;  %v5597_v48 = vrot.slane %v400_v19, 11  ;;  %v407_v49 = vrot.slane %v405_v52, 7  ;;  %v421_v51 = vshll.u32 %v236_v42, 16  ;;  %1265 = vst.msk [vmem:[#allocation3 + $0xb0] sm:$0xff] %vm7915_vm12, %v6188_v47  ;;  %v426_v63 = vshrl.u32 %v237_v55, 16 }
  0xe1   :  { %1871 = vst.msk [vmem:[#allocation3 + $0x68] sm:$0xff] %vm888_vm14, %v1852_v20  ;;  %v2148_v57 = vsel %vm6408_vm11, %v2143_v46, %v2147_v37  ;;  %v2157_v58 = vrot.slane %v2156_v12, 4  ;;  %v5598_v59 = vrot.slane %v413_v34, 11  ;;  %v238_v5 = vld [vmem:[#allocation2 + $0xc4] sm:$0xf]  ;;  %v420_v61 = vrot.slane %v418_v50, 7 }
  0xe2   :  { %v873_v32 = vpop.permute.xlu1 %872  ;;  %v239_v60 = vld [vmem:[#allocation2 + $0xcc] sm:$0x8]  ;;  %v410_v54 = vor.u32 %v408_v24, %v407_v49  ;;  %v240_v62 = vld [vmem:[#allocation2 + $0xd0] sm:$0xf]  ;;  %v431_v0 = vshrl.u32 %v238_v5, 16  ;;  %v434_v2 = vshll.u32 %v238_v5, 16 }
  0xe3   :  { %893 = vst.msk [vmem:[#allocation3 + $0x60] sm:$0xff] %vm888_vm14, %v873_v32  ;;  %v2162_v1 = vsel %vm6408_vm11, %v2157_v58, %v2161_v45  ;;  %v439_v4 = vshrl.u32 %v239_v60, 16  ;;  %v444_v6 = vshrl.u32 %v240_v62, 16  ;;  %v1987_v7 = vld [vmem:[#allocation2 + $0xc4] sm:$0xf]  ;;  %v423_v11 = vor.u32 %v421_v51, %v420_v61 }
  0xe4   :  { %v1940_v14 = vpop.permute.xlu0 %1939  ;;  %v5702_v8 = vcombine.low %v2148_v57, %v2162_v1  ;;  %v411_v10 = vsel %vm6376_vm8, %v5597_v48, %v410_v54  ;;  %v5599_v13 = vrot.slane %v426_v63, 11  ;;  %v1988_v16 = vld [vmem:[#allocation2 + $0xc8] sm:$0x1]  ;;  %v1989_v17 = vld [vmem:[#allocation2 + $0xd0] sm:$0xf]  ;;  %v433_v20 = vrot.slane %v431_v0, 7 }
  0xe5   :  { %1959 = vst.msk [vmem:[#allocation3 + $0x68] sm:$0xff] %vm1185_vm15, %v1940_v14  ;;  %v5600_v22 = vrot.slane %v439_v4, 11  ;;  %v446_v23 = vrot.slane %v444_v6, 7  ;;  %v447_v30 = vshll.u32 %v240_v62, 16  ;;  %v424_v26 = vsel %vm6376_vm8, %v5598_v59, %v423_v11  ;;  %v1990_v27 = vld [vmem:[#allocation2 + $0xd4] sm:$0x1] }
  0xe6   :  { %2256 = vst.msk [vmem:[#allocation3 + $0x88] sm:$0xff] %vm7915_vm12, %v5702_v8  ;;  %v2164_v28 = vshrl.u32 %v1987_v7, 16  ;;  %v2167_v29 = vshll.u32 %v1987_v7, 16  ;;  %v2173_v31 = vshll.u32 %v1988_v16, 16  ;;  %v5607_v32 = vcombine.low %v411_v10, %v424_v26  ;;  %v61_v36 = vld [vmem:[#allocation2 + $0xec] sm:$0x1] }
  0xe7   :  { %v2273_v9 = vld [vmem:[#allocation3 + $0x70] sm:$0xff]  ;;  %v436_v35 = vor.u32 %v434_v2, %v433_v20  ;;  %v449_v37 = vor.u32 %v447_v30, %v446_v23  ;;  %v2178_v3 = vshrl.u32 %v1989_v17, 16  ;;  %v1991_v43 = vld [vmem:[#allocation2 + $0xdc] sm:$0xf]  ;;  %v2181_v40 = vshll.u32 %v1989_v17, 16 }
  0xe8   :  { %v1170_v56 = vpop.permute.xlu1 %1169  ;;  %6082 = vmatprep.mubr.msk.bf16.mxu1 %vm7915_vm12, %v2273_v9  ;;  %v2166_v38 = vrot.slane %v2164_v28, 4  ;;  %v2169_v39 = vrot.slane %v2167_v29, 5  ;;  %v2175_v33 = vrot.slane %v2173_v31, 5  ;;  %v1992_v41 = vld [vmem:[#allocation2 + $0xe0] sm:$0x1]  ;;  %490 = vst.msk [vmem:[#allocation3 + $0x90] sm:$0xff] %vm7915_vm12, %v5607_v32 }
  0xe9   :  { %1190 = vst.msk [vmem:[#allocation3 + $0x60] sm:$0xff] %vm1185_vm15, %v1170_v56  ;;  %v1993_v42 = vld [vmem:[#allocation2 + $0xe8] sm:$0xf]  ;;  %v437_v45 = vsel %vm6376_vm8, %v5599_v13, %v436_v35  ;;  %v450_v19 = vsel %vm6376_vm8, %v5600_v22, %v449_v37  ;;  %v2180_v52 = vrot.slane %v2178_v3, 4  ;;  %v2187_v46 = vshll.u32 %v1990_v27, 16 }
  0xea   :  { %v5608_v12 = vcombine.low %v437_v45, %v450_v19  ;;  %v2170_v24 = vor.u32 %v2169_v39, %v2166_v38  ;;  %v2183_v34 = vrot.slane %v2181_v40, 5  ;;  %v62_v47 = vsel %vm6349_vm6, 0, %v61_v36 }
  0xeb   :  { %v2189_v48 = vrot.slane %v2187_v46, 5  ;;  %63 = vst [vmem:[#allocation2 + $0xec] sm:$0x1] %v62_v47  ;;  %v2192_v49 = vshrl.u32 %v1991_v43, 16  ;;  %v2195_v50 = vshll.u32 %v1991_v43, 16  ;;  %v2206_v56 = vshrl.u32 %v1993_v42, 16 }
  0xec   :  { %v559_v18 = vpop.permute.xlu1 %558  ;;  %v2272_v25 = vld [vmem:[#allocation3 + $0x68] sm:$0xff]  ;;  %491 = vst.msk [vmem:[#allocation3 + $0xa8] sm:$0xff] %vm7915_vm12, %v5608_v12  ;;  %v2171_v51 = vrot.slane %v2170_v24, 4  ;;  %v2184_v55 = vor.u32 %v2183_v34, %v2180_v52  ;;  %v2209_v57 = vshll.u32 %v1993_v42, 16  ;;  %v2201_v54 = vshll.u32 %v1992_v41, 16 }
  0xed   :  { %578 = vst.msk [vmem:[#allocation3 + $0x78] sm:$0xff] %vm572_vm13, %v559_v18  ;;  %2522 = vmatprep.mubr.bf16.mxu0 %v2272_v25  ;;  %v2276_v59 = vld [vmem:[#allocation3 + $0x88] sm:$0xff]  ;;  %v2194_v5 = vrot.slane %v2192_v49, 4  ;;  %v2197_v60 = vrot.slane %v2195_v50, 5  ;;  %v2208_v63 = vrot.slane %v2206_v56, 4 }
  0xee   :  { %6083 = vmatmul.mubr.msk.bf16.gmra.mrb[8].mxu1 %vm7915_vm12, %v2276_v59  ;;  %v2176_v21 = vsel %vm6408_vm11, %v2171_v51, %v2175_v33  ;;  %v2185_v62 = vrot.slane %v2184_v55, 4  ;;  %v2211_v0 = vrot.slane %v2209_v57, 5  ;;  %v2203_v10 = vrot.slane %v2201_v54, 5 }
  0xef   :  { %v2198_v1 = vor.u32 %v2197_v60, %v2194_v5 }
  0xf0   :  { %v1557_v14 = vpop.permute.xlu0 %1556  ;;  %v2271_v44 = vld [vmem:[#allocation3 + $0x60] sm:$0xff]  ;;  %v2190_v2 = vsel %vm6408_vm11, %v2185_v62, %v2189_v48  ;;  %v2212_v4 = vor.u32 %v2211_v0, %v2208_v63 }
  0xf1   :  { %1575 = vst.msk [vmem:[#allocation3 + $0x80] sm:$0xff] %vm572_vm13, %v1557_v14  ;;  %2523 = vmatmul.mubr.bf16.gmra.mrb[16].mxu0 %v2271_v44  ;;  %v5703_v7 = vcombine.low %v2176_v21, %v2190_v2  ;;  %v2199_v8 = vrot.slane %v2198_v1, 4 }
  0xf2   :  { %v1994_v11 = vld [vmem:[#allocation2 + $0xec] sm:$0x1]  ;;  %v2213_v16 = vrot.slane %v2212_v4, 4 }
  0xf3   :  { %2257 = vst.msk [vmem:[#allocation3 + $0xa0] sm:$0xff] %vm7915_vm12, %v5703_v7  ;;  %v2215_v17 = vshll.u32 %v1994_v11, 16  ;;  %v2204_v18 = vsel %vm6408_vm11, %v2199_v8, %v2203_v10 }
  0xf4   :  { %v1854_v58 = vpop.permute.xlu0 %1853 }
  0xf5   :  { %1872 = vst.msk [vmem:[#allocation3 + $0x80] sm:$0xff] %vm888_vm14, %v1854_v58  ;;  %v875_v61 = vpop.permute.xlu1 %874  ;;  %v2217_v20 = vrot.slane %v2215_v17, 5 }
  0xf6   :  { %894 = vst.msk [vmem:[#allocation3 + $0x78] sm:$0xff] %vm888_vm14, %v875_v61 }
  0xf7   :  { %v2218_v23 = vsel %vm6408_vm11, %v2213_v16, %v2217_v20 }
  0xf8   :  { %v1942_v6 = vpop.permute.xlu0 %1941  ;;  %v5704_v30 = vcombine.low %v2204_v18, %v2218_v23 }
  0xf9   :  { %1960 = vst.msk [vmem:[#allocation3 + $0x80] sm:$0xff] %vm1185_vm15, %v1942_v6 }
  0xfa   :  { %v1172_v13 = vpop.permute.xlu1 %1171  ;;  %v2279_v26 = vld [vmem:[#allocation3 + $0xa0] sm:$0xff]  ;;  %2258 = vst.msk [vmem:[#allocation3 + $0xb8] sm:$0xff] %vm7915_vm12, %v5704_v30 }
  0xfb   :  { %1191 = vst.msk [vmem:[#allocation3 + $0x78] sm:$0xff] %vm1185_vm15, %v1172_v13  ;;  %6086 = vmatprep.mubr.msk.bf16.mxu1 %vm7915_vm12, %v2279_v26 }
  0xfe   :  { %v561_v22 = vpop.permute.xlu1 %560 }
  0xff   :  { %579 = vst.msk [vmem:[#allocation3 + $0x90] sm:$0xff] %vm572_vm13, %v561_v22 }
 0x100   :  { %v2275_v25 = vld [vmem:[#allocation3 + $0x80] sm:$0xff] }
 0x101   :  { %2530 = vmatprep.mubr.bf16.mxu0 %v2275_v25 }
 0x102   :  { %v2274_v28 = vld [vmem:[#allocation3 + $0x78] sm:$0xff] }
 0x103   :  { %v1559_v27 = vpop.permute.xlu0 %1558  ;;  %2531 = vmatmul.mubr.bf16.gmra.mrb[20].mxu0 %v2274_v28 }
 0x104   :  { %1576 = vst.msk [vmem:[#allocation3 + $0x98] sm:$0xff] %vm572_vm13, %v1559_v27 }
 0x105   :  { %12 = vsyncpa [#allocation5], 0  ;;  %v2282_v9 = vld [vmem:[#allocation3 + $0xb8] sm:$0xff]  ;;  %v6194_v14 = vld [vmem:[%s7906_s3 + $0x80] sm:$0xff]  }
 0x106   :  { %6087 = vmatmul.mubr.msk.bf16.gmra.mrb[12].mxu1 %vm7915_vm12, %v2282_v9  ;;  %6090 = vmatprep.subr.bf16.mxu0 %v6194_v14  ;;  %v6195_v44 = vld [vmem:[%s7906_s3 + $0x88] sm:$0xff]   ;;  %v3148_v45 = vld [vmem:[#allocation2 + $0x4] sm:$0xf]  ;;  %v3829_v46 = vld [vmem:[#allocation2 + $0x14] sm:$0x1] }
 0x107   :  { %v1856_v29 = vpop.permute.xlu0 %1855  ;;  %6091 = vmatpush3.bf16.msra.mxu0 %v6194_v14  ;;  %v3181_v19 = vshrl.u32 %v3148_v45, 16  ;;  %v3184_v52 = vshll.u32 %v3148_v45, 16  ;;  %v3831_v12 = vld [vmem:[#allocation2 + $0x20] sm:$0x1]  ;;  %v3460_v24 = vld [vmem:[#allocation2 + $0xc] sm:$0x8] }
 0x108   :  { %1873 = vst.msk [vmem:[#allocation3 + $0x98] sm:$0xff] %vm888_vm14, %v1856_v29  ;;  %v877_v31 = vpop.permute.xlu1 %876  ;;  %6092 = vmatprep.subr.bf16.mxu0 %v6195_v44  ;;  %v3149_v34 = vld [vmem:[#allocation2 + $0x8] sm:$0x1]  ;;  %v3151_v47 = vld [vmem:[#allocation2 + $0x14] sm:$0x1]  ;;  %v3870_v50 = vshll.u32 %v3829_v46, 16 }
 0x109   :  { %895 = vst.msk [vmem:[#allocation3 + $0x90] sm:$0xff] %vm888_vm14, %v877_v31  ;;  %v3183_v48 = vrot.slane %v3181_v19, 4  ;;  %v3186_v49 = vrot.slane %v3184_v52, 5  ;;  %v3884_v51 = vshll.u32 %v3831_v12, 16  ;;  %v3190_v55 = vshll.u32 %v3149_v34, 16 }
 0x10a   :  { %v3204_v56 = vshll.u32 %v3151_v47, 16  ;;  %v4140_v57 = vld [vmem:[#allocation2 + $0x18] sm:$0x8]  ;;  %v3493_v58 = vshrl.u32 %v3460_v24, 16  ;;  %v4142_v5 = vld [vmem:[#allocation2 + $0x24] sm:$0x8] }
 0x10b   :  { %v1944_v32 = vpop.permute.xlu0 %1943  ;;  %6093 = vmatpush3.bf16.msra.mxu0 %v6195_v44  ;;  %v3187_v59 = vor.u32 %v3186_v49, %v3183_v48  ;;  %v3462_v60 = vld [vmem:[#allocation2 + $0x18] sm:$0x8]  ;;  %v3833_v54 = vld [vmem:[#allocation2 + $0x2c] sm:$0x1]  ;;  %v3153_v61 = vld [vmem:[#allocation2 + $0x20] sm:$0x1] }
 0x10c   :  { %1961 = vst.msk [vmem:[#allocation3 + $0x98] sm:$0xff] %vm1185_vm15, %v1944_v32  ;;  %v6929_v21 = vrot.slane %v3870_v50, 5  ;;  %v6931_v62 = vrot.slane %v3884_v51, 5  ;;  %v4173_v63 = vshrl.u32 %v4140_v57, 16  ;;  %v4186_v0 = vshrl.u32 %v4142_v5, 16 }
 0x10d   :  { %v1174_v35 = vpop.permute.xlu1 %1173  ;;  %v6933_v1 = vrot.slane %v3493_v58, 11  ;;  %v3506_v2 = vshrl.u32 %v3462_v60, 16  ;;  %v3898_v4 = vshll.u32 %v3833_v54, 16  ;;  %v6935_v6 = vrot.slane %v3187_v59, 4  ;;  %v3155_v10 = vld [vmem:[#allocation2 + $0x2c] sm:$0x1] }
 0x10e   :  { %1192 = vst.msk [vmem:[#allocation3 + $0x90] sm:$0xff] %vm1185_vm15, %v1174_v35  ;;  %v6937_v7 = vrot.slane %v3190_v55, 5  ;;  %v6939_v8 = vrot.slane %v3204_v56, 5  ;;  %v3218_v11 = vshll.u32 %v3153_v61, 16  ;;  %v3835_v13 = vld [vmem:[#allocation2 + $0x38] sm:$0x1] }
 0x10f   :  { %v4525_v16 = vld [vmem:[#allocation2 + $0x20] sm:$0x1]  ;;  %v4527_v17 = vld [vmem:[#allocation2 + $0x2c] sm:$0x1]  ;;  %v4144_v18 = vld [vmem:[#allocation2 + $0x30] sm:$0x8] }
 0x110   :  { %v3464_v20 = vld [vmem:[#allocation2 + $0x24] sm:$0x8]  ;;  %v3466_v22 = vld [vmem:[#allocation2 + $0x30] sm:$0x8]  ;;  %v6941_v23 = vrot.slane %v4173_v63, 11  ;;  %v6943_v30 = vrot.slane %v4186_v0, 11 }
 0x111   :  { %v563_v37 = vpop.permute.xlu1 %562  ;;  %v6945_v25 = vrot.slane %v3506_v2, 11  ;;  %v6947_v26 = vrot.slane %v3898_v4, 5  ;;  %v3912_v27 = vshll.u32 %v3835_v13, 16  ;;  %v6949_v28 = vrot.slane %v3218_v11, 5  ;;  %v4538_v34 = vld [vmem:[#allocation2 + $0x70] sm:$0xf] }
 0x112   :  { %580 = vst.msk [vmem:[#allocation3 + $0xa8] sm:$0xff] %vm572_vm13, %v563_v37  ;;  %v3232_v29 = vshll.u32 %v3155_v10, 16  ;;  %v4566_v31 = vshll.u32 %v4525_v16, 16  ;;  %v4580_v9 = vshll.u32 %v4527_v17, 16  ;;  %v4199_v32 = vshrl.u32 %v4144_v18, 16 }
 0x113   :  { %v2278_v3 = vld [vmem:[#allocation3 + $0x98] sm:$0xff]  ;;  %v3519_v35 = vshrl.u32 %v3464_v20, 16  ;;  %v3532_v37 = vshrl.u32 %v3466_v22, 16  ;;  %v6951_v14 = vrot.slane %v3912_v27, 5  ;;  %v4655_v60 = vshrl.u32 %v4538_v34, 16 }
 0x114   :  { %2538 = vmatprep.mubr.bf16.mxu0 %v2278_v3  ;;  %v4146_v3 = vld [vmem:[#allocation2 + $0x3c] sm:$0x8]  ;;  %v6953_v44 = vrot.slane %v4566_v31, 5  ;;  %v6955_v47 = vrot.slane %v3232_v29, 5  ;;  %v6957_v51 = vrot.slane %v4580_v9, 5  ;;  %v6959_v55 = vrot.slane %v4199_v32, 11 }
 0x115   :  { %v2277_v36 = vld [vmem:[#allocation3 + $0x90] sm:$0xff]  ;;  %v1561_v43 = vpop.permute.xlu0 %1560  ;;  %v4212_v45 = vshrl.u32 %v4146_v3, 16  ;;  %v6961_v56 = vrot.slane %v3519_v35, 11  ;;  %v6963_v57 = vrot.slane %v3532_v37, 11  ;;  %v4148_v58 = vld [vmem:[#allocation2 + $0x48] sm:$0x8] }
 0x116   :  { %2539 = vmatmul.mubr.bf16.gmra.mrb[24].mxu0 %v2277_v36  ;;  %1577 = vst.msk [vmem:[#allocation3 + $0xb0] sm:$0xff] %vm572_vm13, %v1561_v43  ;;  %v4529_v36 = vld [vmem:[#allocation2 + $0x38] sm:$0x1]  ;;  %v4658_v54 = vshll.u32 %v4538_v34, 16  ;;  %v4533_v4 = vld [vmem:[#allocation2 + $0x50] sm:$0x1] }
 0x117   :  { %v3157_v43 = vld [vmem:[#allocation2 + $0x38] sm:$0x1]  ;;  %v4594_v19 = vshll.u32 %v4529_v36, 16  ;;  %v6965_v59 = vrot.slane %v4212_v45, 11  ;;  %v4535_v16 = vld [vmem:[#allocation2 + $0x5c] sm:$0x1] }
 0x118   :  { %v3246_v46 = vshll.u32 %v3157_v43, 16  ;;  %v4225_v17 = vshrl.u32 %v4148_v58, 16  ;;  %v4150_v18 = vld [vmem:[#allocation2 + $0x54] sm:$0x8]  ;;  %v6983_v20 = vld [vmem:[#allocation2 + $0x70] sm:$0xf] }
 0x119   :  { %v1858_v38 = vpop.permute.xlu0 %1857  ;;  %v6967_v5 = vrot.slane %v4594_v19, 5  ;;  %v6985_v22 = vld [vmem:[#allocation2 + $0x4] sm:$0xf]  ;;  %v4657_v27 = vrot.slane %v4655_v60, 4  ;;  %v4660_v29 = vrot.slane %v4658_v54, 5  ;;  %v4622_v32 = vshll.u32 %v4533_v4, 16 }
 0x11a   :  { %1874 = vst.msk [vmem:[#allocation3 + $0xb0] sm:$0xff] %vm888_vm14, %v1858_v38  ;;  %v4531_v38 = vld [vmem:[#allocation2 + $0x44] sm:$0x1]  ;;  %v6971_v63 = vrot.slane %v3246_v46, 5  ;;  %v4152_v31 = vld [vmem:[#allocation2 + $0x60] sm:$0x8] }
 0x11b   :  { %v879_v39 = vpop.permute.xlu1 %878  ;;  %v4608_v52 = vshll.u32 %v4531_v38, 16  ;;  %v4154_v9 = vld [vmem:[#allocation2 + $0x6c] sm:$0x8]  ;;  %v4636_v35 = vshll.u32 %v4535_v16, 16  ;;  %v4537_v37 = vld [vmem:[#allocation2 + $0x68] sm:$0x1] }
 0x11c   :  { %896 = vst.msk [vmem:[#allocation3 + $0xa8] sm:$0xff] %vm888_vm14, %v879_v39  ;;  %v3159_v39 = vld [vmem:[#allocation2 + $0x44] sm:$0x1]  ;;  %7925 = vst [vmem:[#allocation8_spill] sm:$0xff] %v6971_v63  ;;  %v4539_v3 = vld [vmem:[#allocation2 + $0x74] sm:$0x1] }
 0x11d   :  { %v1946_v33 = vpop.permute.xlu0 %1945  ;;  %v3260_v12 = vshll.u32 %v3159_v39, 16  ;;  %v6969_v61 = vrot.slane %v4608_v52, 5  ;;  %v6987_v43 = vrot.slane %v4225_v17, 11  ;;  %v4238_v38 = vshrl.u32 %v4150_v18, 16  ;;  %v3161_v39 = vld [vmem:[#allocation2 + $0x50] sm:$0x1] }
 0x11e   :  { %1962 = vst.msk [vmem:[#allocation3 + $0xb0] sm:$0xff] %vm1185_vm15, %v1946_v33  ;;  %v3468_v33 = vld [vmem:[#allocation2 + $0x3c] sm:$0x8]  ;;  %v4269_v45 = vshrl.u32 %v6983_v20, 16  ;;  %v2780_v19 = vld [vmem:[#allocation2] sm:$0x8] }
 0x11f   :  { %v3545_v24 = vshrl.u32 %v3468_v33, 16  ;;  %7924 = vst [vmem:[#allocation7_spill] sm:$0xff] %v6969_v61  ;;  %v6973_v0 = vrot.slane %v3260_v12, 5  ;;  %7931 = vst [vmem:[#allocation14_spill] sm:$0xff] %v6987_v43  ;;  %v2818_v33 = vshrl.u32 %v6985_v22, 16  ;;  %v4650_v12 = vshll.u32 %v4537_v37, 16 }
 0x120   :  { %v1176_v40 = vpop.permute.xlu1 %1175  ;;  %v4664_v34 = vshll.u32 %v4539_v3, 16  ;;  %v3163_v58 = vld [vmem:[#allocation2 + $0x5c] sm:$0x1]  ;;  %v3274_v60 = vshll.u32 %v3161_v39, 16  ;;  %v6999_v4 = vrot.slane %v4238_v38, 11  ;;  %v2813_v18 = vshrl.u32 %v2780_v19, 16 }
 0x121   :  { %1193 = vst.msk [vmem:[#allocation3 + $0xa8] sm:$0xff] %vm1185_vm15, %v1176_v40  ;;  %v3837_v40 = vld [vmem:[#allocation2 + $0x44] sm:$0x1]  ;;  %7926 = vst [vmem:[#allocation9_spill] sm:$0xff] %v6973_v0  ;;  %v6975_v2 = vrot.slane %v3545_v24, 11  ;;  %v4661_v24 = vor.u32 %v4660_v29, %v4657_v27  ;;  %v7005_v27 = vrot.slane %v4269_v45, 7 }
 0x122   :  { %v3926_v48 = vshll.u32 %v3837_v40, 16  ;;  %7934 = vst [vmem:[#allocation17_spill] sm:$0xff] %v6999_v4  ;;  %v3164_v16 = vld [vmem:[#allocation2 + $0x7c] sm:$0xf]  ;;  %v2782_v17 = vld [vmem:[#allocation2 + $0xc] sm:$0x8] }
 0x123   :  { %7927 = vst [vmem:[#allocation10_spill] sm:$0xff] %v6975_v2  ;;  %v7010_v37 = vrot.slane %v4661_v24, 4  ;;  %v7012_v3 = vrot.slane %v4664_v34, 5  ;;  %v7014_v38 = vrot.slane %v2818_v33, 7  ;;  %v7016_v39 = vrot.slane %v3274_v60, 5 }
 0x124   :  { %v6977_v10 = vrot.slane %v3926_v48, 5  ;;  %v2826_v19 = vshrl.u32 %v2782_v17, 16  ;;  %v7018_v29 = vrot.slane %v2813_v18, 11  ;;  %v3474_v34 = vld [vmem:[#allocation2 + $0x60] sm:$0x8] }
 0x125   :  { %v2281_v41 = vld [vmem:[#allocation3 + $0xb0] sm:$0xff]  ;;  %7937 = vst [vmem:[#allocation20_spill] sm:$0xff] %v7016_v39  ;;  %v3847_v60 = vld [vmem:[#allocation2 + $0x98] sm:$0x1]  ;;  %v4156_v17 = vld [vmem:[#allocation2 + $0x90] sm:$0x8] }
 0x126   :  { %2546 = vmatprep.mubr.bf16.mxu0 %v2281_v41  ;;  %v3839_v41 = vld [vmem:[#allocation2 + $0x50] sm:$0x1]  ;;  %7928 = vst [vmem:[#allocation11_spill] sm:$0xff] %v6977_v10  ;;  %7938 = vst [vmem:[#allocation21_spill] sm:$0xff] %v7018_v29  ;;  %v3476_v39 = vld [vmem:[#allocation2 + $0x84] sm:$0x8] }
 0x127   :  { %v3940_v49 = vshll.u32 %v3839_v41, 16  ;;  %v4251_v41 = vshrl.u32 %v4152_v31, 16  ;;  %v3584_v18 = vshrl.u32 %v3474_v34, 16  ;;  %v3165_v2 = vld [vmem:[#allocation2 + $0x80] sm:$0x1]  ;;  %v3597_v0 = vshrl.u32 %v3476_v39, 16 }
 0x128   :  { %v2280_v42 = vld [vmem:[#allocation3 + $0xa8] sm:$0xff] }
 0x129   :  { %2547 = vmatmul.mubr.bf16.gmra.mrb[28].mxu0 %v2280_v42  ;;  %v3470_v42 = vld [vmem:[#allocation2 + $0x48] sm:$0x8]  ;;  %v6979_v11 = vrot.slane %v3940_v49, 5  ;;  %v6993_v49 = vrot.slane %v4622_v32, 5  ;;  %v7001_v31 = vrot.slane %v4251_v41, 11  ;;  %v3293_v41 = vshrl.u32 %v3164_v16, 16 }
 0x12a   :  { %v3558_v50 = vshrl.u32 %v3470_v42, 16  ;;  %v4264_v42 = vshrl.u32 %v4154_v9, 16  ;;  %v3472_v32 = vld [vmem:[#allocation2 + $0x54] sm:$0x8]  ;;  %v4158_v10 = vld [vmem:[#allocation2 + $0x9c] sm:$0x8] }
 0x12b   :  { %7929 = vst [vmem:[#allocation12_spill] sm:$0xff] %v6979_v11  ;;  %7932 = vst [vmem:[#allocation15_spill] sm:$0xff] %v6993_v49  ;;  %v3295_v49 = vrot.slane %v3293_v41, 4  ;;  %v3996_v11 = vshll.u32 %v3847_v60, 16  ;;  %v7037_v60 = vrot.slane %v3584_v18, 11  ;;  %v4290_v63 = vshrl.u32 %v4158_v10, 16 }
 0x12c   :  { %v6981_v13 = vrot.slane %v3558_v50, 11  ;;  %v6995_v50 = vrot.slane %v4636_v35, 5  ;;  %7935 = vst [vmem:[#allocation18_spill] sm:$0xff] %v7001_v31  ;;  %v7003_v9 = vrot.slane %v4264_v42, 11  ;;  %v7008_v35 = vrot.slane %v4650_v12, 5 }
 0x12d   :  { %v3296_v42 = vshll.u32 %v3164_v16, 16  ;;  %v3478_v12 = vld [vmem:[#allocation2 + $0x90] sm:$0x8]  ;;  %7944 = vst [vmem:[#allocation27_spill] sm:$0xff] %v7037_v60  ;;  %v7054_v10 = vld [vmem:[#allocation2 + $0x98] sm:$0x1] }
 0x12e   :  { %7930 = vst [vmem:[#allocation13_spill] sm:$0xff] %v6981_v13  ;;  %7933 = vst [vmem:[#allocation16_spill] sm:$0xff] %v6995_v50  ;;  %v7021_v13 = vrot.slane %v2826_v19, 11  ;;  %v3610_v34 = vshrl.u32 %v3478_v12, 16 }
 0x12f   :  { %7936 = vst [vmem:[#allocation19_spill] sm:$0xff] %v7008_v35  ;;  %v3845_v35 = vld [vmem:[#allocation2 + $0x8c] sm:$0x1]  ;;  %v3298_v16 = vrot.slane %v3296_v42, 5 }
 0x130   :  { %7939 = vst [vmem:[#allocation22_spill] sm:$0xff] %v7021_v13 }
 0x195   :  { %v5931_v36 = vpop.f32.mrb[0].mxu0 }
 0x196   :  { %v5932_v40 = vpop.f32.mrb[1].mxu0 }
 0x197   :  { %v6991_v52 = vadd.f32 %v5932_v40, %v5931_v36  ;;  %v5934_v46 = vpop.f32.mrb[2].mxu0  ;;  %v3841_v36 = vld [vmem:[#allocation2 + $0x5c] sm:$0x1]  ;;  %v3843_v40 = vld [vmem:[#allocation2 + $0x68] sm:$0x1] }
 0x198   :  { %v5935_v48 = vpop.f32.mrb[3].mxu0  ;;  %v3954_v31 = vshll.u32 %v3841_v36, 16  ;;  %v3968_v43 = vshll.u32 %v3843_v40, 16  ;;  %v3167_v36 = vld [vmem:[#allocation2 + $0x8c] sm:$0x1] }
 0x199   :  { %v6997_v54 = vadd.f32 %v5935_v48, %v5934_v46  ;;  %v3288_v46 = vshll.u32 %v3163_v58, 16  ;;  %v3571_v48 = vshrl.u32 %v3472_v32, 16  ;;  %v3982_v32 = vshll.u32 %v3845_v35, 16  ;;  %v7026_v40 = vld [vmem:[%s7905_s2] ss:$0 sm:$0xff] }
 0x19a   :  { %v7030_v41 = vrot.slane %v3954_v31, 5  ;;  %v7034_v19 = vrot.slane %v3968_v43, 5  ;;  %v3299_v35 = vor.u32 %v3298_v16, %v3295_v49  ;;  %v3316_v13 = vshll.u32 %v3167_v36, 16  ;;  %v4541_v49 = vld [vmem:[#allocation2 + $0x98] sm:$0x1] }
 0x19b   :  { %v7032_v42 = vrot.slane %v3571_v48, 11  ;;  %v7043_v48 = vrot.slane %v3996_v11, 5  ;;  %v7045_v43 = vrot.slane %v3597_v0, 11  ;;  %v2496_v18 = vadd.f32 %v6997_v54, %v7026_v40 }
 0x19c   :  { %7941 = vst [vmem:[#allocation24_spill] sm:$0xff] %v7030_v41  ;;  %7943 = vst [vmem:[#allocation26_spill] sm:$0xff] %v7034_v19  ;;  %v7041_v41 = vrot.slane %v3982_v32, 5  ;;  %v7058_v32 = vrot.slane %v3299_v35, 4  ;;  %v7062_v36 = vrot.slane %v3610_v34, 11  ;;  %v4678_v60 = vshll.u32 %v4541_v49, 16 }
 0x19d   :  { %v5937_v45 = vpop.f32.mrb[4].mxu0  ;;  %7942 = vst [vmem:[#allocation25_spill] sm:$0xff] %v7032_v42  ;;  %7946 = vst [vmem:[#allocation29_spill] sm:$0xff] %v7043_v48  ;;  %v3851_v35 = vld [vmem:[#allocation2 + $0xb0] sm:$0x1] }
 0x19e   :  { %v5938_v24 = vpop.f32.mrb[5].mxu0  ;;  %7945 = vst [vmem:[#allocation28_spill] sm:$0xff] %v7041_v41  ;;  %7947 = vst [vmem:[#allocation30_spill] sm:$0xff] %v7045_v43  ;;  %v7068_v43 = vrot.slane %v4290_v63, 11  ;;  %v4024_v49 = vshll.u32 %v3851_v35, 16 }
 0x19f   :  { %v5939_v4 = vadd.f32 %v5938_v24, %v5937_v45  ;;  %v5940_v33 = vpop.f32.mrb[6].mxu0  ;;  %v7028_v45 = vrot.slane %v3288_v46, 5  ;;  %v3302_v24 = vshll.u32 %v3165_v2, 16  ;;  %v2493_v46 = vadd.f32 %v6991_v52, %v7026_v40  ;;  %7949 = vst [vmem:[#allocation32_spill] sm:$0xff] %v7062_v36  ;;  %v4545_v42 = vld [vmem:[#allocation2 + $0xb0] sm:$0x1] }
 0x1a0   :  { %v5941_v50 = vpop.f32.mrb[7].mxu0  ;;  %v6076_v52 = vpop.f32.mrb[0].mxu1  ;;  %7951 = vst [vmem:[#allocation34_spill] sm:$0xff] %v7068_v43 }
 0x1a1   :  { %v5942_v58 = vadd.f32 %v5941_v50, %v5940_v33  ;;  %7940 = vst [vmem:[#allocation23_spill] sm:$0xff] %v7028_v45  ;;  %v4277_v50 = vshrl.u32 %v4156_v17, 16  ;;  %v2501_v33 = vadd.f32 %v5939_v4, %v7026_v40  ;;  %v7052_v17 = vld [vmem:[#allocation2 + $0xa4] sm:$0x1]  ;;  %v7060_v0 = vrot.slane %v3302_v24, 5 }
 0x1a2   :  { %v4692_v54 = vshll.u32 %v7052_v17, 16  ;;  %v3330_v24 = vshll.u32 %v7054_v10, 16 }
 0x1a3   :  { %v2504_v2 = vadd.f32 %v5942_v58, %v7026_v40  ;;  %v7050_v16 = vrot.slane %v4277_v50, 11  ;;  %v2589_v58 = vpop.f32.mrb[1].mxu1  ;;  %v7066_v50 = vrot.slane %v3316_v13, 5 }
 0x1a4   :  { %v2590_v48 = vadd.f32 %v2589_v58, %v2493_v46  ;;  %v6077_v41 = vpop.f32.mrb[2].mxu1  ;;  %v3482_v58 = vld [vmem:[#allocation2 + $0xa8] sm:$0x8] }
 0x1a5   :  { %v5943_v39 = vpop.f32.mrb[8].mxu0  ;;  %7948 = vst [vmem:[#allocation31_spill] sm:$0xff] %v7050_v16  ;;  %7950 = vst [vmem:[#allocation33_spill] sm:$0xff] %v7066_v50  ;;  %v3849_v16 = vld [vmem:[#allocation2 + $0xa4] sm:$0x1]  ;;  %v2592_v19 = vpop.f32.mrb[3].mxu1  ;;  %v2601_v36 = vadd.f32 %v6077_v41, %v2504_v2 }
 0x1a6   :  { %v5944_v31 = vpop.f32.mrb[9].mxu0  ;;  %vm2652_vm2 = vcmp.gt.f32.partialorder %v2590_v48, 0.0  ;;  %v2668_v13 = vmul.f32 0.01, %v2590_v48  ;;  %v4010_v63 = vshll.u32 %v3849_v16, 16  ;;  %v7952_v41 = vshll.u32 %v6983_v20, 16 }
 0x1a7   :  { %v7048_v12 = vadd.f32 %v5944_v31, %v5943_v39  ;;  %v5946_v4 = vpop.f32.mrb[10].mxu0  ;;  %v2598_v39 = vadd.f32 %v6076_v52, %v2501_v33  ;;  %v3171_v33 = vld [vmem:[#allocation2 + $0xa4] sm:$0x1]  ;;  %v2593_v52 = vadd.f32 %v2592_v19, %v2496_v18  ;;  %vm2655_vm3 = vcmp.gt.f32.partialorder %v2601_v36, 0.0  ;;  %v4162_v19 = vld [vmem:[#allocation2 + $0xb4] sm:$0x8] }
 0x1a8   :  { %v5947_v11 = vpop.f32.mrb[11].mxu0  ;;  %v2671_v46 = vmul.f32 0.01, %v2601_v36  ;;  %v2684_v17 = vsel %vm2652_vm2, %v2590_v48, %v2668_v13  ;;  %v7075_v2 = vor.u32 %v7952_v41, %v7005_v27  ;;  %v4547_v16 = vld [vmem:[#allocation2 + $0xbc] sm:$0x1]  ;;  %v7084_v27 = vrot.slane %v4678_v60, 5 }
 0x1a9   :  { %v7064_v31 = vadd.f32 %v5947_v11, %v5946_v4  ;;  %vm2654_vm1 = vcmp.gt.f32.partialorder %v2598_v39, 0.0  ;;  %v2670_v34 = vmul.f32 0.01, %v2598_v39  ;;  %v3480_v4 = vld [vmem:[#allocation2 + $0x9c] sm:$0x8]  ;;  %vm2653_vm4 = vcmp.gt.f32.partialorder %v2593_v52, 0.0 }
 0x1aa   :  { %v4160_v11 = vld [vmem:[#allocation2 + $0xa8] sm:$0x8]  ;;  %v2669_v50 = vmul.f32 0.01, %v2593_v52  ;;  %v5899_v45 = vpack.c.bf16 %v2684_v17, %v2684_v17  ;;  %v2687_v61 = vsel %vm2655_vm3, %v2601_v36, %v2671_v46  ;;  %v3173_v18 = vld [vmem:[#allocation2 + $0xb0] sm:$0x1]  ;;  %v2509_v60 = vadd.f32 %v7048_v12, %v7026_v40 }
 0x1ab   :  { %v2686_v43 = vsel %vm2654_vm1, %v2598_v39, %v2670_v34  ;;  %v7953_v39 = vshll.u32 %v6985_v22, 16  ;;  %v3344_v34 = vshll.u32 %v3171_v33, 16  ;;  %v3623_v13 = vshrl.u32 %v3480_v4, 16 }
 0x1ac   :  { %v5901_v10 = vpack.c.bf16 %v2686_v43, %v2686_v43  ;;  %v2685_v48 = vsel %vm2653_vm4, %v2593_v52, %v2669_v50  ;;  %v5902_v43 = vpack.c.bf16 %v2687_v61, %v2687_v61  ;;  %2764 = vst.msk [vmem:[#allocation2 + $0x10] sm:$0xf] %vm34_vm0, %v5899_v45  ;;  %v4303_v46 = vshrl.u32 %v4160_v11, 16 }
 0x1ad   :  { %v7080_v35 = vor.u32 %v7953_v39, %v7014_v38  ;;  %v5900_v36 = vpack.c.bf16 %v2685_v48, %v2685_v48  ;;  %v3636_v17 = vshrl.u32 %v3482_v58, 16  ;;  %v4316_v22 = vshrl.u32 %v4162_v19, 16 }
 0x1ae   :  { %2766 = vst.msk [vmem:[#allocation2 + $0x28] sm:$0xf] %vm34_vm0, %v5901_v10  ;;  %2767 = vst.msk [vmem:[#allocation2 + $0x34] sm:$0xf] %vm34_vm0, %v5902_v43  ;;  %v4706_v38 = vshll.u32 %v4545_v42, 16  ;;  %v4720_v39 = vshll.u32 %v4547_v16, 16 }
 0x1af   :  { %7954 = vst [vmem:[#allocation35_spill] sm:$0xff] %v7080_v35  ;;  %v3358_v50 = vshll.u32 %v3173_v18, 16  ;;  %2765 = vst.msk [vmem:[#allocation2 + $0x1c] sm:$0xf] %vm34_vm0, %v5900_v36  ;;  %v7088_v4 = vrot.slane %v4692_v54, 5  ;;  %v7090_v45 = vrot.slane %v4010_v63, 5 }
 0x1b0   :  { %v5949_v20 = vpop.f32.mrb[12].mxu0  ;;  %v7092_v52 = vrot.slane %v3330_v24, 5  ;;  %v7096_v58 = vrot.slane %v4024_v49, 5  ;;  %v7098_v10 = vrot.slane %v3344_v34, 5  ;;  %v7100_v42 = vrot.slane %v3623_v13, 11 }
 0x1b1   :  { %v5950_v41 = vpop.f32.mrb[13].mxu0  ;;  %v7103_v18 = vrot.slane %v4303_v46, 11  ;;  %v7105_v54 = vrot.slane %v3636_v17, 11  ;;  %v7107_v63 = vld [vmem:[#allocation2 + $0xbc] sm:$0x1]  ;;  %v7109_v24 = vrot.slane %v4316_v22, 11 }
 0x1b2   :  { %v5951_v61 = vadd.f32 %v5950_v41, %v5949_v20  ;;  %v5952_v33 = vpop.f32.mrb[14].mxu0  ;;  %7955 = vst [vmem:[#allocation36_spill] sm:$0xff] %v7100_v42  ;;  %7958 = vst [vmem:[#allocation39_spill] sm:$0xff] %v7107_v63  ;;  %v7111_v48 = vrot.slane %v4706_v38, 5  ;;  %v7113_v12 = vrot.slane %v4720_v39, 5  ;;  %v7117_v43 = vrot.slane %v3358_v50, 5 }
 0x1b3   :  { %v5953_v11 = vpop.f32.mrb[15].mxu0  ;;  %7956 = vst [vmem:[#allocation37_spill] sm:$0xff] %v7103_v18  ;;  %7957 = vst [vmem:[#allocation38_spill] sm:$0xff] %v7105_v54  ;;  %v7115_v49 = vld [vmem:[#allocation2 + $0xc8] sm:$0x1]  ;;  %v6080_v36 = vpop.f32.mrb[4].mxu1  ;;  %v2512_v20 = vadd.f32 %v7064_v31, %v7026_v40 }
 0x1b4   :  { %v2517_v19 = vadd.f32 %v5951_v61, %v7026_v40  ;;  %v5954_v16 = vadd.f32 %v5953_v11, %v5952_v33  ;;  %7959 = vst [vmem:[#allocation40_spill] sm:$0xff] %v7109_v24  ;;  %7960 = vst [vmem:[#allocation41_spill] sm:$0xff] %v7111_v48  ;;  %v6189_v46 = vld [vmem:[#allocation2 + $0x4] ss:$12 sps:$4 sm:$0xff]   ;;  %v2605_v38 = vpop.f32.mrb[5].mxu1 }
 0x1b5   :  { %7961 = vst [vmem:[#allocation42_spill] sm:$0xff] %v7113_v12  ;;  %7962 = vst [vmem:[#allocation43_spill] sm:$0xff] %v7115_v49  ;;  %v7120_v13 = vld [vmem:[#allocation2 + $0x28] sm:$0xf]  ;;  %v3828_v50 = vld [vmem:[#allocation2 + $0x10] sm:$0xf]  ;;  %v2606_v11 = vadd.f32 %v2605_v38, %v2509_v60  ;;  %3116 = vrot.lane.b32.xlu1 %v6189_v46, %s6264_s11 }
 0x1b6   :  { %7963 = vst [vmem:[#allocation44_spill] sm:$0xff] %v7117_v43  ;;  %v2520_v34 = vadd.f32 %v5954_v16, %v7026_v40  ;;  %v2614_v39 = vadd.f32 %v6080_v36, %v2517_v19  ;;  %v4191_v61 = vshrl.u32 %v7120_v13, 16  ;;  %v6081_v16 = vpop.f32.mrb[6].mxu1  ;;  %v6190_v17 = vld [vmem:[#allocation2 + $0x1c] ss:$12 sps:$4 sm:$0xff]   ;;  %v3861_v43 = vshrl.u32 %v3828_v50, 16 }
 0x1b7   :  { %v2608_v36 = vpop.f32.mrb[7].mxu1  ;;  %v3150_v60 = vld [vmem:[#allocation2 + $0x10] sm:$0xf]  ;;  %vm2656_vm6 = vcmp.gt.f32.partialorder %v2606_v11, 0.0  ;;  %v2672_v38 = vmul.f32 0.01, %v2606_v11  ;;  %4492 = vrot.lane.b32.xlu0 %v6190_v17, %s6265_s12 }
 0x1b8   :  { %vm2658_vm5 = vcmp.gt.f32.partialorder %v2614_v39, 0.0  ;;  %v2674_v41 = vmul.f32 0.01, %v2614_v39  ;;  %v2617_v33 = vadd.f32 %v6081_v16, %v2520_v34  ;;  %v2609_v31 = vadd.f32 %v2608_v36, %v2512_v20  ;;  %v6191_v22 = vld [vmem:[#allocation2 + $0x1c] ss:$12 sps:$4 sm:$0xff]  }
 0x1b9   :  { %v3863_v12 = vrot.slane %v3861_v43, 4  ;;  %v3830_v35 = vld [vmem:[#allocation2 + $0x1c] sm:$0xf]  ;;  %v3864_v29 = vshll.u32 %v3828_v50, 16  ;;  %v2688_v49 = vsel %vm2656_vm6, %v2606_v11, %v2672_v38  ;;  %3118 = vrot.lane.b32.xlu1 %v6191_v22, %s6264_s11  ;;  %v3461_v36 = vld [vmem:[#allocation2 + $0x10] sm:$0xf] }
 0x1ba   :  { %v2690_v48 = vsel %vm2658_vm5, %v2614_v39, %v2674_v41  ;;  %vm2659_vm7 = vcmp.gt.f32.partialorder %v2617_v33, 0.0  ;;  %v2675_v19 = vmul.f32 0.01, %v2617_v33  ;;  %vm2657_vm9 = vcmp.gt.f32.partialorder %v2609_v31, 0.0  ;;  %v4141_v20 = vld [vmem:[#allocation2 + $0x1c] sm:$0xf] }
 0x1bb   :  { %v2673_v34 = vmul.f32 0.01, %v2609_v31  ;;  %v5905_v16 = vpack.c.bf16 %v2690_v48, %v2690_v48  ;;  %v5903_v63 = vpack.c.bf16 %v2688_v49, %v2688_v49  ;;  %v3866_v54 = vrot.slane %v3864_v29, 5  ;;  %v3463_v24 = vld [vmem:[#allocation2 + $0x1c] sm:$0xf] }
 0x1bc   :  { %v2691_v46 = vsel %vm2659_vm7, %v2617_v33, %v2675_v19  ;;  %v3875_v42 = vshrl.u32 %v3830_v35, 16  ;;  %v3878_v41 = vshll.u32 %v3830_v35, 16  ;;  %v3195_v39 = vshrl.u32 %v3150_v60, 16 }
 0x1bd   :  { %v2689_v17 = vsel %vm2657_vm9, %v2609_v31, %v2673_v34  ;;  %2770 = vst.msk [vmem:[#allocation2 + $0x58] sm:$0xf] %vm34_vm0, %v5905_v16  ;;  %v5906_v43 = vpack.c.bf16 %v2691_v46, %v2691_v46  ;;  %2768 = vst.msk [vmem:[#allocation2 + $0x40] sm:$0xf] %vm34_vm0, %v5903_v63  ;;  %v3867_v11 = vor.u32 %v3866_v54, %v3863_v12  ;;  %v3198_v48 = vshll.u32 %v3150_v60, 16 }
 0x1be   :  { %v5904_v50 = vpack.c.bf16 %v2689_v17, %v2689_v17  ;;  %v3877_v38 = vrot.slane %v3875_v42, 4  ;;  %v3880_v49 = vrot.slane %v3878_v41, 5  ;;  %v3197_v29 = vrot.slane %v3195_v39, 4 }
 0x1bf   :  { %2771 = vst.msk [vmem:[#allocation2 + $0x64] sm:$0xf] %vm34_vm0, %v5906_v43  ;;  %v4178_v22 = vshrl.u32 %v4141_v20, 16  ;;  %v4181_v33 = vshll.u32 %v4141_v20, 16  ;;  %v3868_v31 = vrot.slane %v3867_v11, 4  ;;  %v3200_v19 = vrot.slane %v3198_v48, 5 }
 0x1c0   :  { %2769 = vst.msk [vmem:[#allocation2 + $0x4c] sm:$0xf] %vm34_vm0, %v5904_v50  ;;  %v4193_v46 = vrot.slane %v4191_v61, 7  ;;  %v3498_v35 = vshrl.u32 %v3461_v36, 16  ;;  %v3881_v34 = vor.u32 %v3880_v49, %v3877_v38  ;;  %v3501_v17 = vshll.u32 %v3461_v36, 16 }
 0x1c1   :  { %v4180_v63 = vrot.slane %v4178_v22, 7  ;;  %v3511_v54 = vshrl.u32 %v3463_v24, 16  ;;  %v3873_v42 = vsel %vm6408_vm11, %v3868_v31, %v6929_v21  ;;  %v3201_v12 = vor.u32 %v3200_v19, %v3197_v29  ;;  %v3832_v21 = vld [vmem:[#allocation2 + $0x28] sm:$0xf]  ;;  %v7169_v31 = vpop.f32.mrb[8].mxu1 }
 0x1c2   :  { %v7964_v60 = vshll.u32 %v7120_v13, 16  ;;  %v3500_v20 = vrot.slane %v3498_v35, 7  ;;  %v3882_v39 = vrot.slane %v3881_v34, 4  ;;  %v3514_v61 = vshll.u32 %v3463_v24, 16  ;;  %v3834_v19 = vld [vmem:[#allocation2 + $0x34] sm:$0xf] }
 0x1c3   :  { %v4183_v50 = vor.u32 %v4181_v33, %v4180_v63  ;;  %v3513_v11 = vrot.slane %v3511_v54, 7  ;;  %v3202_v38 = vrot.slane %v3201_v12, 4  ;;  %v3889_v12 = vshrl.u32 %v3832_v21, 16 }
 0x1c4   :  { %v5955_v16 = vpop.f32.mrb[16].mxu0  ;;  %v4196_v43 = vor.u32 %v7964_v60, %v4193_v46  ;;  %v3503_v49 = vor.u32 %v3501_v17, %v3500_v20  ;;  %v3887_v13 = vsel %vm6408_vm11, %v3882_v39, %v6931_v62  ;;  %v2621_v62 = vpop.f32.mrb[9].mxu1  ;;  %v3892_v60 = vshll.u32 %v3832_v21, 16 }
 0x1c5   :  { %v5956_v41 = vpop.f32.mrb[17].mxu0  ;;  %v4184_v29 = vsel %vm6376_vm8, %v6941_v23, %v4183_v50  ;;  %v3516_v33 = vor.u32 %v3514_v61, %v3513_v11  ;;  %v5820_v46 = vcombine.low %v3873_v42, %v3887_v13  ;;  %v7965_v23 = vsel %vm6408_vm11, %v6935_v6, %v6937_v7  ;;  %v3154_v11 = vld [vmem:[#allocation2 + $0x28] sm:$0xf]  ;;  %v4524_v13 = vld [vmem:[#allocation2 + $0x1c] sm:$0xf] }
 0x1c6   :  { %v5958_v48 = vpop.f32.mrb[18].mxu0  ;;  %v4197_v36 = vsel %vm6376_vm8, %v6943_v30, %v4196_v43  ;;  %v5957_v22 = vadd.f32 %v5956_v41, %v5955_v16  ;;  %v3207_v30 = vsel %vm6408_vm11, %v3202_v38, %v6939_v8  ;;  %v3504_v34 = vsel %vm6376_vm8, %v6933_v1, %v3503_v49  ;;  %v3152_v16 = vld [vmem:[#allocation2 + $0x1c] sm:$0xf]  ;;  %v7186_v8 = vpop.f32.mrb[10].mxu1 }
 0x1c7   :  { %v5959_v18 = vpop.f32.mrb[19].mxu0  ;;  %v5844_v35 = vcombine.low %v4184_v29, %v4197_v36  ;;  %v3517_v63 = vsel %vm6376_vm8, %v6945_v25, %v3516_v33  ;;  %4108 = vrot.lane.b32.xlu0 %v5820_v46, %s6264_s11  ;;  %v2624_v42 = vpop.f32.mrb[11].mxu1  ;;  %v3903_v43 = vshrl.u32 %v3834_v19, 16  ;;  %v3906_v20 = vshll.u32 %v3834_v19, 16  ;;  %v4526_v46 = vld [vmem:[#allocation2 + $0x28] sm:$0xf] }
 0x1c8   :  { %v5960_v24 = vadd.f32 %v5959_v18, %v5958_v48  ;;  %v5780_v18 = vcombine.low %v7965_v23, %v3207_v30  ;;  %v2525_v17 = vadd.f32 %v5957_v22, %v7026_v40  ;;  %v5804_v1 = vcombine.low %v3504_v34, %v3517_v63  ;;  %v6192_v30 = vld [vmem:[#allocation2 + $0x34] ss:$12 sps:$4 sm:$0xff]  }
 0x1c9   :  { %v3209_v41 = vshrl.u32 %v3152_v16, 16  ;;  %v3891_v25 = vrot.slane %v3889_v12, 4  ;;  %v3894_v39 = vrot.slane %v3892_v60, 5  ;;  %v3905_v50 = vrot.slane %v3903_v43, 4  ;;  %v6193_v63 = vld [vmem:[#allocation2 + $0x34] ss:$12 sps:$4 sm:$0xff]  }
 0x1ca   :  { %v2528_v54 = vadd.f32 %v5960_v24, %v7026_v40  ;;  %3428 = vrot.lane.b32.xlu1 %v5780_v18, %s6266_s15  ;;  %v2622_v6 = vadd.f32 %v2621_v62, %v2525_v17  ;;  %v3212_v61 = vshll.u32 %v3152_v16, 16  ;;  %v3908_v49 = vrot.slane %v3906_v20, 5  ;;  %v4145_v18 = vld [vmem:[#allocation2 + $0x34] sm:$0xf] }
 0x1cb   :  { %4404 = vrot.lane.b32.xlu0 %v5844_v35, %s6266_s15  ;;  %v3895_v36 = vor.u32 %v3894_v39, %v3891_v25  ;;  %v3211_v22 = vrot.slane %v3209_v41, 4  ;;  %v3223_v24 = vshrl.u32 %v3154_v11, 16  ;;  %v3226_v19 = vshll.u32 %v3154_v11, 16  ;;  %v4147_v39 = vld [vmem:[#allocation2 + $0x40] sm:$0xf] }
 0x1cc   :  { %v2625_v7 = vadd.f32 %v2624_v42, %v2528_v54  ;;  %vm2660_vm10 = vcmp.gt.f32.partialorder %v2622_v6, 0.0  ;;  %v2676_v48 = vmul.f32 0.01, %v2622_v6  ;;  %v3214_v21 = vrot.slane %v3212_v61, 5 }
 0x1cd   :  { %v3896_v16 = vrot.slane %v3895_v36, 4  ;;  %v3909_v23 = vor.u32 %v3908_v49, %v3905_v50  ;;  %v3225_v17 = vrot.slane %v3223_v24, 4  ;;  %v3228_v54 = vrot.slane %v3226_v19, 5  ;;  %v6208_v50 = vld [vmem:[%s7906_s3] sm:$0xff]   ;;  %v6209_v36 = vld [vmem:[%s7906_s3 + $0x48] sm:$0xff]  }
 0x1ce   :  { %vm2661_vm1 = vcmp.gt.f32.partialorder %v2625_v7, 0.0  ;;  %v2677_v38 = vmul.f32 0.01, %v2625_v7  ;;  %3724 = vrot.lane.b32.xlu1 %v5804_v1, %s6265_s12  ;;  %v2692_v29 = vsel %vm2660_vm10, %v2622_v6, %v2676_v48  ;;  %v3215_v35 = vor.u32 %v3214_v21, %v3211_v22  ;;  %v6207_v6 = vld [vmem:[%s7906_s3 + $0x40] sm:$0xff]  }
 0x1cf   :  { %v5907_v34 = vpack.c.bf16 %v2692_v29, %v2692_v29  ;;  %v4557_v42 = vshrl.u32 %v4524_v13, 16  ;;  %4494 = vrot.lane.b32.xlu0 %v6192_v30, %s6265_s12  ;;  %v3901_v1 = vsel %vm6408_vm11, %v3896_v16, %v6947_v26  ;;  %v3910_v12 = vrot.slane %v3909_v23, 4  ;;  %5989 = vmatprep.subr.bf16.mxu1 %v6207_v6  ;;  %v3467_v30 = vld [vmem:[#allocation2 + $0x34] sm:$0xf] }
 0x1d0   :  { %v2693_v33 = vsel %vm2661_vm1, %v2625_v7, %v2677_v38  ;;  %v4560_v60 = vshll.u32 %v4524_v13, 16  ;;  %v4571_v43 = vshrl.u32 %v4526_v46, 16  ;;  %v3216_v7 = vrot.slane %v3215_v35, 4  ;;  %v3465_v38 = vld [vmem:[#allocation2 + $0x28] sm:$0xf]  ;;  %5990 = vmatpush3.bf16.msra.mxu1 %v6208_v50  ;;  %v6211_v35 = vld [vmem:[%s7906_s3 + $0x50] sm:$0xff]  }
 0x1d1   :  { %v5908_v62 = vpack.c.bf16 %v2693_v33, %v2693_v33  ;;  %2772 = vst.msk [vmem:[#allocation2 + $0x88] sm:$0xf] %vm34_vm0, %v5907_v34  ;;  %v3229_v20 = vor.u32 %v3228_v54, %v3225_v17  ;;  %v4559_v41 = vrot.slane %v4557_v42, 4  ;;  %v4574_v25 = vshll.u32 %v4526_v46, 16  ;;  %5991 = vmatprep.subr.bf16.mxu1 %v6209_v36  ;;  %v6213_v50 = vld [vmem:[%s7906_s3 + $0x58] sm:$0xff]  }
 0x1d2   :  { %3120 = vrot.lane.b32.xlu1 %v6193_v63, %s6264_s11  ;;  %v3915_v26 = vsel %vm6408_vm11, %v3910_v12, %v6951_v14  ;;  %v4562_v11 = vrot.slane %v4560_v60, 5  ;;  %v4573_v61 = vrot.slane %v4571_v43, 4  ;;  %v4204_v48 = vshrl.u32 %v4145_v18, 16  ;;  %v6210_v14 = vld [vmem:[%s7906_s3 + $0x8] sm:$0xff]   ;;  %v4528_v12 = vld [vmem:[#allocation2 + $0x34] sm:$0xf] }
 0x1d3   :  { %2773 = vst.msk [vmem:[#allocation2 + $0x94] sm:$0xf] %vm34_vm0, %v5908_v62  ;;  %v5821_v49 = vcombine.low %v3901_v1, %v3915_v26  ;;  %v3221_v22 = vsel %vm6408_vm11, %v3216_v7, %v6949_v28  ;;  %v3230_v21 = vrot.slane %v3229_v20, 4  ;;  %v4576_v13 = vrot.slane %v4574_v25, 5 }
 0x1d4   :  { %v4563_v33 = vor.u32 %v4562_v11, %v4559_v41  ;;  %v4206_v24 = vrot.slane %v4204_v48, 7  ;;  %v4207_v19 = vshll.u32 %v4145_v18, 16  ;;  %v4217_v46 = vshrl.u32 %v4147_v39, 16  ;;  %5992 = vmatpush3.bf16.msra.mxu1 %v6210_v14 }
 0x1d5   :  { %4110 = vrot.lane.b32.xlu0 %v5821_v49, %s6264_s11  ;;  %v3235_v28 = vsel %vm6408_vm11, %v3230_v21, %v6955_v47  ;;  %v4577_v62 = vor.u32 %v4576_v13, %v4573_v61  ;;  %v4220_v16 = vshll.u32 %v4147_v39, 16  ;;  %v3524_v23 = vshrl.u32 %v3465_v38, 16  ;;  %v6212_v47 = vld [vmem:[%s7906_s3 + $0x10] sm:$0xff]   ;;  %5993 = vmatprep.subr.bf16.mxu1 %v6211_v35 }
 0x1d6   :  { %v5961_v29 = vpop.f32.mrb[20].mxu0  ;;  %v5781_v17 = vcombine.low %v3221_v22, %v3235_v28  ;;  %v4564_v18 = vrot.slane %v4563_v33, 4  ;;  %v4209_v54 = vor.u32 %v4207_v19, %v4206_v24  ;;  %v4219_v42 = vrot.slane %v4217_v46, 7  ;;  %v3156_v21 = vld [vmem:[#allocation2 + $0x34] sm:$0xf] }
 0x1d7   :  { %v5962_v34 = vpop.f32.mrb[21].mxu0  ;;  %v4578_v60 = vrot.slane %v4577_v62, 4  ;;  %v3526_v43 = vrot.slane %v3524_v23, 7  ;;  %v3527_v6 = vshll.u32 %v3465_v38, 16  ;;  %v3537_v7 = vshrl.u32 %v3467_v30, 16 }
 0x1d8   :  { %v5964_v63 = vpop.f32.mrb[22].mxu0  ;;  %3430 = vrot.lane.b32.xlu1 %v5781_v17, %s6266_s15  ;;  %v4569_v20 = vsel %vm6408_vm11, %v4564_v18, %v6953_v44  ;;  %v4210_v41 = vsel %vm6376_vm8, %v6959_v55, %v4209_v54  ;;  %v4222_v25 = vor.u32 %v4220_v16, %v4219_v42  ;;  %v3540_v39 = vshll.u32 %v3467_v30, 16  ;;  %v4530_v38 = vld [vmem:[#allocation2 + $0x40] sm:$0xf]  ;;  %5994 = vmatpush3.bf16.msra.mxu1 %v6212_v47  ;;  %v6196_v16 = vld [vmem:[#allocation2 + $0x4c] ss:$12 sps:$4 sm:$0xff]  }
 0x1d9   :  { %v5965_v1 = vpop.f32.mrb[23].mxu0  ;;  %v4583_v26 = vsel %vm6408_vm11, %v4578_v60, %v6957_v51  ;;  %v3529_v11 = vor.u32 %v3527_v6, %v3526_v43  ;;  %v3539_v61 = vrot.slane %v3537_v7, 7  ;;  %v5963_v48 = vadd.f32 %v5962_v34, %v5961_v29  ;;  %v7241_v44 = vpop.f32.mrb[12].mxu1  ;;  %5995 = vmatprep.subr.bf16.mxu1 %v6213_v50  ;;  %v3158_v42 = vld [vmem:[#allocation2 + $0x40] sm:$0xf] }
 0x1da   :  { %v5860_v36 = vcombine.low %v4569_v20, %v4583_v26  ;;  %v4223_v55 = vsel %vm6376_vm8, %v6965_v59, %v4222_v25  ;;  %v5966_v49 = vadd.f32 %v5965_v1, %v5964_v63  ;;  %v4585_v22 = vshrl.u32 %v4528_v12, 16  ;;  %v7246_v13 = vpop.f32.mrb[13].mxu1  ;;  %v6214_v59 = vld [vmem:[%s7906_s3 + $0x18] sm:$0xff]  }
 0x1db   :  { %v5845_v14 = vcombine.low %v4210_v41, %v4223_v55  ;;  %v3530_v51 = vsel %vm6376_vm8, %v6961_v56, %v3529_v11  ;;  %v3542_v33 = vor.u32 %v3540_v39, %v3539_v61  ;;  %v2533_v29 = vadd.f32 %v5963_v48, %v7026_v40  ;;  %v7252_v24 = vpop.f32.mrb[14].mxu1  ;;  %v3836_v41 = vld [vmem:[#allocation2 + $0x40] sm:$0xf]  ;;  %v6197_v50 = vld [vmem:[#allocation2 + $0x4c] ss:$12 sps:$4 sm:$0xff]  }
 0x1dc   :  { %4812 = vst.msk [vmem:[#allocation3 + $0x10] sm:$0xff] %vm7915_vm12, %v5860_v36  ;;  %v2536_v19 = vadd.f32 %v5966_v49, %v7026_v40  ;;  %v4587_v46 = vrot.slane %v4585_v22, 4  ;;  %v4588_v30 = vshll.u32 %v4528_v12, 16  ;;  %v4599_v34 = vshrl.u32 %v4530_v38, 16  ;;  %v7259_v28 = vpop.f32.mrb[15].mxu1  ;;  %5996 = vmatpush3.bf16.msra.mxu1 %v6214_v59  ;;  %v7966_v59 = vld [vmem:[#allocation7_spill] sm:$0xff] }
 0x1dd   :  { %4406 = vrot.lane.b32.xlu0 %v5845_v14, %s6266_s15  ;;  %v3543_v56 = vsel %vm6376_vm8, %v6963_v57, %v3542_v33  ;;  %v2630_v62 = vadd.f32 %v7169_v31, %v2533_v29  ;;  %v4602_v23 = vshll.u32 %v4530_v38, 16  ;;  %v3237_v63 = vshrl.u32 %v3156_v21, 16  ;;  %v6215_v57 = vld [vmem:[%s7906_s3 + $0x60] sm:$0xff]   ;;  %v3838_v61 = vld [vmem:[#allocation2 + $0x4c] sm:$0xf] }
 0x1de   :  { %v5805_v35 = vcombine.low %v3530_v51, %v3543_v56  ;;  %v2633_v17 = vadd.f32 %v7186_v8, %v2536_v19  ;;  %v4590_v18 = vrot.slane %v4588_v30, 5  ;;  %v4601_v54 = vrot.slane %v4599_v34, 4  ;;  %5997 = vmatprep.subr.bf16.mxu1 %v6215_v57  ;;  %v6198_v55 = vld [vmem:[#allocation2 + $0x64] ss:$12 sps:$4 sm:$0xff]   ;;  %v3469_v29 = vld [vmem:[#allocation2 + $0x40] sm:$0xf] }
 0x1df   :  { %vm2662_vm2 = vcmp.gt.f32.partialorder %v2630_v62, 0.0  ;;  %v2678_v1 = vmul.f32 0.01, %v2630_v62  ;;  %v4604_v12 = vrot.slane %v4602_v23, 5  ;;  %v3239_v60 = vrot.slane %v3237_v63, 4  ;;  %v7967_v57 = vld [vmem:[#allocation8_spill] sm:$0xff] }
 0x1e0   :  { %3726 = vrot.lane.b32.xlu1 %v5805_v35, %s6265_s12  ;;  %vm2663_vm3 = vcmp.gt.f32.partialorder %v2633_v17, 0.0  ;;  %v2679_v31 = vmul.f32 0.01, %v2633_v17  ;;  %v4591_v43 = vor.u32 %v4590_v18, %v4587_v46  ;;  %v3240_v6 = vshll.u32 %v3156_v21, 16 }
 0x1e1   :  { %v2694_v7 = vsel %vm2662_vm2, %v2630_v62, %v2678_v1  ;;  %4496 = vrot.lane.b32.xlu0 %v6196_v16, %s6265_s12  ;;  %v4605_v8 = vor.u32 %v4604_v12, %v4601_v54  ;;  %v3251_v47 = vshrl.u32 %v3158_v42, 16  ;;  %v3254_v20 = vshll.u32 %v3158_v42, 16  ;;  %v3471_v62 = vld [vmem:[#allocation2 + $0x4c] sm:$0xf] }
 0x1e2   :  { %v5909_v25 = vpack.c.bf16 %v2694_v7, %v2694_v7  ;;  %v2695_v39 = vsel %vm2663_vm3, %v2633_v17, %v2679_v31  ;;  %v4592_v26 = vrot.slane %v4591_v43, 4  ;;  %v3242_v11 = vrot.slane %v3240_v6, 5 }
 0x1e3   :  { %v4822_v48 = vld [vmem:[#allocation3 + $0x10] sm:$0xff]  ;;  %v5910_v38 = vpack.c.bf16 %v2695_v39, %v2695_v39  ;;  %v4606_v36 = vrot.slane %v4605_v8, 4  ;;  %v3253_v49 = vrot.slane %v3251_v47, 4  ;;  %v3256_v22 = vrot.slane %v3254_v20, 5  ;;  %v4532_v47 = vld [vmem:[#allocation2 + $0x4c] sm:$0xf] }
 0x1e4   :  { %6094 = vmatprep.mubr.msk.bf16.mxu0 %vm7915_vm12, %v4822_v48  ;;  %2774 = vst.msk [vmem:[#allocation2 + $0xa0] sm:$0xf] %vm34_vm0, %v5909_v25  ;;  %3122 = vrot.lane.b32.xlu1 %v6197_v50, %s6264_s11  ;;  %v4597_v21 = vsel %vm6408_vm11, %v4592_v26, %v6967_v5  ;;  %v3243_v14 = vor.u32 %v3242_v11, %v3239_v60  ;;  %v3917_v51 = vshrl.u32 %v3836_v41, 16  ;;  %v3920_v33 = vshll.u32 %v3836_v41, 16  ;;  %v6216_v5 = vld [vmem:[%s7906_s3 + $0x20] sm:$0xff]   ;;  %v6218_v60 = vld [vmem:[%s7906_s3 + $0x68] sm:$0xff]  }
 0x1e5   :  { %2775 = vst.msk [vmem:[#allocation2 + $0xac] sm:$0xf] %vm34_vm0, %v5910_v38  ;;  %v4611_v19 = vsel %vm6408_vm11, %v4606_v36, %v7966_v59  ;;  %4498 = vrot.lane.b32.xlu0 %v6198_v55, %s6265_s12  ;;  %v3257_v46 = vor.u32 %v3256_v22, %v3253_v49  ;;  %v3931_v34 = vshrl.u32 %v3838_v61, 16  ;;  %v3934_v56 = vshll.u32 %v3838_v61, 16  ;;  %5998 = vmatpush3.bf16.msra.mxu1 %v6216_v5  ;;  %v6219_v20 = vld [vmem:[%s7906_s3 + $0x28] sm:$0xff]   ;;  %v7968_v41 = vld [vmem:[#allocation9_spill] sm:$0xff] }
 0x1e6   :  { %v5861_v16 = vcombine.low %v4597_v21, %v4611_v19  ;;  %v3244_v23 = vrot.slane %v3243_v14, 4  ;;  %v3919_v63 = vrot.slane %v3917_v51, 4  ;;  %v3922_v35 = vrot.slane %v3920_v33, 5  ;;  %v4534_v11 = vld [vmem:[#allocation2 + $0x58] sm:$0xf]  ;;  %5999 = vmatprep.subr.bf16.mxu1 %v6218_v60  ;;  %v7969_v14 = vld [vmem:[#allocation11_spill] sm:$0xff] }
 0x1e7   :  { %v3258_v18 = vrot.slane %v3257_v46, 4  ;;  %v3933_v54 = vrot.slane %v3931_v34, 4  ;;  %v3936_v42 = vrot.slane %v3934_v56, 5  ;;  %v3550_v1 = vshrl.u32 %v3469_v29, 16  ;;  %v4149_v19 = vld [vmem:[#allocation2 + $0x4c] sm:$0xf] }
 0x1e8   :  { %4813 = vst.msk [vmem:[#allocation3 + $0x28] sm:$0xff] %vm7915_vm12, %v5861_v16  ;;  %v3249_v31 = vsel %vm6408_vm11, %v3244_v23, %v7967_v57  ;;  %v3923_v43 = vor.u32 %v3922_v35, %v3919_v63  ;;  %v3553_v6 = vshll.u32 %v3469_v29, 16  ;;  %v3563_v7 = vshrl.u32 %v3471_v62, 16  ;;  %v7970_v46 = vld [vmem:[#allocation12_spill] sm:$0xff]  ;;  %v4536_v23 = vld [vmem:[#allocation2 + $0x64] sm:$0xf] }
 0x1e9   :  { %v5967_v30 = vpop.f32.mrb[24].mxu0  ;;  %v3263_v25 = vsel %vm6408_vm11, %v3258_v18, %v7968_v41  ;;  %v3937_v39 = vor.u32 %v3936_v42, %v3933_v54  ;;  %v3552_v50 = vrot.slane %v3550_v1, 7  ;;  %v3566_v26 = vshll.u32 %v3471_v62, 16  ;;  %6000 = vmatpush3.bf16.msra.mxu1 %v6219_v20  ;;  %v4151_v16 = vld [vmem:[#allocation2 + $0x58] sm:$0xf]  ;;  %v7972_v35 = vld [vmem:[#allocation13_spill] sm:$0xff] }
 0x1ea   :  { %v5968_v17 = vpop.f32.mrb[25].mxu0  ;;  %v5782_v61 = vcombine.low %v3249_v31, %v3263_v25  ;;  %v3924_v48 = vrot.slane %v3923_v43, 4  ;;  %v3565_v38 = vrot.slane %v3563_v7, 7  ;;  %v4613_v21 = vshrl.u32 %v4532_v47, 16  ;;  %v6220_v25 = vld [vmem:[%s7906_s3 + $0x70] sm:$0xff]  }
 0x1eb   :  { %v5970_v12 = vpop.f32.mrb[26].mxu0  ;;  %v5969_v36 = vadd.f32 %v5968_v17, %v5967_v30  ;;  %v3938_v55 = vrot.slane %v3937_v39, 4  ;;  %v3555_v49 = vor.u32 %v3553_v6, %v3552_v50  ;;  %v4616_v29 = vshll.u32 %v4532_v47, 16  ;;  %v7971_v30 = vld [vmem:[#allocation10_spill] sm:$0xff]  ;;  %6001 = vmatprep.subr.bf16.mxu1 %v6220_v25 }
 0x1ec   :  { %v5971_v8 = vpop.f32.mrb[27].mxu0  ;;  %3432 = vrot.lane.b32.xlu1 %v5782_v61, %s6266_s15  ;;  %v3929_v51 = vsel %vm6408_vm11, %v3924_v48, %v7969_v14  ;;  %v3568_v33 = vor.u32 %v3566_v26, %v3565_v38  ;;  %v4627_v59 = vshrl.u32 %v4534_v11, 16  ;;  %v4615_v62 = vrot.slane %v4613_v21, 4  ;;  %v6199_v26 = vld [vmem:[#allocation2 + $0x7c] ss:$12 sps:$4 sm:$0xff]   ;;  %v6221_v21 = vld [vmem:[%s7906_s3 + $0x30] sm:$0xff]  }
 0x1ed   :  { %v5972_v22 = vadd.f32 %v5971_v8, %v5970_v12  ;;  %v3943_v34 = vsel %vm6408_vm11, %v3938_v55, %v7970_v46  ;;  %v3556_v56 = vsel %vm6376_vm8, %v7971_v30, %v3555_v49  ;;  %v4630_v5 = vshll.u32 %v4534_v11, 16  ;;  %v4153_v49 = vld [vmem:[#allocation2 + $0x64] sm:$0xf]  ;;  %v7973_v14 = vld [vmem:[#allocation15_spill] sm:$0xff]  ;;  %v3160_v30 = vld [vmem:[#allocation2 + $0x4c] sm:$0xf]  ;;  %6002 = vmatpush3.bf16.msra.mxu1 %v6221_v21 }
 0x1ee   :  { %v5822_v63 = vcombine.low %v3929_v51, %v3943_v34  ;;  %v3569_v17 = vsel %vm6376_vm8, %v7972_v35, %v3568_v33  ;;  %v4618_v18 = vrot.slane %v4616_v29, 5  ;;  %v4629_v54 = vrot.slane %v4627_v59, 4  ;;  %v7975_v59 = vld [vmem:[#allocation14_spill] sm:$0xff]  ;;  %v6223_v35 = vld [vmem:[%s7906_s3 + $0x38] sm:$0xff]   ;;  %v6235_v21 = vld [vmem:[%s7906_s3 + $0x80] sm:$0xff]  }
 0x1ef   :  { %v4825_v42 = vld [vmem:[#allocation3 + $0x28] sm:$0xff]  ;;  %v5806_v1 = vcombine.low %v3556_v56, %v3569_v17  ;;  %v4632_v12 = vrot.slane %v4630_v5, 5  ;;  %v4230_v60 = vshrl.u32 %v4149_v19, 16  ;;  %v4233_v57 = vshll.u32 %v4149_v19, 16 }
 0x1f0   :  { %6095 = vmatmul.mubr.msk.bf16.vlgmr.msra.gmra.mrb[32].mxu0 %vm7915_vm12, %v4825_v42  ;;  %4112 = vrot.lane.b32.xlu0 %v5822_v63, %s6264_s11  ;;  %v4619_v31 = vor.u32 %v4618_v18, %v4615_v62  ;;  %v4243_v43 = vshrl.u32 %v4151_v16, 16  ;;  %v4246_v6 = vshll.u32 %v4151_v16, 16  ;;  %v2541_v7 = vadd.f32 %v5969_v36, %v7026_v40  ;;  %v7976_v62 = vld [vmem:[#allocation17_spill] sm:$0xff]  ;;  %v3162_v63 = vld [vmem:[#allocation2 + $0x58] sm:$0xf] }
 0x1f1   :  { %3728 = vrot.lane.b32.xlu1 %v5806_v1, %s6265_s12  ;;  %v4633_v8 = vor.u32 %v4632_v12, %v4629_v54  ;;  %v4232_v47 = vrot.slane %v4230_v60, 7  ;;  %v4641_v20 = vshrl.u32 %v4536_v23, 16  ;;  %v4644_v41 = vshll.u32 %v4536_v23, 16  ;;  %v3840_v42 = vld [vmem:[#allocation2 + $0x58] sm:$0xf] }
 0x1f2   :  { %v4620_v39 = vrot.slane %v4619_v31, 4  ;;  %v4245_v50 = vrot.slane %v4243_v43, 7  ;;  %v2638_v11 = vadd.f32 %v7246_v13, %v2541_v7  ;;  %v2544_v61 = vadd.f32 %v5972_v22, %v7026_v40  ;;  %v6222_v40 = vld [vmem:[%s7906_s3 + $0x78] sm:$0xff]   ;;  %v7977_v31 = vld [vmem:[#allocation19_spill] sm:$0xff] }
 0x1f3   :  { %v4634_v48 = vrot.slane %v4633_v8, 4  ;;  %v4235_v38 = vor.u32 %v4233_v57, %v4232_v47  ;;  %v4643_v36 = vrot.slane %v4641_v20, 4  ;;  %v4646_v55 = vrot.slane %v4644_v41, 5  ;;  %v7974_v13 = vld [vmem:[#allocation16_spill] sm:$0xff]  ;;  %6003 = vmatprep.subr.bf16.mxu1 %v6222_v40  ;;  %v3842_v47 = vld [vmem:[#allocation2 + $0x64] sm:$0xf] }
 0x1f4   :  { %v4625_v51 = vsel %vm6408_vm11, %v4620_v39, %v7973_v14  ;;  %v4248_v33 = vor.u32 %v4246_v6, %v4245_v50  ;;  %vm2664_vm4 = vcmp.gt.f32.partialorder %v2638_v11, 0.0  ;;  %v2680_v29 = vmul.f32 0.01, %v2638_v11  ;;  %6004 = vmatpush3.bf16.msra.mxu1 %v6223_v35 }
 0x1f5   :  { %v4639_v22 = vsel %vm6408_vm11, %v4634_v48, %v7974_v13  ;;  %v4236_v19 = vsel %vm6376_vm8, %v7975_v59, %v4235_v38  ;;  %3124 = vrot.lane.b32.xlu1 %v6199_v26, %s6264_s11  ;;  %v4647_v46 = vor.u32 %v4646_v55, %v4643_v36  ;;  %v2641_v34 = vadd.f32 %v7259_v28, %v2544_v61 }
 0x1f6   :  { %v5862_v56 = vcombine.low %v4625_v51, %v4639_v22  ;;  %v4249_v5 = vsel %vm6376_vm8, %v7976_v62, %v4248_v33  ;;  %v2696_v16 = vsel %vm2664_vm4, %v2638_v11, %v2680_v29  ;;  %v4256_v23 = vshrl.u32 %v4153_v49, 16  ;;  %v3473_v11 = vld [vmem:[#allocation2 + $0x58] sm:$0xf]  ;;  %6132 = vmatprep.subr.bf16.mxu1 %v6235_v21  ;;  %v7985_v21 = vld [vmem:[#allocation26_spill] sm:$0xff] }
 0x1f7   :  { %v5846_v17 = vcombine.low %v4236_v19, %v4249_v5  ;;  %v5911_v18 = vpack.c.bf16 %v2696_v16, %v2696_v16  ;;  %v4648_v54 = vrot.slane %v4647_v46, 4  ;;  %vm2665_vm5 = vcmp.gt.f32.partialorder %v2641_v34, 0.0  ;;  %v3475_v19 = vld [vmem:[#allocation2 + $0x64] sm:$0xf]  ;;  %v6217_v46 = vld [vmem:[#allocation2 + $0x10] ss:$12 sps:$4 sm:$0xff]  }
 0x1f8   :  { %4814 = vst.msk [vmem:[#allocation3 + $0x40] sm:$0xff] %vm7915_vm12, %v5862_v56  ;;  %v2681_v28 = vmul.f32 0.01, %v2641_v34  ;;  %v4258_v1 = vrot.slane %v4256_v23, 7  ;;  %v4259_v12 = vshll.u32 %v4153_v49, 16  ;;  %v3265_v60 = vshrl.u32 %v3160_v30, 16 }
 0x1f9   :  { %4408 = vrot.lane.b32.xlu0 %v5846_v17, %s6266_s15  ;;  %2776 = vst.msk [vmem:[#allocation2 + $0xb8] sm:$0xf] %vm34_vm0, %v5911_v18  ;;  %v4653_v43 = vsel %vm6408_vm11, %v4648_v54, %v7977_v31  ;;  %v3268_v6 = vshll.u32 %v3160_v30, 16  ;;  %v3279_v7 = vshrl.u32 %v3162_v63, 16  ;;  %v3282_v8 = vshll.u32 %v3162_v63, 16 }
 0x1fa   :  { %v7978_v41 = vsel %vm6408_vm11, %v7010_v37, %v7012_v3  ;;  %v2697_v39 = vsel %vm2665_vm5, %v2641_v34, %v2681_v28  ;;  %v4261_v50 = vor.u32 %v4259_v12, %v4258_v1  ;;  %v3267_v26 = vrot.slane %v3265_v60, 4  ;;  %v7979_v37 = vld [vmem:[#allocation18_spill] sm:$0xff]  ;;  %3820 = vst.msk [vmem:[#allocation3 + $0x8] sm:$0xff] %vm7915_vm12, %v6217_v46  ;;  %v7982_v1 = vld [vmem:[#allocation23_spill] sm:$0xff] }
 0x1fb   :  { %v5863_v25 = vcombine.low %v4653_v43, %v7978_v41  ;;  %v5912_v48 = vpack.c.bf16 %v2697_v39, %v2697_v39  ;;  %v3270_v38 = vrot.slane %v3268_v6, 5  ;;  %v3281_v36 = vrot.slane %v3279_v7, 4  ;;  %v3844_v5 = vld [vmem:[#allocation2 + $0x88] sm:$0xf]  ;;  %v4157_v46 = vld [vmem:[#allocation2 + $0x94] sm:$0xf] }
 0x1fc   :  { %v5973_v57 = vpop.f32.mrb[28].mxu0  ;;  %v3284_v55 = vrot.slane %v3282_v8, 5  ;;  %v4262_v3 = vsel %vm6376_vm8, %v7979_v37, %v4261_v50  ;;  %v3945_v14 = vshrl.u32 %v3840_v42, 16  ;;  %v3948_v51 = vshll.u32 %v3840_v42, 16  ;;  %v7981_v42 = vld [vmem:[#allocation20_spill] sm:$0xff] }
 0x1fd   :  { %v5974_v20 = vpop.f32.mrb[29].mxu0  ;;  %4815 = vst.msk [vmem:[#allocation3 + $0x58] sm:$0xff] %vm7915_vm12, %v5863_v25  ;;  %v3959_v33 = vshrl.u32 %v3842_v47, 16  ;;  %v7980_v29 = vsel %vm6376_vm8, %v7003_v9, %v7075_v2  ;;  %v3271_v13 = vor.u32 %v3270_v38, %v3267_v26  ;;  %v3962_v59 = vshll.u32 %v3842_v47, 16  ;;  %v6236_v25 = vld [vmem:[%s7905_s2] ss:$0 sm:$0xff] }
 0x1fe   :  { %v5976_v61 = vpop.f32.mrb[30].mxu0  ;;  %2777 = vst.msk [vmem:[#allocation2 + $0xc4] sm:$0xf] %vm34_vm0, %v5912_v48  ;;  %v5847_v40 = vcombine.low %v4262_v3, %v7980_v29  ;;  %v3285_v22 = vor.u32 %v3284_v55, %v3281_v36  ;;  %v3947_v34 = vrot.slane %v3945_v14, 4  ;;  %v3950_v30 = vrot.slane %v3948_v51, 5  ;;  %v7983_v48 = vld [vmem:[#allocation24_spill] sm:$0xff] }
 0x1ff   :  { %v5977_v49 = vpop.f32.mrb[31].mxu0  ;;  %v3961_v56 = vrot.slane %v3959_v33, 4  ;;  %v3576_v62 = vshrl.u32 %v3473_v11, 16  ;;  %v4828_v16 = vld [vmem:[#allocation3 + $0x40] sm:$0xff]  ;;  %v3272_v23 = vrot.slane %v3271_v13, 4  ;;  %v3964_v35 = vrot.slane %v3962_v59, 5 }
 0x200   :  { %4410 = vrot.lane.b32.xlu0 %v5847_v40, %s6266_s15  ;;  %v3286_v63 = vrot.slane %v3285_v22, 4  ;;  %v3579_v17 = vshll.u32 %v3473_v11, 16  ;;  %6098 = vmatprep.mubr.msk.bf16.mxu0 %vm7915_vm12, %v4828_v16  ;;  %v3951_v9 = vor.u32 %v3950_v30, %v3947_v34  ;;  %v3589_v18 = vshrl.u32 %v3475_v19, 16  ;;  %v3846_v26 = vld [vmem:[#allocation2 + $0x94] sm:$0xf] }
 0x201   :  { %v3578_v2 = vrot.slane %v3576_v62, 7  ;;  %v3592_v54 = vshll.u32 %v3475_v19, 16  ;;  %v3277_v28 = vsel %vm6408_vm11, %v3272_v23, %v7981_v42  ;;  %v3965_v60 = vor.u32 %v3964_v35, %v3961_v56  ;;  %v3166_v14 = vld [vmem:[#allocation2 + $0x88] sm:$0xf]  ;;  %v7986_v33 = vld [vmem:[#allocation27_spill] sm:$0xff] }
 0x202   :  { %v3291_v12 = vsel %vm6408_vm11, %v3286_v63, %v7982_v1  ;;  %v5975_v31 = vadd.f32 %v5974_v20, %v5973_v57  ;;  %v3952_v6 = vrot.slane %v3951_v9, 4  ;;  %v3591_v8 = vrot.slane %v3589_v18, 7  ;;  %v7984_v20 = vld [vmem:[#allocation25_spill] sm:$0xff] }
 0x203   :  { %v5783_v43 = vcombine.low %v3277_v28, %v3291_v12  ;;  %v3581_v7 = vor.u32 %v3579_v17, %v3578_v2  ;;  %v3966_v41 = vrot.slane %v3965_v60, 4  ;;  %v5978_v50 = vadd.f32 %v5977_v49, %v5976_v61  ;;  %v6200_v34 = vld [vmem:[#allocation2 + $0x94] ss:$12 sps:$4 sm:$0xff]  }
 0x204   :  { %v4831_v47 = vld [vmem:[#allocation3 + $0x58] sm:$0xff]  ;;  %v2549_v39 = vadd.f32 %v6236_v25, %v5975_v31  ;;  %v3973_v11 = vshrl.u32 %v3844_v5, 16  ;;  %v3957_v57 = vsel %vm6408_vm11, %v3952_v6, %v7983_v48  ;;  %v3594_v36 = vor.u32 %v3592_v54, %v3591_v8  ;;  %v4159_v35 = vld [vmem:[#allocation2 + $0xa0] sm:$0xf]  ;;  %v3479_v17 = vld [vmem:[#allocation2 + $0x94] sm:$0xf] }
 0x205   :  { %6099 = vmatmul.mubr.msk.bf16.gmra.mrb[36].mxu0 %vm7915_vm12, %v4831_v47  ;;  %3434 = vrot.lane.b32.xlu1 %v5783_v43, %s6266_s15  ;;  %v3582_v38 = vsel %vm6376_vm8, %v7984_v20, %v3581_v7  ;;  %v3976_v55 = vshll.u32 %v3844_v5, 16  ;;  %v3971_v61 = vsel %vm6408_vm11, %v3966_v41, %v7985_v21  ;;  %v2552_v37 = vadd.f32 %v6236_v25, %v5978_v50  ;;  %v3477_v5 = vld [vmem:[#allocation2 + $0x88] sm:$0xf]  ;;  %v6201_v2 = vld [vmem:[#allocation2 + $0x94] ss:$12 sps:$4 sm:$0xff]   ;;  %v7987_v31 = vld [vmem:[#allocation28_spill] sm:$0xff] }
 0x206   :  { %v2646_v49 = vadd.f32 %v7241_v44, %v2549_v39  ;;  %v3975_v3 = vrot.slane %v3973_v11, 4  ;;  %v5823_v51 = vcombine.low %v3957_v57, %v3971_v61  ;;  %v3595_v29 = vsel %vm6376_vm8, %v7986_v33, %v3594_v36  ;;  %v6224_v8 = vld [vmem:[#allocation2 + $0x28] ss:$12 sps:$4 sm:$0xff]   ;;  %v7988_v21 = vld [vmem:[#allocation29_spill] sm:$0xff] }
 0x207   :  { %v3978_v40 = vrot.slane %v3976_v55, 5  ;;  %v3987_v13 = vshrl.u32 %v3846_v26, 16  ;;  %v5807_v22 = vcombine.low %v3582_v38, %v3595_v29  ;;  %v2649_v19 = vadd.f32 %v7252_v24, %v2552_v37  ;;  %v4540_v50 = vld [vmem:[#allocation2 + $0x94] sm:$0xf]  ;;  %3821 = vst.msk [vmem:[#allocation3 + $0x20] sm:$0xff] %vm7915_vm12, %v6224_v8  ;;  %v7989_v33 = vld [vmem:[#allocation33_spill] sm:$0xff] }
 0x208   :  { %vm2666_vm6 = vcmp.gt.f32.partialorder %v2646_v49, 0.0  ;;  %v2682_v59 = vmul.f32 0.01, %v2646_v49  ;;  %4114 = vrot.lane.b32.xlu0 %v5823_v51, %s6264_s11  ;;  %v3990_v56 = vshll.u32 %v3846_v26, 16  ;;  %v3307_v62 = vshrl.u32 %v3166_v14, 16 }
 0x209   :  { %v3979_v44 = vor.u32 %v3978_v40, %v3975_v3  ;;  %v3989_v30 = vrot.slane %v3987_v13, 4  ;;  %3730 = vrot.lane.b32.xlu1 %v5807_v22, %s6265_s12  ;;  %vm2667_vm7 = vcmp.gt.f32.partialorder %v2649_v19, 0.0  ;;  %v2683_v23 = vmul.f32 0.01, %v2649_v19  ;;  %v4542_v3 = vld [vmem:[#allocation2 + $0xa0] sm:$0xf] }
 0x20a   :  { %v2698_v16 = vsel %vm2666_vm6, %v2646_v49, %v2682_v59  ;;  %v3310_v63 = vshll.u32 %v3166_v14, 16  ;;  %v3992_v18 = vrot.slane %v3990_v56, 5  ;;  %v3309_v54 = vrot.slane %v3307_v62, 4  ;;  %v7990_v40 = vld [vmem:[#allocation31_spill] sm:$0xff]  ;;  %v3848_v59 = vld [vmem:[#allocation2 + $0xa0] sm:$0xf] }
 0x20b   :  { %v5913_v9 = vpack.c.bf16 %v2698_v16, %v2698_v16  ;;  %v3980_v24 = vrot.slane %v3979_v44, 4  ;;  %v2699_v42 = vsel %vm2667_vm7, %v2649_v19, %v2683_v23  ;;  %v4282_v1 = vshrl.u32 %v4157_v46, 16  ;;  %v6225_v19 = vld [vmem:[#allocation2 + $0x40] ss:$12 sps:$4 sm:$0xff]  }
 0x20c   :  { %v3312_v28 = vrot.slane %v3310_v63, 5  ;;  %v4285_v12 = vshll.u32 %v4157_v46, 16  ;;  %v5914_v60 = vpack.c.bf16 %v2699_v42, %v2699_v42  ;;  %4500 = vrot.lane.b32.xlu0 %v6200_v34, %s6265_s12  ;;  %v3993_v6 = vor.u32 %v3992_v18, %v3989_v30  ;;  %v7992_v44 = vld [vmem:[#allocation34_spill] sm:$0xff]  ;;  %3822 = vst.msk [vmem:[#allocation3 + $0x38] sm:$0xff] %vm7915_vm12, %v6225_v19 }
 0x20d   :  { %2778 = vst.msk [vmem:[#allocation2 + $0xd0] sm:$0xf] %vm34_vm0, %v5913_v9  ;;  %v3985_v43 = vsel %vm6408_vm11, %v3980_v24, %v7987_v31  ;;  %v4295_v7 = vshrl.u32 %v4159_v35, 16  ;;  %3126 = vrot.lane.b32.xlu1 %v6201_v2, %s6264_s11  ;;  %v4284_v41 = vrot.slane %v4282_v1, 7  ;;  %v4298_v25 = vshll.u32 %v4159_v35, 16  ;;  %v7993_v23 = vld [vmem:[#allocation30_spill] sm:$0xff] }
 0x20e   :  { %v3313_v47 = vor.u32 %v3312_v28, %v3309_v54  ;;  %v3602_v39 = vshrl.u32 %v3477_v5, 16  ;;  %2779 = vst.msk [vmem:[#allocation2 + $0xdc] sm:$0xf] %vm34_vm0, %v5914_v60  ;;  %v3994_v26 = vrot.slane %v3993_v6, 4  ;;  %v3605_v48 = vshll.u32 %v3477_v5, 16 }
 0x20f   :  { %v4297_v11 = vrot.slane %v4295_v7, 7  ;;  %v3615_v57 = vshrl.u32 %v3479_v17, 16  ;;  %v4287_v38 = vor.u32 %v4285_v12, %v4284_v41  ;;  %v3618_v55 = vshll.u32 %v3479_v17, 16  ;;  %v3850_v5 = vld [vmem:[#allocation2 + $0xac] sm:$0xf] }
 0x210   :  { %v3314_v20 = vrot.slane %v3313_v47, 4  ;;  %v3604_v36 = vrot.slane %v3602_v39, 7  ;;  %v3999_v61 = vsel %vm6408_vm11, %v3994_v26, %v7988_v21  ;;  %v4669_v14 = vshrl.u32 %v4540_v50, 16  ;;  %v3168_v9 = vld [vmem:[#allocation2 + $0x94] sm:$0xf] }
 0x211   :  { %v4300_v49 = vor.u32 %v4298_v25, %v4297_v11  ;;  %v3617_v37 = vrot.slane %v3615_v57, 7  ;;  %v5824_v51 = vcombine.low %v3985_v43, %v3999_v61  ;;  %v4288_v13 = vsel %vm6376_vm8, %v7990_v40, %v4287_v38  ;;  %v3170_v12 = vld [vmem:[#allocation2 + $0xa0] sm:$0xf]  ;;  %v4161_v11 = vld [vmem:[#allocation2 + $0xac] sm:$0xf] }
 0x212   :  { %v3319_v29 = vsel %vm6408_vm11, %v3314_v20, %v7989_v33  ;;  %v3607_v22 = vor.u32 %v3605_v48, %v3604_v36  ;;  %v7991_v46 = vsel %vm6408_vm11, %v7058_v32, %v7060_v0  ;;  %v4671_v62 = vrot.slane %v4669_v14, 4  ;;  %v7994_v32 = vld [vmem:[#allocation32_spill] sm:$0xff] }
 0x213   :  { %v5784_v34 = vcombine.low %v7991_v46, %v3319_v29  ;;  %v4301_v30 = vsel %vm6376_vm8, %v7992_v44, %v4300_v49  ;;  %v3620_v56 = vor.u32 %v3618_v55, %v3617_v37  ;;  %4116 = vrot.lane.b32.xlu0 %v5824_v51, %s6264_s11  ;;  %v4672_v35 = vshll.u32 %v4540_v50, 16  ;;  %v6202_v57 = vld [vmem:[#allocation2 + $0xac] ss:$12 sps:$4 sm:$0xff]   ;;  %v3481_v55 = vld [vmem:[#allocation2 + $0xa0] sm:$0xf] }
 0x214   :  { %v5848_v16 = vcombine.low %v4288_v13, %v4301_v30  ;;  %v3608_v63 = vsel %vm6376_vm8, %v7993_v23, %v3607_v22  ;;  %v4683_v17 = vshrl.u32 %v4542_v3, 16  ;;  %v4686_v2 = vshll.u32 %v4542_v3, 16  ;;  %v6203_v61 = vld [vmem:[#allocation2 + $0xac] ss:$12 sps:$4 sm:$0xff]  }
 0x215   :  { %3436 = vrot.lane.b32.xlu1 %v5784_v34, %s6266_s15  ;;  %v3621_v0 = vsel %vm6376_vm8, %v7994_v32, %v3620_v56  ;;  %v4001_v24 = vshrl.u32 %v3848_v59, 16  ;;  %v4004_v18 = vshll.u32 %v3848_v59, 16  ;;  %v4674_v42 = vrot.slane %v4672_v35, 5  ;;  %v4163_v29 = vld [vmem:[#allocation2 + $0xb8] sm:$0xf] }
 0x216   :  { %v5808_v54 = vcombine.low %v3608_v63, %v3621_v0  ;;  %v4685_v28 = vrot.slane %v4683_v17, 4  ;;  %v4015_v1 = vshrl.u32 %v3850_v5, 16  ;;  %v4688_v60 = vrot.slane %v4686_v2, 5  ;;  %v3483_v46 = vld [vmem:[#allocation2 + $0xac] sm:$0xf] }
 0x217   :  { %v4003_v31 = vrot.slane %v4001_v24, 4  ;;  %v4006_v43 = vrot.slane %v4004_v18, 5  ;;  %v4018_v6 = vshll.u32 %v3850_v5, 16  ;;  %4412 = vrot.lane.b32.xlu0 %v5848_v16, %s6266_s15  ;;  %v4675_v7 = vor.u32 %v4674_v42, %v4671_v62  ;;  %v6226_v23 = vld [vmem:[#allocation2 + $0x58] ss:$12 sps:$4 sm:$0xff]  }
 0x218   :  { %v4017_v8 = vrot.slane %v4015_v1, 4  ;;  %v3321_v47 = vshrl.u32 %v3168_v9, 16  ;;  %v3324_v41 = vshll.u32 %v3168_v9, 16  ;;  %v4689_v25 = vor.u32 %v4688_v60, %v4685_v28  ;;  %v4546_v24 = vld [vmem:[#allocation2 + $0xb8] sm:$0xf]  ;;  %3823 = vst.msk [vmem:[#allocation3 + $0x50] sm:$0xff] %vm7915_vm12, %v6226_v23 }
 0x219   :  { %3732 = vrot.lane.b32.xlu1 %v5808_v54, %s6265_s12  ;;  %v4007_v39 = vor.u32 %v4006_v43, %v4003_v31  ;;  %v4020_v50 = vrot.slane %v4018_v6, 5  ;;  %v3335_v26 = vshrl.u32 %v3170_v12, 16  ;;  %v4676_v48 = vrot.slane %v4675_v7, 4  ;;  %v7995_v18 = vld [vmem:[#allocation37_spill] sm:$0xff]  ;;  %v3852_v28 = vld [vmem:[#allocation2 + $0xb8] sm:$0xf] }
 0x21a   :  { %v3323_v20 = vrot.slane %v3321_v47, 4  ;;  %v3326_v38 = vrot.slane %v3324_v41, 5  ;;  %v3338_v36 = vshll.u32 %v3170_v12, 16  ;;  %v4690_v21 = vrot.slane %v4689_v25, 4  ;;  %v6227_v43 = vld [vmem:[#allocation2 + $0x88] ss:$12 sps:$4 sm:$0xff]  }
 0x21b   :  { %v4008_v49 = vrot.slane %v4007_v39, 4  ;;  %v4021_v37 = vor.u32 %v4020_v50, %v4017_v8  ;;  %v3337_v3 = vrot.slane %v3335_v26, 4  ;;  %v4681_v14 = vsel %vm6408_vm11, %v4676_v48, %v7084_v27  ;;  %4502 = vrot.lane.b32.xlu0 %v6202_v57, %s6265_s12  ;;  %v4544_v27 = vld [vmem:[#allocation2 + $0xac] sm:$0xf]  ;;  %v7996_v41 = vld [vmem:[#allocation40_spill] sm:$0xff]  ;;  %3824 = vst.msk [vmem:[#allocation3 + $0x68] sm:$0xff] %vm7915_vm12, %v6227_v43 }
 0x21c   :  { %v3327_v51 = vor.u32 %v3326_v38, %v3323_v20  ;;  %v3340_v33 = vrot.slane %v3338_v36, 5  ;;  %v4308_v40 = vshrl.u32 %v4161_v11, 16  ;;  %v4695_v13 = vsel %vm6408_vm11, %v4690_v21, %v7088_v4  ;;  %v7997_v25 = vld [vmem:[#allocation36_spill] sm:$0xff]  ;;  %v3854_v26 = vld [vmem:[#allocation2 + $0xc4] sm:$0xf] }
 0x21d   :  { %3128 = vrot.lane.b32.xlu1 %v6203_v61, %s6264_s11  ;;  %v4013_v22 = vsel %vm6408_vm11, %v4008_v49, %v7090_v45  ;;  %v4022_v59 = vrot.slane %v4021_v37, 4  ;;  %v4311_v19 = vshll.u32 %v4161_v11, 16  ;;  %v5864_v34 = vcombine.low %v4681_v14, %v4695_v13  ;;  %v3172_v48 = vld [vmem:[#allocation2 + $0xac] sm:$0xf]  ;;  %v7999_v14 = vld [vmem:[#allocation39_spill] sm:$0xff] }
 0x21e   :  { %v3328_v44 = vrot.slane %v3327_v51, 4  ;;  %v3341_v30 = vor.u32 %v3340_v33, %v3337_v3  ;;  %v4310_v56 = vrot.slane %v4308_v40, 7  ;;  %v4321_v5 = vshrl.u32 %v4163_v29, 16  ;;  %v7998_v61 = vld [vmem:[#allocation38_spill] sm:$0xff]  ;;  %v6229_v43 = vld [vmem:[#allocation2 + $0xb8] ss:$12 sps:$4 sm:$0xff]  }
 0x21f   :  { %v4027_v62 = vsel %vm6408_vm11, %v4022_v59, %v7096_v58  ;;  %v4324_v4 = vshll.u32 %v4163_v29, 16  ;;  %v3628_v16 = vshrl.u32 %v3481_v55, 16  ;;  %4816 = vst.msk [vmem:[#allocation3 + $0x70] sm:$0xff] %vm7915_vm12, %v5864_v34  ;;  %v3631_v0 = vshll.u32 %v3481_v55, 16  ;;  %v3174_v55 = vld [vmem:[#allocation2 + $0xb8] sm:$0xf] }
 0x220   :  { %v5825_v63 = vcombine.low %v4013_v22, %v4027_v62  ;;  %v3333_v45 = vsel %vm6408_vm11, %v3328_v44, %v7092_v52  ;;  %v3342_v35 = vrot.slane %v3341_v30, 4  ;;  %v4313_v17 = vor.u32 %v4311_v19, %v4310_v56  ;;  %v6228_v59 = vld [vmem:[#allocation2 + $0xa0] ss:$12 sps:$4 sm:$0xff]   ;;  %v3175_v30 = vld [vmem:[#allocation2 + $0xbc] sm:$0x1]  ;;  %3826 = vst.msk [vmem:[#allocation3 + $0x98] sm:$0xff] %vm7915_vm12, %v6229_v43 }
 0x221   :  { %v4323_v9 = vrot.slane %v4321_v5, 7  ;;  %v3630_v32 = vrot.slane %v3628_v16, 7  ;;  %v3641_v2 = vshrl.u32 %v3483_v46, 16  ;;  %v3644_v52 = vshll.u32 %v3483_v46, 16  ;;  %v4164_v62 = vld [vmem:[#allocation2 + $0xc0] sm:$0x8] }
 0x222   :  { %4118 = vrot.lane.b32.xlu0 %v5825_v63, %s6264_s11  ;;  %v3347_v58 = vsel %vm6408_vm11, %v3342_v35, %v7098_v10  ;;  %v4314_v54 = vsel %vm6376_vm8, %v7995_v18, %v4313_v17  ;;  %v4697_v42 = vshrl.u32 %v4544_v27, 16  ;;  %v4700_v7 = vshll.u32 %v4544_v27, 16  ;;  %v8001_v27 = vld [vmem:[#allocation43_spill] sm:$0xff]  ;;  %3825 = vst.msk [vmem:[#allocation3 + $0x80] sm:$0xff] %vm7915_vm12, %v6228_v59 }
 0x223   :  { %v5785_v1 = vcombine.low %v3333_v45, %v3347_v58  ;;  %v4326_v12 = vor.u32 %v4324_v4, %v4323_v9  ;;  %v3633_v60 = vor.u32 %v3631_v0, %v3630_v32  ;;  %v3643_v31 = vrot.slane %v3641_v2, 7  ;;  %v6204_v16 = vld [vmem:[#allocation2 + $0xc4] ss:$12 sps:$4 sm:$0xff]   ;;  %v8004_v58 = vld [vmem:[#allocation42_spill] sm:$0xff] }
 0x224   :  { %v4699_v6 = vrot.slane %v4697_v42, 4  ;;  %v4711_v8 = vshrl.u32 %v4546_v24, 16  ;;  %v4714_v47 = vshll.u32 %v4546_v24, 16  ;;  %v4029_v11 = vshrl.u32 %v3852_v28, 16  ;;  %v4165_v45 = vld [vmem:[#allocation2 + $0xc4] sm:$0xf] }
 0x225   :  { %3438 = vrot.lane.b32.xlu1 %v5785_v1, %s6266_s15  ;;  %v4327_v10 = vsel %vm6376_vm8, %v7996_v41, %v4326_v12  ;;  %v3634_v39 = vsel %vm6376_vm8, %v7997_v25, %v3633_v60  ;;  %v3646_v50 = vor.u32 %v3644_v52, %v3643_v31  ;;  %v4702_v20 = vrot.slane %v4700_v7, 5  ;;  %v6205_v35 = vld [vmem:[#allocation2 + $0xc4] ss:$12 sps:$4 sm:$0xff]   ;;  %v4166_v42 = vld [vmem:[#allocation2 + $0xcc] sm:$0x8] }
 0x226   :  { %v5849_v57 = vcombine.low %v4314_v54, %v4327_v10  ;;  %v4713_v38 = vrot.slane %v4711_v8, 4  ;;  %v4716_v36 = vrot.slane %v4714_v47, 5  ;;  %v4834_v21 = vld [vmem:[#allocation3 + $0x70] sm:$0xff]  ;;  %v4031_v37 = vrot.slane %v4029_v11, 4  ;;  %v3484_v41 = vld [vmem:[#allocation2 + $0xb4] sm:$0x8] }
 0x227   :  { %v3647_v49 = vsel %vm6376_vm8, %v7998_v61, %v3646_v50  ;;  %v4032_v3 = vshll.u32 %v3852_v28, 16  ;;  %v8000_v51 = vshll.u32 %v7999_v14, 16  ;;  %6102 = vmatprep.mubr.msk.bf16.mxu0 %vm7915_vm12, %v4834_v21  ;;  %v4703_v40 = vor.u32 %v4702_v20, %v4699_v6  ;;  %v8003_v2 = vld [vmem:[#allocation41_spill] sm:$0xff]  ;;  %v4167_v28 = vld [vmem:[#allocation2 + $0xd0] sm:$0xf] }
 0x228   :  { %4414 = vrot.lane.b32.xlu0 %v5849_v57, %s6266_s15  ;;  %v5809_v29 = vcombine.low %v3634_v39, %v3647_v49  ;;  %v4717_v13 = vor.u32 %v4716_v36, %v4713_v38  ;;  %v4043_v22 = vshrl.u32 %v3854_v26, 16  ;;  %v4046_v46 = vshll.u32 %v3854_v26, 16  ;;  %v3486_v26 = vld [vmem:[#allocation2 + $0xc0] sm:$0x8]  ;;  %v6230_v38 = vld [vmem:[#allocation2 + $0xd0] ss:$12 sps:$4 sm:$0xff]  }
 0x229   :  { %v7474_v33 = vrot.slane %v8000_v51, 5  ;;  %v4034_v19 = vrot.slane %v4032_v3, 5  ;;  %v8002_v34 = vshll.u32 %v8001_v27, 16  ;;  %v3349_v56 = vshrl.u32 %v3172_v48, 16  ;;  %v3485_v49 = vld [vmem:[#allocation2 + $0xb8] sm:$0xf] }
 0x22a   :  { %3734 = vrot.lane.b32.xlu1 %v5809_v29, %s6265_s12  ;;  %v4704_v5 = vrot.slane %v4703_v40, 4  ;;  %v4718_v4 = vrot.slane %v4717_v13, 4  ;;  %v4045_v23 = vrot.slane %v4043_v22, 4  ;;  %v3352_v63 = vshll.u32 %v3172_v48, 16  ;;  %v8005_v3 = vld [vmem:[#allocation44_spill] sm:$0xff]  ;;  %v7500_v40 = vpop.permute.xlu1 %3116  ;;  %3827 = vst.msk [vmem:[#allocation3 + $0xb0] sm:$0xff] %vm7915_vm12, %v6230_v38 }
 0x22b   :  { %v4054_v44 = vrot.slane %v8002_v34, 5  ;;  %v4035_v17 = vor.u32 %v4034_v19, %v4031_v37  ;;  %v4048_v9 = vrot.slane %v4046_v46, 5  ;;  %v3351_v32 = vrot.slane %v3349_v56, 4  ;;  %v4168_v29 = vld [vmem:[#allocation2 + $0xd8] sm:$0x8] }
 0x22c   :  { %v3363_v0 = vshrl.u32 %v3174_v55, 16  ;;  %v4709_v24 = vsel %vm6408_vm11, %v4704_v5, %v8003_v2  ;;  %v4723_v18 = vsel %vm6408_vm11, %v4718_v4, %v8004_v58  ;;  %4504 = vrot.lane.b32.xlu0 %v6204_v16, %s6265_s12  ;;  %v3354_v54 = vrot.slane %v3352_v63, 5  ;;  %v3487_v19 = vld [vmem:[#allocation2 + $0xc4] sm:$0xf]  ;;  %v4169_v56 = vld [vmem:[#allocation2 + $0xdc] sm:$0xf] }
 0x22d   :  { %v3366_v52 = vshll.u32 %v3174_v55, 16  ;;  %v5865_v1 = vcombine.low %v4709_v24, %v4723_v18  ;;  %v4036_v12 = vrot.slane %v4035_v17, 4  ;;  %v4049_v60 = vor.u32 %v4048_v9, %v4045_v23  ;;  %v4170_v23 = vld [vmem:[#allocation2 + $0xe4] sm:$0x8]  ;;  %v4171_v63 = vld [vmem:[#allocation2 + $0xe8] sm:$0xf] }
 0x22e   :  { %v3365_v31 = vrot.slane %v3363_v0, 4  ;;  %3130 = vrot.lane.b32.xlu1 %v6205_v35, %s6264_s11  ;;  %v3355_v6 = vor.u32 %v3354_v54, %v3351_v32  ;;  %v3372_v8 = vshll.u32 %v3175_v30, 16  ;;  %v4329_v47 = vshrl.u32 %v4164_v62, 16  ;;  %v7510_v2 = vpop.permute.xlu1 %3118 }
 0x22f   :  { %v3368_v7 = vrot.slane %v3366_v52, 5  ;;  %4817 = vst.msk [vmem:[#allocation3 + $0x88] sm:$0xff] %vm7915_vm12, %v5865_v1  ;;  %v4041_v10 = vsel %vm6408_vm11, %v4036_v12, %v7474_v33  ;;  %v4050_v25 = vrot.slane %v4049_v60, 4  ;;  %v4334_v39 = vshrl.u32 %v4165_v45, 16  ;;  %v3176_v52 = vld [vmem:[#allocation2 + $0xc4] sm:$0xf] }
 0x230   :  { %v4337_v50 = vshll.u32 %v4165_v45, 16  ;;  %v3356_v11 = vrot.slane %v3355_v6, 4  ;;  %v3374_v57 = vrot.slane %v3372_v8, 5  ;;  %v5840_v20 = vrot.slane %v4329_v47, 11  ;;  %v7508_v45 = vpop.permute.xlu0 %4492  ;;  %v3177_v60 = vld [vmem:[#allocation2 + $0xc8] sm:$0x1] }
 0x231   :  { %v3369_v48 = vor.u32 %v3368_v7, %v3365_v31  ;;  %v4055_v36 = vsel %vm6408_vm11, %v4050_v25, %v4054_v44  ;;  %v4336_v55 = vrot.slane %v4334_v39, 7  ;;  %v4342_v21 = vshrl.u32 %v4166_v42, 16  ;;  %v3178_v8 = vld [vmem:[#allocation2 + $0xd0] sm:$0xf] }
 0x232   :  { %v4347_v61 = vshrl.u32 %v4167_v28, 16  ;;  %v5826_v37 = vcombine.low %v4041_v10, %v4055_v36  ;;  %v3361_v14 = vsel %vm6408_vm11, %v3356_v11, %v8005_v3  ;;  %v4350_v33 = vshll.u32 %v4167_v28, 16 }
 0x233   :  { %v3370_v51 = vrot.slane %v3369_v48, 4  ;;  %v4339_v13 = vor.u32 %v4337_v50, %v4336_v55  ;;  %v5841_v22 = vrot.slane %v4342_v21, 11  ;;  %v3649_v46 = vshrl.u32 %v3484_v41, 16  ;;  %v3856_v21 = vld [vmem:[#allocation2 + $0xd0] sm:$0xf] }
 0x234   :  { %v4349_v59 = vrot.slane %v4347_v61, 7  ;;  %4120 = vrot.lane.b32.xlu0 %v5826_v37, %s6264_s11  ;;  %v3654_v34 = vshrl.u32 %v3485_v49, 16  ;;  %v3657_v44 = vshll.u32 %v3485_v49, 16  ;;  %v3662_v30 = vshrl.u32 %v3486_v26, 16  ;;  %v3179_v26 = vld [vmem:[#allocation2 + $0xd4] sm:$0x1] }
 0x235   :  { %v3375_v27 = vsel %vm6408_vm11, %v3370_v51, %v3374_v57  ;;  %v4340_v5 = vsel %vm6376_vm8, %v5840_v20, %v4339_v13  ;;  %v5800_v16 = vrot.slane %v3649_v46, 11  ;;  %v3667_v32 = vshrl.u32 %v3487_v19, 16  ;;  %v3857_v51 = vld [vmem:[#allocation2 + $0xd4] sm:$0x1] }
 0x236   :  { %v5786_v62 = vcombine.low %v3361_v14, %v3375_v27  ;;  %v4352_v4 = vor.u32 %v4350_v33, %v4349_v59  ;;  %v4837_v35 = vld [vmem:[#allocation3 + $0x88] sm:$0xff]  ;;  %v3656_v17 = vrot.slane %v3654_v34, 7  ;;  %v5801_v9 = vrot.slane %v3662_v30, 11  ;;  %v3859_v27 = vld [vmem:[#allocation2 + $0xe0] sm:$0x1] }
 0x237   :  { %v3670_v0 = vshll.u32 %v3487_v19, 16  ;;  %6103 = vmatmul.mubr.msk.bf16.gmra.mrb[40].mxu0 %vm7915_vm12, %v4837_v35  ;;  %v4355_v58 = vshrl.u32 %v4168_v29, 16  ;;  %v4360_v18 = vshrl.u32 %v4169_v56, 16  ;;  %v4363_v54 = vshll.u32 %v4169_v56, 16  ;;  %v3858_v59 = vld [vmem:[#allocation2 + $0xdc] sm:$0xf] }
 0x238   :  { %3440 = vrot.lane.b32.xlu1 %v5786_v62, %s6266_s15  ;;  %v4353_v24 = vsel %vm6376_vm8, %v5841_v22, %v4352_v4  ;;  %v3659_v28 = vor.u32 %v3657_v44, %v3656_v17  ;;  %v3669_v1 = vrot.slane %v3667_v32, 7  ;;  %v4368_v12 = vshrl.u32 %v4170_v23, 16 }
 0x239   :  { %v5850_v42 = vcombine.low %v4340_v5, %v4353_v24  ;;  %v5842_v31 = vrot.slane %v4355_v58, 11  ;;  %v4362_v43 = vrot.slane %v4360_v18, 7  ;;  %v4373_v6 = vshrl.u32 %v4171_v63, 16  ;;  %v4109_v57 = vpop.permute.xlu0 %4108 }
 0x23a   :  { %v4376_v7 = vshll.u32 %v4171_v63, 16  ;;  %v3660_v47 = vsel %vm6376_vm8, %v5800_v16, %v3659_v28  ;;  %v3672_v41 = vor.u32 %v3670_v0, %v3669_v1  ;;  %v5843_v10 = vrot.slane %v4368_v12, 11  ;;  %4132 = vst.msk [vmem:[#allocation3 + $0x8] sm:$0xff] %vm572_vm13, %v4109_v57  ;;  %v3488_v16 = vld [vmem:[#allocation2 + $0xcc] sm:$0x8] }
 0x23b   :  { %4416 = vrot.lane.b32.xlu0 %v5850_v42, %s6266_s15  ;;  %v3377_v25 = vshrl.u32 %v3176_v52, 16  ;;  %v4365_v39 = vor.u32 %v4363_v54, %v4362_v43  ;;  %v4375_v50 = vrot.slane %v4373_v6, 7  ;;  %v3380_v11 = vshll.u32 %v3176_v52, 16  ;;  %v3490_v28 = vld [vmem:[#allocation2 + $0xd8] sm:$0x8] }
 0x23c   :  { %v3386_v48 = vshll.u32 %v3177_v60, 16  ;;  %v3673_v20 = vsel %vm6376_vm8, %v5801_v9, %v3672_v41  ;;  %v3391_v36 = vshrl.u32 %v3178_v8, 16  ;;  %v3394_v55 = vshll.u32 %v3178_v8, 16  ;;  %v7522_v61 = vpop.permute.xlu1 %3428  ;;  %v3489_v9 = vld [vmem:[#allocation2 + $0xd0] sm:$0xf] }
 0x23d   :  { %v3379_v38 = vrot.slane %v3377_v25, 4  ;;  %v5810_v49 = vcombine.low %v3660_v47, %v3673_v20  ;;  %v4366_v37 = vsel %vm6376_vm8, %v5842_v31, %v4365_v39  ;;  %v4378_v3 = vor.u32 %v4376_v7, %v4375_v50  ;;  %v4405_v30 = vpop.permute.xlu0 %4404  ;;  %v3491_v1 = vld [vmem:[#allocation2 + $0xdc] sm:$0xf]  ;;  %v2783_v7 = vld [vmem:[#allocation2 + $0x10] sm:$0xf] }
 0x23e   :  { %v3382_v14 = vrot.slane %v3380_v11, 5  ;;  %v3388_v33 = vrot.slane %v3386_v48, 5  ;;  %v3393_v29 = vrot.slane %v3391_v36, 4  ;;  %v3396_v13 = vrot.slane %v3394_v55, 5  ;;  %4428 = vst.msk [vmem:[#allocation3 + $0x8] sm:$0xff] %vm888_vm14, %v4405_v30 }
 0x23f   :  { %v3400_v22 = vshll.u32 %v3179_v26, 16  ;;  %3736 = vrot.lane.b32.xlu1 %v5810_v49, %s6265_s12  ;;  %v4379_v19 = vsel %vm6376_vm8, %v5843_v10, %v4378_v3  ;;  %v4057_v34 = vshrl.u32 %v3856_v21, 16  ;;  %v4060_v44 = vshll.u32 %v3856_v21, 16  ;;  %4516 = vst.msk [vmem:[#allocation3 + $0x8] sm:$0xff] %vm1185_vm15, %v7508_v45  ;;  %v2784_v25 = vld [vmem:[#allocation2 + $0x18] sm:$0x8] }
 0x240   :  { %v3383_v46 = vor.u32 %v3382_v14, %v3379_v38  ;;  %v5851_v56 = vcombine.low %v4366_v37, %v4379_v19  ;;  %v3397_v62 = vor.u32 %v3396_v13, %v3393_v29  ;;  %v4066_v4 = vshll.u32 %v3857_v51, 16  ;;  %v7532_v32 = vpop.permute.xlu1 %3724  ;;  %v2785_v48 = vld [vmem:[#allocation2 + $0x1c] sm:$0xf]  ;;  %v2786_v55 = vld [vmem:[#allocation2 + $0x24] sm:$0x8] }
 0x241   :  { %v3402_v5 = vrot.slane %v3400_v22, 5  ;;  %v4059_v63 = vrot.slane %v4057_v34, 4  ;;  %v4062_v35 = vrot.slane %v4060_v44, 5  ;;  %v4071_v17 = vshrl.u32 %v3858_v59, 16  ;;  %v7537_v60 = vpop.permute.xlu0 %4494  ;;  %v2787_v13 = vld [vmem:[#allocation2 + $0x28] sm:$0xf] }
 0x242   :  { %v3384_v23 = vrot.slane %v3383_v46, 4  ;;  %4418 = vrot.lane.b32.xlu0 %v5851_v56, %s6266_s15  ;;  %v3398_v0 = vrot.slane %v3397_v62, 4  ;;  %v4068_v24 = vrot.slane %v4066_v4, 5  ;;  %v4074_v58 = vshll.u32 %v3858_v59, 16  ;;  %v2788_v30 = vld [vmem:[#allocation2 + $0x30] sm:$0x8] }
 0x243   :  { %v4080_v18 = vshll.u32 %v3859_v27, 16  ;;  %v4063_v52 = vor.u32 %v4062_v35, %v4059_v63  ;;  %v4073_v42 = vrot.slane %v4071_v17, 4  ;;  %v3675_v12 = vshrl.u32 %v3488_v16, 16  ;;  %v2789_v16 = vld [vmem:[#allocation2 + $0x34] sm:$0xf] }
 0x244   :  { %v3389_v54 = vsel %vm6408_vm11, %v3384_v23, %v3388_v33  ;;  %v3403_v45 = vsel %vm6408_vm11, %v3398_v0, %v3402_v5  ;;  %v4076_v31 = vrot.slane %v4074_v58, 5  ;;  %v3680_v6 = vshrl.u32 %v3489_v9, 16  ;;  %v7544_v21 = vpop.permute.xlu1 %3120  ;;  %v2790_v23 = vld [vmem:[#allocation2 + $0x3c] sm:$0x8]  ;;  %v2791_v0 = vld [vmem:[#allocation2 + $0x40] sm:$0xf] }
 0x245   :  { %v4082_v43 = vrot.slane %v4080_v18, 5  ;;  %v5787_v8 = vcombine.low %v3389_v54, %v3403_v45  ;;  %v4064_v47 = vrot.slane %v4063_v52, 4  ;;  %v5802_v41 = vrot.slane %v3675_v12, 11  ;;  %v8006_v58 = vld [vmem:[#allocation22_spill] sm:$0xff]  ;;  %v8007_v12 = vld [vmem:[#allocation21_spill] sm:$0xff]  ;;  %v8008_v45 = vld [vmem:[#allocation35_spill] sm:$0xff] }
 0x246   :  { %v3683_v10 = vshll.u32 %v3489_v9, 16  ;;  %v4077_v39 = vor.u32 %v4076_v31, %v4073_v42  ;;  %v3682_v50 = vrot.slane %v3680_v6, 7  ;;  %v3688_v26 = vshrl.u32 %v3490_v28, 16  ;;  %v4821_v33 = vld [vmem:[#allocation3 + $0x8] sm:$0xff]  ;;  %v2792_v28 = vld [vmem:[#allocation2 + $0x48] sm:$0x8] }
 0x247   :  { %v3693_v11 = vshrl.u32 %v3491_v1, 16  ;;  %3442 = vrot.lane.b32.xlu1 %v5787_v8, %s6266_s15  ;;  %v4069_v57 = vsel %vm6408_vm11, %v4064_v47, %v4068_v24  ;;  %v3696_v20 = vshll.u32 %v3491_v1, 16  ;;  %v2831_v38 = vshrl.u32 %v2783_v7, 16  ;;  %v4111_v51 = vpop.permute.xlu0 %4110  ;;  %5051 = vmatprep.mubr.bf16.mxu1 %v4821_v33  ;;  %v2793_v1 = vld [vmem:[#allocation2 + $0x4c] sm:$0xf] }
 0x248   :  { %v2834_v36 = vshll.u32 %v2783_v7, 16  ;;  %v4078_v49 = vrot.slane %v4077_v39, 4  ;;  %v3685_v37 = vor.u32 %v3683_v10, %v3682_v50  ;;  %v5803_v3 = vrot.slane %v3688_v26, 11  ;;  %4133 = vst.msk [vmem:[#allocation3 + $0x20] sm:$0xff] %vm572_vm13, %v4111_v51  ;;  %v2794_v47 = vld [vmem:[#allocation2 + $0x54] sm:$0x8] }
 0x249   :  { %v3695_v14 = vrot.slane %v3693_v11, 7  ;;  %v2833_v29 = vrot.slane %v2831_v38, 7  ;;  %v2839_v22 = vshrl.u32 %v2784_v25, 16  ;;  %v2844_v59 = vshrl.u32 %v2785_v48, 16 }
 0x24a   :  { %v2847_v19 = vshll.u32 %v2785_v48, 16  ;;  %v4083_v46 = vsel %vm6408_vm11, %v4078_v49, %v4082_v43  ;;  %v3686_v27 = vsel %vm6376_vm8, %v5802_v41, %v3685_v37  ;;  %v2852_v44 = vshrl.u32 %v2786_v55, 16  ;;  %v3431_v42 = vpop.permute.xlu1 %3430  ;;  %v6206_v41 = vld [vmem:[#allocation2 + $0xdc] ss:$12 sps:$4 sm:$0xff]  }
 0x24b   :  { %v3698_v34 = vor.u32 %v3696_v20, %v3695_v14  ;;  %v5827_v56 = vcombine.low %v4069_v57, %v4083_v46  ;;  %v2836_v62 = vor.u32 %v2834_v36, %v2833_v29  ;;  %v5750_v5 = vrot.slane %v2839_v22, 11  ;;  %v2795_v20 = vld [vmem:[#allocation2 + $0x58] sm:$0xf] }
 0x24c   :  { %v2846_v4 = vrot.slane %v2844_v59, 7  ;;  %v5751_v35 = vrot.slane %v2852_v44, 11  ;;  %v2857_v17 = vshrl.u32 %v2787_v13, 16  ;;  %v2860_v9 = vshll.u32 %v2787_v13, 16 }
 0x24d   :  { %v3699_v63 = vsel %vm6376_vm8, %v5803_v3, %v3698_v34  ;;  %4122 = vrot.lane.b32.xlu0 %v5827_v56, %s6264_s11  ;;  %v2837_v18 = vsel %vm6376_vm8, %v8006_v58, %v2836_v62  ;;  %v2865_v52 = vshrl.u32 %v2788_v30, 16  ;;  %v8009_v31 = vsel %vm6376_vm8, %v8007_v12, %v8008_v45  ;;  %v2796_v3 = vld [vmem:[#allocation2 + $0x78] sm:$0x8]  ;;  %v2799_v30 = vld [vmem:[#allocation2 + $0x88] sm:$0xf] }
 0x24e   :  { %v5811_v24 = vcombine.low %v3686_v27, %v3699_v63  ;;  %v2849_v54 = vor.u32 %v2847_v19, %v2846_v4  ;;  %v5764_v43 = vcombine.low %v8009_v31, %v2837_v18  ;;  %v2859_v6 = vrot.slane %v2857_v17, 7  ;;  %v2798_v27 = vld [vmem:[#allocation2 + $0x84] sm:$0x8]  ;;  %v2800_v4 = vld [vmem:[#allocation2 + $0x90] sm:$0x8] }
 0x24f   :  { %v2870_v7 = vshrl.u32 %v2789_v16, 16  ;;  %v2873_v8 = vshll.u32 %v2789_v16, 16  ;;  %v5752_v25 = vrot.slane %v2865_v52, 11  ;;  %v2878_v39 = vshrl.u32 %v2790_v23, 16  ;;  %v4407_v57 = vpop.permute.xlu0 %4406  ;;  %v2801_v16 = vld [vmem:[#allocation2 + $0x94] sm:$0xf] }
 0x250   :  { %3738 = vrot.lane.b32.xlu1 %v5811_v24, %s6265_s12  ;;  %v2850_v10 = vsel %vm6376_vm8, %v5750_v5, %v2849_v54  ;;  %v2883_v50 = vshrl.u32 %v2791_v0, 16  ;;  %3052 = vst.msk [vmem:[#allocation3] sm:$0xff] %vm7915_vm12, %v5764_v43  ;;  %v2862_v26 = vor.u32 %v2860_v9, %v2859_v6  ;;  %v2886_v48 = vshll.u32 %v2791_v0, 16  ;;  %v2802_v54 = vld [vmem:[#allocation2 + $0x9c] sm:$0x8] }
 0x251   :  { %v2872_v11 = vrot.slane %v2870_v7, 7  ;;  %v2891_v38 = vshrl.u32 %v2792_v28, 16  ;;  %4506 = vrot.lane.b32.xlu0 %v6206_v41, %s6265_s12  ;;  %3140 = vst.msk [vmem:[#allocation3] sm:$0xff] %vm572_vm13, %v7500_v40  ;;  %v5753_v36 = vrot.slane %v2878_v39, 11  ;;  %v2896_v49 = vshrl.u32 %v2793_v1, 16 }
 0x252   :  { %v2885_v55 = vrot.slane %v2883_v50, 7  ;;  %4429 = vst.msk [vmem:[#allocation3 + $0x20] sm:$0xff] %vm888_vm14, %v4407_v57  ;;  %v2899_v37 = vshll.u32 %v2793_v1, 16  ;;  %v2863_v14 = vsel %vm6376_vm8, %v5751_v35, %v2862_v26  ;;  %3452 = vst.msk [vmem:[#allocation3] sm:$0xff] %vm888_vm14, %v7522_v61  ;;  %v2904_v29 = vshrl.u32 %v2794_v47, 16  ;;  %v3727_v59 = vpop.permute.xlu1 %3726 }
 0x253   :  { %v2875_v51 = vor.u32 %v2873_v8, %v2872_v11  ;;  %4517 = vst.msk [vmem:[#allocation3 + $0x20] sm:$0xff] %vm1185_vm15, %v7537_v60  ;;  %v5754_v33 = vrot.slane %v2891_v38, 11  ;;  %v2797_v40 = vld [vmem:[#allocation2 + $0x7c] sm:$0xf]  ;;  %v5765_v13 = vcombine.low %v2850_v10, %v2863_v14  ;;  %3748 = vst.msk [vmem:[#allocation3] sm:$0xff] %vm1185_vm15, %v7532_v32  ;;  %v2898_v19 = vrot.slane %v2896_v49, 7  ;;  %v7586_v9 = vpop.permute.xlu0 %4496 }
 0x254   :  { %v2888_v22 = vor.u32 %v2886_v48, %v2885_v55  ;;  %v2909_v46 = vshrl.u32 %v2795_v20, 16  ;;  %v5755_v61 = vrot.slane %v2904_v29, 11  ;;  %v2912_v44 = vshll.u32 %v2795_v20, 16  ;;  %v2803_v52 = vld [vmem:[#allocation2 + $0xa0] sm:$0xf] }
 0x255   :  { %v2876_v34 = vsel %vm6376_vm8, %v5752_v25, %v2875_v51  ;;  %v2917_v56 = vshrl.u32 %v2796_v3, 16  ;;  %3053 = vst.msk [vmem:[#allocation3 + $0x18] sm:$0xff] %vm7915_vm12, %v5765_v13  ;;  %v2901_v62 = vor.u32 %v2899_v37, %v2898_v19  ;;  %v2922_v32 = vshrl.u32 %v2797_v40, 16  ;;  %v2804_v45 = vld [vmem:[#allocation2 + $0xa8] sm:$0x8]  ;;  %v6237_v38 = vld [vmem:[%s7906_s3 + $0x80] sm:$0xff]  }
 0x256   :  { %v2889_v60 = vsel %vm6376_vm8, %v5753_v36, %v2888_v22  ;;  %v2911_v5 = vrot.slane %v2909_v46, 7  ;;  %3141 = vst.msk [vmem:[#allocation3 + $0x18] sm:$0xff] %vm572_vm13, %v7510_v2  ;;  %v2925_v35 = vshll.u32 %v2797_v40, 16  ;;  %v2930_v17 = vshrl.u32 %v2798_v27, 16  ;;  %v3123_v31 = vpop.permute.xlu1 %3122  ;;  %v2805_v47 = vld [vmem:[#allocation2 + $0xac] sm:$0xf] }
 0x257   :  { %v5766_v23 = vcombine.low %v2876_v34, %v2889_v60  ;;  %v5756_v63 = vrot.slane %v2917_v56, 11  ;;  %3453 = vst.msk [vmem:[#allocation3 + $0x18] sm:$0xff] %vm888_vm14, %v3431_v42  ;;  %v2902_v0 = vsel %vm6376_vm8, %v5754_v33, %v2901_v62  ;;  %v2924_v58 = vrot.slane %v2922_v32, 7  ;;  %v2806_v26 = vld [vmem:[#allocation2 + $0xb4] sm:$0x8]  ;;  %v7603_v14 = vpop.permute.xlu0 %4498  ;;  %v6238_v22 = vld [vmem:[%s7906_s3 + $0x88] sm:$0xff]  }
 0x258   :  { %v2914_v24 = vor.u32 %v2912_v44, %v2911_v5  ;;  %v2935_v18 = vshrl.u32 %v2799_v30, 16  ;;  %3749 = vst.msk [vmem:[#allocation3 + $0x18] sm:$0xff] %vm1185_vm15, %v3727_v59  ;;  %v5757_v2 = vrot.slane %v2930_v17, 11  ;;  %v2938_v28 = vshll.u32 %v2799_v30, 16  ;;  %v2807_v20 = vld [vmem:[#allocation2 + $0xb8] sm:$0xf] }
 0x259   :  { %3054 = vst.msk [vmem:[#allocation3 + $0x30] sm:$0xff] %vm7915_vm12, %v5766_v23  ;;  %v2943_v1 = vshrl.u32 %v2800_v4, 16  ;;  %v2948_v12 = vshrl.u32 %v2801_v16, 16  ;;  %v2927_v6 = vor.u32 %v2925_v35, %v2924_v58  ;;  %v2951_v8 = vshll.u32 %v2801_v16, 16  ;;  %v2808_v3 = vld [vmem:[#allocation2 + $0xc0] sm:$0x8] }
 0x25a   :  { %3142 = vst.msk [vmem:[#allocation3 + $0x30] sm:$0xff] %vm572_vm13, %v7544_v21  ;;  %v2915_v42 = vsel %vm6376_vm8, %v5755_v61, %v2914_v24  ;;  %v4824_v43 = vld [vmem:[#allocation3 + $0x20] sm:$0xff]  ;;  %v2937_v7 = vrot.slane %v2935_v18, 7  ;;  %v2956_v50 = vshrl.u32 %v2802_v54, 16  ;;  %v2961_v48 = vshrl.u32 %v2803_v52, 16 }
 0x25b   :  { %v4820_v41 = vld [vmem:[#allocation3] sm:$0xff]  ;;  %v5767_v10 = vcombine.low %v2902_v0, %v2915_v42  ;;  %v5758_v25 = vrot.slane %v2943_v1, 11  ;;  %v2950_v39 = vrot.slane %v2948_v12, 7  ;;  %v2928_v11 = vsel %vm6376_vm8, %v5756_v63, %v2927_v6  ;;  %v2809_v13 = vld [vmem:[#allocation2 + $0xc4] sm:$0xf] }
 0x25c   :  { %5052 = vmatmul.mubr.bf16.vlgmr.msra.gmra.mrb[16].mxu1 %v4820_v41  ;;  %v2940_v21 = vor.u32 %v2938_v28, %v2937_v7  ;;  %v2964_v57 = vshll.u32 %v2803_v52, 16  ;;  %v5759_v55 = vrot.slane %v2956_v50, 11  ;;  %v2969_v49 = vshrl.u32 %v2804_v45, 16  ;;  %v2810_v34 = vld [vmem:[#allocation2 + $0xcc] sm:$0x8] }
 0x25d   :  { %3055 = vst.msk [vmem:[#allocation3 + $0x48] sm:$0xff] %vm7915_vm12, %v5767_v10  ;;  %5059 = vmatprep.mubr.bf16.mxu1 %v4824_v43  ;;  %6134 = vmatpush3.bf16.msra.mxu1 %v6237_v38  ;;  %v2953_v36 = vor.u32 %v2951_v8, %v2950_v39  ;;  %v2974_v37 = vshrl.u32 %v2805_v47, 16  ;;  %v2963_v33 = vrot.slane %v2961_v48, 7  ;;  %v2977_v29 = vshll.u32 %v2805_v47, 16  ;;  %v2811_v61 = vld [vmem:[#allocation2 + $0xd0] sm:$0xf] }
 0x25e   :  { %3143 = vst.msk [vmem:[#allocation3 + $0x48] sm:$0xff] %vm572_vm13, %v3123_v31  ;;  %v2941_v51 = vsel %vm6376_vm8, %v5757_v2, %v2940_v21  ;;  %v2982_v40 = vshrl.u32 %v2806_v26, 16  ;;  %6133 = vmatprep.subr.bf16.mxu1 %v6238_v22  ;;  %v5760_v46 = vrot.slane %v2969_v49, 11  ;;  %v3433_v44 = vpop.permute.xlu1 %3432  ;;  %v2987_v60 = vshrl.u32 %v2807_v20, 16  ;;  %v4548_v23 = vld [vmem:[#allocation2 + $0xc4] sm:$0xf] }
 0x25f   :  { %v5768_v59 = vcombine.low %v2928_v11, %v2941_v51  ;;  %v2954_v19 = vsel %vm6376_vm8, %v5758_v25, %v2953_v36  ;;  %v2976_v27 = vrot.slane %v2974_v37, 7  ;;  %v2966_v30 = vor.u32 %v2964_v57, %v2963_v33  ;;  %3454 = vst.msk [vmem:[#allocation3 + $0x30] sm:$0xff] %vm888_vm14, %v3433_v44  ;;  %v4549_v24 = vld [vmem:[#allocation2 + $0xc8] sm:$0x1]  ;;  %v4550_v28 = vld [vmem:[#allocation2 + $0xd0] sm:$0xf] }
 0x260   :  { %v5761_v56 = vrot.slane %v2982_v40, 11  ;;  %v2990_v62 = vshll.u32 %v2807_v20, 16  ;;  %v2995_v32 = vshrl.u32 %v2808_v3, 16  ;;  %v3000_v4 = vshrl.u32 %v2809_v13, 16  ;;  %v4823_v58 = vld [vmem:[#allocation3 + $0x18] sm:$0xff] }
 0x261   :  { %3056 = vst.msk [vmem:[#allocation3 + $0x60] sm:$0xff] %vm7915_vm12, %v5768_v59  ;;  %v2979_v5 = vor.u32 %v2977_v29, %v2976_v27  ;;  %v3003_v16 = vshll.u32 %v2809_v13, 16  ;;  %6135 = vmatpush3.bf16.msra.mxu1 %v6238_v22  ;;  %v2967_v63 = vsel %vm6376_vm8, %v5759_v55, %v2966_v30  ;;  %v2989_v35 = vrot.slane %v2987_v60, 7  ;;  %v4551_v25 = vld [vmem:[#allocation2 + $0xd4] sm:$0x1] }
 0x262   :  { %v3008_v17 = vshrl.u32 %v2810_v34, 16  ;;  %v3013_v0 = vshrl.u32 %v2811_v61, 16  ;;  %v5769_v18 = vcombine.low %v2954_v19, %v2967_v63  ;;  %v5762_v52 = vrot.slane %v2995_v32, 11  ;;  %v4113_v1 = vpop.permute.xlu0 %4112  ;;  %v4552_v26 = vld [vmem:[#allocation2 + $0xdc] sm:$0xf] }
 0x263   :  { %v2980_v54 = vsel %vm6376_vm8, %v5760_v46, %v2979_v5  ;;  %v3002_v2 = vrot.slane %v3000_v4, 7  ;;  %v2992_v12 = vor.u32 %v2990_v62, %v2989_v35  ;;  %v3016_v31 = vshll.u32 %v2811_v61, 16  ;;  %4134 = vst.msk [vmem:[#allocation3 + $0x38] sm:$0xff] %vm572_vm13, %v4113_v1  ;;  %v3729_v43 = vpop.permute.xlu1 %3728  ;;  %v4553_v20 = vld [vmem:[#allocation2 + $0xe0] sm:$0x1] }
 0x264   :  { %5060 = vmatmul.mubr.bf16.gmra.mrb[20].mxu1 %v4823_v58  ;;  %v5763_v45 = vrot.slane %v3008_v17, 11  ;;  %v3015_v42 = vrot.slane %v3013_v0, 7  ;;  %3057 = vst.msk [vmem:[#allocation3 + $0x78] sm:$0xff] %vm7915_vm12, %v5769_v18  ;;  %v4725_v7 = vshrl.u32 %v4548_v23, 16  ;;  %v4728_v8 = vshll.u32 %v4548_v23, 16 }
 0x265   :  { %v3005_v6 = vor.u32 %v3003_v16, %v3002_v2  ;;  %v4734_v47 = vshll.u32 %v4549_v24, 16  ;;  %3750 = vst.msk [vmem:[#allocation3 + $0x30] sm:$0xff] %vm1185_vm15, %v3729_v43  ;;  %v2993_v41 = vsel %vm6376_vm8, %v5761_v56, %v2992_v12  ;;  %v4739_v39 = vshrl.u32 %v4550_v28, 16  ;;  %v4554_v38 = vld [vmem:[#allocation2 + $0xe8] sm:$0xf] }
 0x266   :  { %v3018_v10 = vor.u32 %v3016_v31, %v3015_v42  ;;  %v4742_v50 = vshll.u32 %v4550_v28, 16  ;;  %v5770_v11 = vcombine.low %v2980_v54, %v2993_v41  ;;  %v4727_v48 = vrot.slane %v4725_v7, 4  ;;  %v4555_v22 = vld [vmem:[#allocation2 + $0xec] sm:$0x1] }
 0x267   :  { %v3006_v21 = vsel %vm6376_vm8, %v5762_v52, %v3005_v6  ;;  %v4730_v57 = vrot.slane %v4728_v8, 5  ;;  %v4736_v55 = vrot.slane %v4734_v47, 5  ;;  %v4741_v49 = vrot.slane %v4739_v39, 4  ;;  %v3125_v3 = vpop.permute.xlu1 %3124 }
 0x268   :  { %v3019_v36 = vsel %vm6376_vm8, %v5763_v45, %v3018_v10  ;;  %v4744_v37 = vrot.slane %v4742_v50, 5  ;;  %3058 = vst.msk [vmem:[#allocation3 + $0x90] sm:$0xff] %vm7915_vm12, %v5770_v11  ;;  %v4748_v29 = vshll.u32 %v4551_v25, 16  ;;  %v4753_v40 = vshrl.u32 %v4552_v26, 16 }
 0x269   :  { %v5771_v51 = vcombine.low %v3006_v21, %v3019_v36  ;;  %v4731_v33 = vor.u32 %v4730_v57, %v4727_v48  ;;  %3144 = vst.msk [vmem:[#allocation3 + $0x60] sm:$0xff] %vm572_vm13, %v3125_v3  ;;  %v4756_v59 = vshll.u32 %v4552_v26, 16  ;;  %v4762_v19 = vshll.u32 %v4553_v20, 16 }
 0x26a   :  { %v4745_v13 = vor.u32 %v4744_v37, %v4741_v49  ;;  %v4767_v46 = vshrl.u32 %v4554_v38, 16  ;;  %v4750_v27 = vrot.slane %v4748_v29, 5  ;;  %v4755_v34 = vrot.slane %v4753_v40, 4 }
 0x26b   :  { %3059 = vst.msk [vmem:[#allocation3 + $0xa8] sm:$0xff] %vm7915_vm12, %v5771_v51  ;;  %v4732_v53 = vrot.slane %v4731_v33, 4  ;;  %v4770_v61 = vshll.u32 %v4554_v38, 16  ;;  %v4758_v30 = vrot.slane %v4756_v59, 5  ;;  %v4409_v60 = vpop.permute.xlu0 %4408  ;;  %v4776_v5 = vshll.u32 %v4555_v22, 16 }
 0x26c   :  { %v4746_v44 = vrot.slane %v4745_v13, 4  ;;  %v4769_v56 = vrot.slane %v4767_v46, 4  ;;  %4430 = vst.msk [vmem:[#allocation3 + $0x38] sm:$0xff] %vm888_vm14, %v4409_v60  ;;  %v4764_v23 = vrot.slane %v4762_v19, 5  ;;  %vm6268_vm0 = vmmov 0  }
 0x26d   :  { %v4772_v62 = vrot.slane %v4770_v61, 5  ;;  %v4737_v32 = vsel %vm6408_vm11, %v4732_v53, %v4736_v55  ;;  %v4759_v16 = vor.u32 %v4758_v30, %v4755_v34  ;;  %4518 = vst.msk [vmem:[#allocation3 + $0x38] sm:$0xff] %vm1185_vm15, %v7586_v9  ;;  %v4778_v17 = vrot.slane %v4776_v5, 5  ;;  %v4826_v9 = vld [vmem:[#allocation3 + $0x30] sm:$0xff] }
 0x26e   :  { %v4751_v4 = vsel %vm6408_vm11, %v4746_v44, %v4750_v27  ;;  %vm5264_vm8 = vcmask 1041409  }
 0x26f   :  { %v5866_v63 = vcombine.low %v4737_v32, %v4751_v4  ;;  %v4773_v35 = vor.u32 %v4772_v62, %v4769_v56  ;;  %v4760_v0 = vrot.slane %v4759_v16, 4  ;;  %v7685_v16 = vld [vmem:[%s7907_s4] ss:$0 sm:$0xff] }
 0x271   :  { %4818 = vst.msk [vmem:[#allocation3 + $0xa0] sm:$0xff] %vm7915_vm12, %v5866_v63  ;;  %v4774_v24 = vrot.slane %v4773_v35, 4  ;;  %v4765_v58 = vsel %vm6408_vm11, %v4760_v0, %v4764_v23 }
 0x272   :  { %v4411_v52 = vpop.permute.xlu0 %4410 }
 0x273   :  { %v4779_v18 = vsel %vm6408_vm11, %v4774_v24, %v4778_v17  ;;  %vm5344_vm11 = vcmask 1041408  }
 0x274   :  { %v5867_v54 = vcombine.low %v4765_v58, %v4779_v18  ;;  %v4827_v2 = vld [vmem:[#allocation3 + $0x38] sm:$0xff] }
 0x275   :  { %5067 = vmatprep.mubr.bf16.mxu1 %v4827_v2 }
 0x276   :  { %4819 = vst.msk [vmem:[#allocation3 + $0xb8] sm:$0xff] %vm7915_vm12, %v5867_v54  ;;  %5068 = vmatmul.mubr.bf16.gmra.mrb[24].mxu1 %v4826_v9 }
 0x277   :  { %v3435_v28 = vpop.permute.xlu1 %3434 }
 0x278   :  { %3455 = vst.msk [vmem:[#allocation3 + $0x48] sm:$0xff] %vm888_vm14, %v3435_v28  ;;  %v4840_v27 = vld [vmem:[#allocation3 + $0xa0] sm:$0xff] }
 0x27a   :  { %v4115_v1 = vpop.permute.xlu0 %4114 }
 0x27b   :  { %4135 = vst.msk [vmem:[#allocation3 + $0x50] sm:$0xff] %vm572_vm13, %v4115_v1  ;;  %v3731_v12 = vpop.permute.xlu1 %3730 }
 0x27c   :  { %4431 = vst.msk [vmem:[#allocation3 + $0x50] sm:$0xff] %vm888_vm14, %v4411_v52 }
 0x27d   :  { %3751 = vst.msk [vmem:[#allocation3 + $0x48] sm:$0xff] %vm1185_vm15, %v3731_v12  ;;  %4519 = vst.msk [vmem:[#allocation3 + $0x50] sm:$0xff] %vm1185_vm15, %v7603_v14  ;;  %v4843_v34 = vld [vmem:[#allocation3 + $0xb8] sm:$0xff] }
 0x27e   :  { %v4501_v15 = vpop.permute.xlu0 %4500 }
 0x27f   :  { %v3127_v45 = vpop.permute.xlu1 %3126 }
 0x280   :  { %3145 = vst.msk [vmem:[#allocation3 + $0x78] sm:$0xff] %vm572_vm13, %v3127_v45  ;;  %v5258_v45 = vld [vmem:[%s7908_s5] sm:$0xff] }
 0x284   :  { %v4830_v42 = vld [vmem:[#allocation3 + $0x50] sm:$0xff]  ;;  %v4829_v43 = vld [vmem:[#allocation3 + $0x48] sm:$0xff] }
 0x285   :  { %v4117_v31 = vpop.permute.xlu0 %4116  ;;  %5075 = vmatprep.mubr.bf16.mxu1 %v4830_v42  ;;  %v5259_v42 = vld [vmem:[%s7908_s5 + $0x8] sm:$0xff] }
 0x286   :  { %4136 = vst.msk [vmem:[#allocation3 + $0x68] sm:$0xff] %vm572_vm13, %v4117_v31  ;;  %5076 = vmatmul.mubr.bf16.gmra.mrb[28].mxu1 %v4829_v43  ;;  %v5260_v31 = vld [vmem:[%s7908_s5 + $0x10] sm:$0xff] }
 0x287   :  { %v3437_v6 = vpop.permute.xlu1 %3436 }
 0x288   :  { %3456 = vst.msk [vmem:[#allocation3 + $0x60] sm:$0xff] %vm888_vm14, %v3437_v6 }
 0x289   :  { %v4413_v7 = vpop.permute.xlu0 %4412 }
 0x28a   :  { %4432 = vst.msk [vmem:[#allocation3 + $0x68] sm:$0xff] %vm888_vm14, %v4413_v7  ;;  %v6267_v7 = vmov 0.0|0.0  }
 0x28b   :  { %v3733_v8 = vpop.permute.xlu1 %3732  ;;  %4520 = vst.msk [vmem:[#allocation3 + $0x68] sm:$0xff] %vm1185_vm15, %v4501_v15  ;;  %6126 = vmatprep.subr.bf16.mxu1 %v6267_v7 }
 0x28c   :  { %3752 = vst.msk [vmem:[#allocation3 + $0x60] sm:$0xff] %vm1185_vm15, %v3733_v8  ;;  %v6127_v8 = vpack.c.bf16 %v5259_v42, %v5258_v45 }
 0x28d   :  { %v4503_v14 = vpop.permute.xlu0 %4502 }
 0x28f   :  { %v3129_v47 = vpop.permute.xlu1 %3128 }
 0x290   :  { %3146 = vst.msk [vmem:[#allocation3 + $0x90] sm:$0xff] %vm572_vm13, %v3129_v47  ;;  %v6269_v47 = vmov 0.0  }
 0x292   :  { %v4833_v41 = vld [vmem:[#allocation3 + $0x68] sm:$0xff] }
 0x293   :  { %5083 = vmatprep.mubr.bf16.mxu1 %v4833_v41  ;;  %v4832_v25 = vld [vmem:[#allocation3 + $0x60] sm:$0xff] }
 0x294   :  { %v4119_v10 = vpop.permute.xlu0 %4118  ;;  %5084 = vmatmul.mubr.bf16.gmra.mrb[32].mxu1 %v4832_v25 }
 0x295   :  { %4137 = vst.msk [vmem:[#allocation3 + $0x80] sm:$0xff] %vm572_vm13, %v4119_v10 }
 0x297   :  { %v3439_v39 = vpop.permute.xlu1 %3438 }
 0x298   :  { %3457 = vst.msk [vmem:[#allocation3 + $0x78] sm:$0xff] %vm888_vm14, %v3439_v39 }
 0x29a   :  { %v4415_v50 = vpop.permute.xlu0 %4414 }
 0x29b   :  { %4433 = vst.msk [vmem:[#allocation3 + $0x80] sm:$0xff] %vm888_vm14, %v4415_v50 }
 0x29c   :  { %4521 = vst.msk [vmem:[#allocation3 + $0x80] sm:$0xff] %vm1185_vm15, %v4503_v14  ;;  %v3735_v26 = vpop.permute.xlu1 %3734  ;;  %v5261_v14 = vld [vmem:[%s7908_s5 + $0x18] sm:$0xff] }
 0x29d   :  { %3753 = vst.msk [vmem:[#allocation3 + $0x78] sm:$0xff] %vm1185_vm15, %v3735_v26  ;;  %v6130_v10 = vpack.c.bf16 %v5261_v14, %v5260_v31 }
 0x29e   :  { %v4505_v11 = vpop.permute.xlu0 %4504 }
 0x2a0   :  { %v3131_v21 = vpop.permute.xlu1 %3130 }
 0x2a1   :  { %3147 = vst.msk [vmem:[#allocation3 + $0xa8] sm:$0xff] %vm572_vm13, %v3131_v21 }
 0x2a3   :  { %v4836_v48 = vld [vmem:[#allocation3 + $0x80] sm:$0xff] }
 0x2a4   :  { %5091 = vmatprep.mubr.bf16.mxu1 %v4836_v48  ;;  %v4835_v57 = vld [vmem:[#allocation3 + $0x78] sm:$0xff] }
 0x2a5   :  { %5092 = vmatmul.mubr.bf16.gmra.mrb[36].mxu1 %v4835_v57 }
 0x2a6   :  { %v4121_v20 = vpop.permute.xlu0 %4120 }
 0x2a7   :  { %4138 = vst.msk [vmem:[#allocation3 + $0x98] sm:$0xff] %vm572_vm13, %v4121_v20 }
 0x2aa   :  { %v3441_v38 = vpop.permute.xlu1 %3440 }
 0x2ab   :  { %3458 = vst.msk [vmem:[#allocation3 + $0x90] sm:$0xff] %vm888_vm14, %v3441_v38 }
 0x2ad   :  { %v4417_v36 = vpop.permute.xlu0 %4416 }
 0x2ae   :  { %4434 = vst.msk [vmem:[#allocation3 + $0x98] sm:$0xff] %vm888_vm14, %v4417_v36 }
 0x2af   :  { %4522 = vst.msk [vmem:[#allocation3 + $0x98] sm:$0xff] %vm1185_vm15, %v4505_v11 }
 0x2b1   :  { %v3737_v55 = vpop.permute.xlu1 %3736 }
 0x2b2   :  { %3754 = vst.msk [vmem:[#allocation3 + $0x90] sm:$0xff] %vm1185_vm15, %v3737_v55 }
 0x2b4   :  { %v4419_v37 = vpop.permute.xlu0 %4418 }
 0x2b6   :  { %v4839_v49 = vld [vmem:[#allocation3 + $0x98] sm:$0xff] }
 0x2b7   :  { %5099 = vmatprep.mubr.bf16.mxu1 %v4839_v49 }
 0x2b9   :  { %v3443_v3 = vpop.permute.xlu1 %3442  ;;  %v4838_v51 = vld [vmem:[#allocation3 + $0x90] sm:$0xff] }
 0x2ba   :  { %3459 = vst.msk [vmem:[#allocation3 + $0xa8] sm:$0xff] %vm888_vm14, %v3443_v3  ;;  %5100 = vmatmul.mubr.bf16.gmra.mrb[40].mxu1 %v4838_v51 }
 0x2bf   :  { %v4123_v33 = vpop.permute.xlu0 %4122 }
 0x2c0   :  { %4139 = vst.msk [vmem:[#allocation3 + $0xb0] sm:$0xff] %vm572_vm13, %v4123_v33  ;;  %vm5340_vm13 = vcmask 15360  }
 0x2c1   :  { %4435 = vst.msk [vmem:[#allocation3 + $0xb0] sm:$0xff] %vm888_vm14, %v4419_v37 }
 0x2c2   :  { %v3739_v29 = vpop.permute.xlu1 %3738 }
 0x2c3   :  { %3755 = vst.msk [vmem:[#allocation3 + $0xa8] sm:$0xff] %vm1185_vm15, %v3739_v29  ;;  %v4507_v40 = vpop.permute.xlu0 %4506  ;;  %v6096_v13 = vpop.f32.mrb[32].mxu0 }
 0x2c4   :  { %4523 = vst.msk [vmem:[#allocation3 + $0xb0] sm:$0xff] %vm1185_vm15, %v4507_v40  ;;  %v5150_v22 = vpop.f32.mrb[33].mxu0 }
 0x2c5   :  { %v6097_v59 = vpop.f32.mrb[34].mxu0 }
 0x2c6   :  { %v5153_v19 = vpop.f32.mrb[35].mxu0 }
 0x2ca   :  { %v4841_v53 = vld [vmem:[#allocation3 + $0xa8] sm:$0xff] }
 0x2cb   :  { %v4842_v46 = vld [vmem:[#allocation3 + $0xb0] sm:$0xff] }
 0x2cc   :  { %5107 = vmatprep.mubr.bf16.mxu1 %v4842_v46 }
 0x2cd   :  { %5108 = vmatmul.mubr.bf16.gmra.mrb[44].mxu1 %v4841_v53 }
 0x2ce   :  { %6106 = vmatprep.mubr.msk.bf16.mxu1 %vm7915_vm12, %v4840_v27 }
 0x2d5   :  { %6107 = vmatmul.mubr.msk.bf16.vlgmr.msra.gmra.mrb[48].mxu1 %vm7915_vm12, %v4843_v34 }
 0x2d6   :  { %6118 = vmatprep.mubr.msk.f32.mxu1 %vm6268_vm0, %v6269_v47  ;;  %6128 = vmatpush3.bf16.msra.mxu1 %v6127_v8 }
 0x2d7   :  { %6129 = vmatprep.subr.bf16.mxu1 %v6267_v7 }
 0x2d8   :  { %v6100_v61 = vpop.f32.mrb[36].mxu0 }
 0x2d9   :  { %v5166_v44 = vpop.f32.mrb[37].mxu0 }
 0x2da   :  { %v6101_v30 = vpop.f32.mrb[38].mxu0  ;;  %6131 = vmatpush3.bf16.msra.mxu1 %v6130_v10 }
 0x2db   :  { %v5169_v56 = vpop.f32.mrb[39].mxu0  ;;  %6121 = vmatprep.subr.mxu1 %v6269_v47 }
 0x30a   :  { %v7674_v60 = vpop.f32.mrb[40].mxu0 }
 0x30b   :  { %v7676_v62 = vpop.f32.mrb[41].mxu0 }
 0x30c   :  { %v7678_v5 = vpop.f32.mrb[42].mxu0 }
 0x30d   :  { %v7680_v32 = vpop.f32.mrb[43].mxu0 }
 0x32f   :  { %v6005_v4 = vpop.f32.mrb[16].mxu1 }
 0x330   :  { %v6006_v23 = vpop.f32.mrb[17].mxu1 }
 0x331   :  { %v6007_v63 = vadd.f32 %v6006_v23, %v6005_v4  ;;  %v6008_v35 = vpop.f32.mrb[18].mxu1 }
 0x332   :  { %v6009_v17 = vpop.f32.mrb[19].mxu1 }
 0x333   :  { %v5054_v0 = vadd.f32 %v6007_v63, %v7685_v16  ;;  %v6010_v24 = vadd.f32 %v6009_v17, %v6008_v35 }
 0x335   :  { %v7688_v58 = vadd.f32 %v5150_v22, %v5054_v0  ;;  %v5057_v18 = vadd.f32 %v6010_v24, %v7685_v16 }
 0x337   :  { %v7691_v54 = vadd.f32 %v5153_v19, %v5057_v18  ;;  %v6011_v52 = vpop.f32.mrb[20].mxu1 }
 0x338   :  { %v6012_v2 = vpop.f32.mrb[21].mxu1 }
 0x339   :  { %v6013_v9 = vadd.f32 %v6012_v2, %v6011_v52  ;;  %v6014_v28 = vpop.f32.mrb[22].mxu1 }
 0x33a   :  { %v6015_v1 = vpop.f32.mrb[23].mxu1 }
 0x33b   :  { %v5062_v12 = vadd.f32 %v6013_v9, %v7685_v16  ;;  %v6016_v15 = vadd.f32 %v6015_v1, %v6014_v28  ;;  %v5214_v28 = vsel %vm7915_vm12, %v7691_v54, 0.0 }
 0x33d   :  { %v7703_v43 = vadd.f32 %v6096_v13, %v5062_v12  ;;  %v5065_v6 = vadd.f32 %v6016_v15, %v7685_v16  ;;  %v5213_v15 = vsel %vm7915_vm12, %v7688_v58, 0.0 }
 0x33e   :  { %v5215_v45 = vadd.f32 %v5214_v28, %v5213_v15 }
 0x33f   :  { %v7711_v41 = vadd.f32 %v6097_v59, %v5065_v6 }
 0x349   :  { %v6017_v25 = vpop.f32.mrb[24].mxu1 }
 0x34a   :  { %v6018_v39 = vpop.f32.mrb[25].mxu1 }
 0x34b   :  { %v6019_v50 = vadd.f32 %v6018_v39, %v6017_v25  ;;  %v6020_v26 = vpop.f32.mrb[26].mxu1 }
 0x34c   :  { %v6021_v11 = vpop.f32.mrb[27].mxu1 }
 0x34d   :  { %v5070_v21 = vadd.f32 %v6019_v50, %v7685_v16  ;;  %v6022_v48 = vadd.f32 %v6021_v11, %v6020_v26 }
 0x34f   :  { %v7715_v57 = vadd.f32 %v5166_v44, %v5070_v21  ;;  %v5073_v20 = vadd.f32 %v6022_v48, %v7685_v16 }
 0x351   :  { %v7718_v38 = vadd.f32 %v5169_v56, %v5073_v20  ;;  %v5220_v31 = vsel %vm7915_vm12, %v7715_v57, 0.0 }
 0x353   :  { %v5222_v8 = vsel %vm7915_vm12, %v7718_v38, 0.0 }
 0x359   :  { %v6023_v36 = vpop.f32.mrb[28].mxu1 }
 0x35a   :  { %v6024_v55 = vpop.f32.mrb[29].mxu1 }
 0x35b   :  { %v6025_v49 = vadd.f32 %v6024_v55, %v6023_v36  ;;  %v6026_v37 = vpop.f32.mrb[30].mxu1 }
 0x35c   :  { %v6027_v3 = vpop.f32.mrb[31].mxu1 }
 0x35d   :  { %v5078_v51 = vadd.f32 %v6025_v49, %v7685_v16  ;;  %v6028_v33 = vadd.f32 %v6027_v3, %v6026_v37 }
 0x35f   :  { %v7721_v29 = vadd.f32 %v6100_v61, %v5078_v51  ;;  %v5081_v40 = vadd.f32 %v6028_v33, %v7685_v16 }
 0x361   :  { %v7724_v13 = vadd.f32 %v6101_v30, %v5081_v40  ;;  %v5224_v14 = vsel %vm7915_vm12, %v7721_v29, 0.0 }
 0x363   :  { %v5226_v26 = vsel %vm7915_vm12, %v7724_v13, 0.0 }
 0x367   :  { %v6029_v22 = vpop.f32.mrb[32].mxu1 }
 0x368   :  { %v6030_v59 = vpop.f32.mrb[33].mxu1 }
 0x369   :  { %v6031_v19 = vadd.f32 %v6030_v59, %v6029_v22  ;;  %v6032_v46 = vpop.f32.mrb[34].mxu1 }
 0x36a   :  { %v6033_v53 = vpop.f32.mrb[35].mxu1 }
 0x36b   :  { %v5086_v27 = vadd.f32 %v6031_v19, %v7685_v16  ;;  %v6034_v34 = vadd.f32 %v6033_v53, %v6032_v46 }
 0x36d   :  { %v7728_v44 = vadd.f32 %v7676_v62, %v5086_v27  ;;  %v5089_v56 = vadd.f32 %v6034_v34, %v7685_v16 }
 0x36f   :  { %v7732_v61 = vadd.f32 %v7680_v32, %v5089_v56  ;;  %v5234_v36 = vsel %vm7915_vm12, %v7728_v44, 0.0 }
 0x371   :  { %v5235_v11 = vsel %vm7915_vm12, %v7732_v61, 0.0 }
 0x372   :  { %v5236_v3 = vadd.f32 %v5235_v11, %v5234_v36 }
 0x378   :  { %v6035_v4 = vpop.f32.mrb[36].mxu1 }
 0x379   :  { %v6036_v23 = vpop.f32.mrb[37].mxu1 }
 0x37a   :  { %v6037_v30 = vadd.f32 %v6036_v23, %v6035_v4  ;;  %v6038_v63 = vpop.f32.mrb[38].mxu1 }
 0x37b   :  { %v6039_v35 = vpop.f32.mrb[39].mxu1 }
 0x37c   :  { %v5094_v17 = vadd.f32 %v6037_v30, %v7685_v16  ;;  %v6040_v0 = vadd.f32 %v6039_v35, %v6038_v63 }
 0x37e   :  { %v7736_v24 = vadd.f32 %v7674_v60, %v5094_v17  ;;  %v5097_v18 = vadd.f32 %v6040_v0, %v7685_v16  ;;  %v5216_v60 = vsel %vm7915_vm12, %v7703_v43, 0.0 }
 0x37f   :  { %v5217_v42 = vadd.f32 %v5216_v60, %v5215_v45 }
 0x380   :  { %v7740_v62 = vadd.f32 %v7678_v5, %v5097_v18  ;;  %v5218_v5 = vsel %vm7915_vm12, %v7711_v41, 0.0  ;;  %v5237_v55 = vsel %vm7915_vm12, %v7736_v24, 0.0 }
 0x381   :  { %v5219_v6 = vadd.f32 %v5218_v5, %v5217_v42  ;;  %v5238_v33 = vadd.f32 %v5237_v55, %v5236_v3  ;;  %v6270_v55 = vmov 1966171168  }
 0x382   :  { %v5239_v59 = vsel %vm7915_vm12, %v7740_v62, 0.0 }
 0x383   :  { %v5221_v7 = vadd.f32 %v5220_v31, %v5219_v6  ;;  %v5240_v23 = vadd.f32 %v5239_v59, %v5238_v33 }
 0x385   :  { %v5223_v10 = vadd.f32 %v5222_v8, %v5221_v7 }
 0x387   :  { %v5225_v39 = vadd.f32 %v5224_v14, %v5223_v10  ;;  %v5339_v10 = vld [vmem:[%s7909_s6] sm:$0x3] }
 0x389   :  { %v5227_v37 = vadd.f32 %v5226_v26, %v5225_v39 }
 0x38b   :  { %v5228_v19 = vrot.slane %v5227_v37, 4 }
 0x38d   :  { %v6041_v52 = vpop.f32.mrb[40].mxu1  ;;  %v5229_v0 = vadd.f32 %v5228_v19, %v5227_v37  ;;  %v5444_v37 = vlaneseq }
 0x38e   :  { %v6042_v2 = vpop.f32.mrb[41].mxu1 }
 0x38f   :  { %v6043_v32 = vadd.f32 %v6042_v2, %v6041_v52  ;;  %v6044_v9 = vpop.f32.mrb[42].mxu1 }
 0x390   :  { %v6045_v1 = vpop.f32.mrb[43].mxu1 }
 0x391   :  { %v6046_v12 = vadd.f32 %v6045_v1, %v6044_v9  ;;  %v5102_v22 = vadd.f32 %v6043_v32, %v7685_v16  ;;  %v5230_v9 = vrot.slane %v5229_v0, 2 }
 0x393   :  { %v5105_v4 = vadd.f32 %v6046_v12, %v7685_v16  ;;  %v5231_v12 = vadd.f32 %v5230_v9, %v5229_v0  ;;  %v5426_v0 = vld [vmem:[%s7903_s0 + $0x10] sm:$0xff]  ;;  %v5429_v9 = vld [vmem:[%s7903_s0 + $0x28] sm:$0xff] }
 0x395   :  { %v5232_v42 = vrot.slane %v5231_v12, 1 }
 0x397   :  { %v5233_v31 = vadd.f32 %v5232_v42, %v5231_v12  ;;  %v5433_v12 = vld [vmem:[%s7903_s0 + $0x48] sm:$0xff] }
 0x398   :  { %v5437_v42 = vld [vmem:[%s7903_s0 + $0x68] sm:$0xff] }
 0x399   :  { %v5256_v8 = vmul.f32 0.015625, %v5233_v31  ;;  %v5439_v31 = vld [vmem:[%s7903_s0 + $0x78] sm:$0xff] }
 0x3a0   :  { %v6047_v25 = vpop.f32.mrb[44].mxu1 }
 0x3a1   :  { %v6048_v50 = vpop.f32.mrb[45].mxu1 }
 0x3a2   :  { %v6049_v21 = vadd.f32 %v6048_v50, %v6047_v25  ;;  %v6050_v48 = vpop.f32.mrb[46].mxu1 }
 0x3a3   :  { %v6051_v20 = vpop.f32.mrb[47].mxu1 }
 0x3a4   :  { %v6052_v49 = vadd.f32 %v6051_v20, %v6050_v48  ;;  %v5110_v51 = vadd.f32 %v6049_v21, %v7685_v16 }
 0x3a6   :  { %v5113_v27 = vadd.f32 %v6052_v49, %v7685_v16  ;;  %v5442_v49 = vunpack.c.l.s4 %v6270_v55 }
 0x3a8   :  { %v6108_v40 = vpop.f32.mrb[48].mxu1  ;;  %v5443_v3 = vunpack.c.0.s8 %v5442_v49 }
 0x3a9   :  { %v7768_v46 = vadd.f32 %v6108_v40, %v5110_v51  ;;  %v5198_v53 = vpop.f32.mrb[49].mxu1  ;;  %v5445_v51 = vshrl.u32 %v5444_v37, 7 }
 0x3aa   :  { %v7771_v34 = vadd.f32 %v5198_v53, %v5102_v22  ;;  %v6109_v56 = vpop.f32.mrb[50].mxu1 }
 0x3ab   :  { %v7774_v30 = vadd.f32 %v6109_v56, %v5113_v27  ;;  %v5201_v63 = vpop.f32.mrb[51].mxu1  ;;  %v5245_v32 = vsel %vm7915_vm12, %v7768_v46, 0.0  ;;  %v5446_v33 = vsub.s32 %v5443_v3, %v5445_v51  ;;  %v5465_v22 = vsub.s32 0, %v5445_v51  ;;  %v5424_v56 = vld [vmem:[%s7903_s0] sm:$0xff] }
 0x3ac   :  { %v5241_v35 = vsel %vm7915_vm12, %v7771_v34, 0.0  ;;  %v7778_v17 = vadd.f32 %v5201_v63, %v5105_v4  ;;  %v5425_v4 = vld [vmem:[%s7903_s0 + $0x8] sm:$0xff] }
 0x3ad   :  { %v5242_v18 = vadd.f32 %v5241_v35, %v5240_v23  ;;  %v5247_v28 = vsel %vm7915_vm12, %v7774_v30, 0.0 }
 0x3ae   :  { %v5243_v52 = vsel %vm7915_vm12, %v7778_v17, 0.0 }
 0x3af   :  { %v5244_v2 = vadd.f32 %v5243_v52, %v5242_v18  ;;  %v5427_v18 = vld [vmem:[%s7903_s0 + $0x18] sm:$0xff]  ;;  %v5428_v52 = vld [vmem:[%s7903_s0 + $0x20] sm:$0xff] }
 0x3b1   :  { %v5246_v16 = vadd.f32 %v5245_v32, %v5244_v2 }
 0x3b3   :  { %v5248_v1 = vadd.f32 %v5247_v28, %v5246_v16  ;;  %v5430_v16 = vld [vmem:[%s7903_s0 + $0x30] sm:$0xff]  ;;  %v5431_v28 = vld [vmem:[%s7903_s0 + $0x38] sm:$0xff] }
 0x3b5   :  { %v5249_v15 = vrot.slane %v5248_v1, 4 }
 0x3b7   :  { %v5250_v60 = vadd.f32 %v5249_v15, %v5248_v1  ;;  %v5432_v1 = vld [vmem:[%s7903_s0 + $0x40] sm:$0xff]  ;;  %v5434_v15 = vld [vmem:[%s7903_s0 + $0x50] sm:$0xff] }
 0x3b9   :  { %v5251_v45 = vrot.slane %v5250_v60, 2 }
 0x3bb   :  { %v5252_v5 = vadd.f32 %v5251_v45, %v5250_v60  ;;  %v5435_v60 = vld [vmem:[%s7903_s0 + $0x58] sm:$0xff]  ;;  %v5436_v45 = vld [vmem:[%s7903_s0 + $0x60] sm:$0xff] }
 0x3bd   :  { %v5253_v6 = vrot.slane %v5252_v5, 1 }
 0x3bf   :  { %v5254_v7 = vadd.f32 %v5253_v6, %v5252_v5 }
 0x3c1   :  { %v5257_v14 = vmul.f32 0.015625, %v5254_v7 }
 0x3c3   :  { %v5265_v25 = vsel %vm5264_vm8, %v5257_v14, %v5256_v8 }
 0x3c4   :  { %6119 = vmatmul.mubr.msk.f32.vlgmr.msra.gmra.mrb[52].mxu1 %vm7915_vm12, %v5265_v25 }
 0x3c5   :  { %6122 = vmatpush3.msk.msra.mxu1 %vm5344_vm11, %v5339_v10  ;;  %6123 = vmatprep.mubr.msk.f32.mxu1 %vm6268_vm0, %v6269_v47  ;;  %vm8010_vm11 = vcmask 261120  }
 0x3c6   :  { %vm8011_vm12 = vmmov %vm8010_vm11 }
 0x497   :  { %v5334_v39 = vpop.f32.mrb[52].mxu1 }
 0x498   :  { %v5338_v50 = vmax.f32 %v5334_v39, 0.0  ;;  %v6120_v26 = vpop.f32.mrb[53].mxu1 }
 0x49a   :  { %6124 = vmatmul.mubr.msk.f32.vlgmr.msra.gmra.mrb[54].mxu1 %vm5340_vm13, %v5338_v50 }
 0x56d   :  { %v5414_v11 = vpop.f32.mrb[54].mxu1 }
 0x56e   :  { %v5898_v21 = vmul.f32 -1.442695, %v5414_v11  ;;  %v6125_v48 = vpop.f32.mrb[55].mxu1 }
 0x570   :  { %6231 = vpow2.f32 %v5898_v21 }
 0x57a   :  { %v6232_v20 = vpop.eup %6231 }
 0x57b   :  { %v5421_v36 = vadd.f32 1.0, %v6232_v20 }
 0x57d   :  { %6233 = vrcp.f32 %v5421_v36 }
 0x587   :  { %v6234_v40 = vpop.eup %6233 }
 0x588   :  { %v5447_v47 = vrot.slane %v6234_v40, %v5446_v33 }
 0x58a   :  { %v5448_v59 = vcombine.high %v5447_v47, %v5447_v47  ;;  %v5455_v19 = vrot.slane %v5447_v47, %v5446_v33 }
 0x58c   :  { %v5462_v53 = vrot.slane %v5448_v59, %v5446_v33  ;;  %v5466_v27 = vrot.slane %v5455_v19, %v5465_v22 }
 0x58e   :  { %v5470_v23 = vrot.slane %v5462_v53, %v5465_v22  ;;  %v5473_v63 = vmul.f32 %v5466_v27, %v7688_v58  ;;  %v5474_v35 = vmul.f32 %v5466_v27, %v7691_v54  ;;  %v5475_v2 = vmul.f32 %v5466_v27, %v7703_v43 }
 0x58f   :  { %v5476_v32 = vmul.f32 %v5466_v27, %v7711_v41  ;;  %v5477_v58 = vmul.f32 %v5466_v27, %v7715_v57  ;;  %v5478_v54 = vmul.f32 %v5466_v27, %v7718_v38  ;;  %v5479_v43 = vmul.f32 %v5466_v27, %v7721_v29 }
 0x590   :  { %v5480_v41 = vmul.f32 %v5466_v27, %v7724_v13  ;;  %v5481_v57 = vmul.f32 %v5470_v23, %v7728_v44  ;;  %v5482_v38 = vmul.f32 %v5470_v23, %v7732_v61  ;;  %v5483_v29 = vmul.f32 %v5470_v23, %v7736_v24 }
 0x591   :  { %v5484_v13 = vmul.f32 %v5470_v23, %v7740_v62  ;;  %v5485_v44 = vmul.f32 %v5470_v23, %v7771_v34  ;;  %v5486_v61 = vmul.f32 %v5470_v23, %v7778_v17  ;;  %v5487_v24 = vmul.f32 %v5470_v23, %v7768_v46  ;;  %v5438_v17 = vld [vmem:[%s7903_s0 + $0x70] sm:$0xff]  ;;  %s6271_s0 = smov [#allocation4]  }
 0x592   :  { %v5488_v62 = vmul.f32 %v5470_v23, %v7774_v30  ;;  %v5489_v5 = vadd.f32 %v5473_v63, %v5424_v56  ;;  %v5490_v34 = vadd.f32 %v5474_v35, %v5425_v4  ;;  %v5491_v6 = vadd.f32 %v5475_v2, %v5426_v0  ;;  %s7856_s22 = sshll.u32 %s6271_s0, 4  ;;  %s5575_s22 = int_to_ptr.vmem [resolvable:$true] %s7856_s22 }
 0x593   :  { %v5492_v7 = vadd.f32 %v5476_v32, %v5427_v18  ;;  %v5493_v8 = vadd.f32 %v5477_v58, %v5428_v52  ;;  %v5494_v14 = vadd.f32 %v5478_v54, %v5429_v9  ;;  %v5495_v10 = vadd.f32 %v5479_v43, %v5430_v16  ;;  %s6239_s23 = scalar_lea.vmem %s5575_s22, 2048  ;;  %p6244_p1 = scmp.lt.s32.totalorder %s5575_s22, %s5575_s22 }
 0x594   :  { %v5496_v25 = vadd.f32 %v5480_v41, %v5431_v28  ;;  %v5497_v39 = vadd.f32 %v5481_v57, %v5432_v1  ;;  %v5498_v46 = vadd.f32 %v5482_v38, %v5433_v12  ;;  %v5499_v50 = vadd.f32 %v5483_v29, %v5434_v15  ;;  %p6240_p0 = scmp.ne.s32.totalorder %s5575_s22, %s6239_s23  ;;  %p6245_p2 = scmp.lt.s32.totalorder %s6239_s23, %s6239_s23 }
 0x595   :  { %v5500_v30 = vadd.f32 %v5484_v13, %v5435_v60  ;;  %v5501_v26 = vadd.f32 %v5485_v44, %v5436_v45  ;;  %v5502_v11 = vadd.f32 %v5486_v61, %v5437_v42  ;;  %v5503_v21 = vadd.f32 %v5487_v24, %v5438_v17 }
 0x596   :  { %v5504_v48 = vadd.f32 %v5488_v62, %v5439_v31  ;;  %vm5505_vm14 = vcmp.gt.f32.partialorder %v5489_v5, 0.0  ;;  %vm5506_vm15 = vcmp.gt.f32.partialorder %v5490_v34, 0.0  ;;  %vm5507_vm9 = vcmp.gt.f32.partialorder %v5491_v6, 0.0  ;;  %p6246_p3 = por %p6245_p2, %p6244_p1 }
 0x597   :  { %vm5508_vm10 = vcmp.gt.f32.partialorder %v5492_v7, 0.0  ;;  %vm5509_vm1 = vcmp.gt.f32.partialorder %v5493_v8, 0.0  ;;  %vm5510_vm2 = vcmp.gt.f32.partialorder %v5494_v14, 0.0  ;;  %vm5511_vm3 = vcmp.gt.f32.partialorder %v5495_v10, 0.0 }
 0x598   :  { %vm5512_vm4 = vcmp.gt.f32.partialorder %v5496_v25, 0.0  ;;  %vm5513_vm5 = vcmp.gt.f32.partialorder %v5497_v39, 0.0  ;;  %vm5514_vm6 = vcmp.gt.f32.partialorder %v5498_v46, 0.0  ;;  %vm5515_vm7 = vcmp.gt.f32.partialorder %v5499_v50, 0.0  ;;  %p6247_p4 = pnand %p6246_p3, %p6240_p0 }
 0x599   :  { %vm5516_vm0 = vcmp.gt.f32.partialorder %v5500_v30, 0.0  ;;  %vm5517_vm8 = vcmp.gt.f32.partialorder %v5501_v26, 0.0  ;;  %vm5519_vm13 = vcmp.gt.f32.partialorder %v5503_v21, 0.0  ;;  %v5521_v20 = vmul.f32 0.01, %v5489_v5 }
 0x59a   :  { %v5522_v36 = vmul.f32 0.01, %v5490_v34  ;;  %v5523_v55 = vmul.f32 0.01, %v5491_v6  ;;  %v5524_v49 = vmul.f32 0.01, %v5492_v7 }
 0x59b   :  { %v5525_v37 = vmul.f32 0.01, %v5493_v8  ;;  %v5526_v3 = vmul.f32 0.01, %v5494_v14  ;;  %v5527_v51 = vmul.f32 0.01, %v5495_v10  ;;  %v5537_v40 = vsel %vm5505_vm14, %v5489_v5, %v5521_v20  ;;  %vm8012_vm14 = vmmov %vm8010_vm11 }
 0x59c   :  { %v5528_v33 = vmul.f32 0.01, %v5496_v25  ;;  %v5529_v47 = vmul.f32 0.01, %v5497_v39  ;;  %v5530_v22 = vmul.f32 0.01, %v5498_v46  ;;  %v5538_v19 = vsel %vm5506_vm15, %v5490_v34, %v5522_v36  ;;  %vm8013_vm15 = vmmov %vm8010_vm11 }
 0x59d   :  { %v5531_v59 = vmul.f32 0.01, %v5499_v50  ;;  %5553 = vst.msk [vmem:[#allocation4] sm:$0xff] %vm8010_vm11, %v5537_v40  ;;  %v5532_v53 = vmul.f32 0.01, %v5500_v30  ;;  %v5539_v4 = vsel %vm5507_vm9, %v5491_v6, %v5523_v55  ;;  %v5540_v35 = vsel %vm5508_vm10, %v5492_v7, %v5524_v49  ;;  %vm8015_vm9 = vmmov %vm8010_vm11 }
 0x59e   :  { %v5533_v27 = vmul.f32 0.01, %v5501_v26  ;;  %v5534_v56 = vmul.f32 0.01, %v5502_v11  ;;  %5554 = vst.msk [vmem:[#allocation4 + $0x8] sm:$0xff] %vm8011_vm12, %v5538_v19  ;;  %v5541_v0 = vsel %vm5509_vm1, %v5493_v8, %v5525_v37  ;;  %v5542_v18 = vsel %vm5510_vm2, %v5494_v14, %v5526_v3  ;;  %vm8014_vm12 = vmmov %vm8010_vm11 }
 0x59f   :  { %v5535_v23 = vmul.f32 0.01, %v5503_v21  ;;  %v5536_v63 = vmul.f32 0.01, %v5504_v48  ;;  %5555 = vst.msk [vmem:[#allocation4 + $0x10] sm:$0xff] %vm8012_vm14, %v5539_v4  ;;  %v5543_v52 = vsel %vm5511_vm3, %v5495_v10, %v5527_v51  ;;  %v5544_v2 = vsel %vm5512_vm4, %v5496_v25, %v5528_v33  ;;  %vm8016_vm10 = vmmov %vm8015_vm9 }
 0x5a0   :  { %v5545_v32 = vsel %vm5513_vm5, %v5497_v39, %v5529_v47  ;;  %5556 = vst.msk [vmem:[#allocation4 + $0x18] sm:$0xff] %vm8013_vm15, %v5540_v35  ;;  %v5546_v58 = vsel %vm5514_vm6, %v5498_v46, %v5530_v22  ;;  %v5547_v54 = vsel %vm5515_vm7, %v5499_v50, %v5531_v59  ;;  %v5548_v9 = vsel %vm5516_vm0, %v5500_v30, %v5532_v53  ;;  %vm8017_vm1 = vmmov %vm8015_vm9 }
 0x5a1   :  { %5557 = vst.msk [vmem:[#allocation4 + $0x20] sm:$0xff] %vm8014_vm12, %v5541_v0  ;;  %v5549_v16 = vsel %vm5517_vm8, %v5501_v26, %v5533_v27  ;;  %vm8018_vm2 = vmmov %vm8017_vm1  ;;  %vm8019_vm3 = vcmp.gt.f32.partialorder %v5502_v11, 0.0  ;;  %v5551_v43 = vsel %vm5519_vm13, %v5503_v21, %v5535_v23  ;;  %vm8020_vm4 = vcmp.gt.f32.partialorder %v5504_v48, 0.0 }
 0x5a2   :  { %5558 = vst.msk [vmem:[#allocation4 + $0x28] sm:$0xff] %vm8015_vm9, %v5542_v18  ;;  %v5550_v28 = vsel %vm8019_vm3, %v5502_v11, %v5534_v56  ;;  %v5552_v41 = vsel %vm8020_vm4, %v5504_v48, %v5536_v63  ;;  %vm8021_vm5 = vmmov %vm8017_vm1 }
 0x5a3   :  { %5559 = vst.msk [vmem:[#allocation4 + $0x30] sm:$0xff] %vm8016_vm10, %v5543_v52  ;;  %vm8022_vm6 = vmmov %vm8017_vm1 }
 0x5a4   :  { %5560 = vst.msk [vmem:[#allocation4 + $0x38] sm:$0xff] %vm8017_vm1, %v5544_v2  ;;  %vm8023_vm7 = vmmov %vm8017_vm1 }
 0x5a5   :  { %5561 = vst.msk [vmem:[#allocation4 + $0x40] sm:$0xff] %vm8018_vm2, %v5545_v32  ;;  %vm8024_vm0 = vmmov %vm8017_vm1 }
 0x5a6   :  { %5562 = vst.msk [vmem:[#allocation4 + $0x48] sm:$0xff] %vm8021_vm5, %v5546_v58  ;;  %vm8025_vm8 = vmmov %vm8024_vm0 }
 0x5a7   :  { %5563 = vst.msk [vmem:[#allocation4 + $0x50] sm:$0xff] %vm8022_vm6, %v5547_v54  ;;  %vm8026_vm11 = vmmov %vm8024_vm0 }
 0x5a8   :  { %5564 = vst.msk [vmem:[#allocation4 + $0x58] sm:$0xff] %vm8023_vm7, %v5548_v9  ;;  %vm8027_vm14 = vmmov %vm8024_vm0 }
 0x5a9   :  { %5565 = vst.msk [vmem:[#allocation4 + $0x60] sm:$0xff] %vm8024_vm0, %v5549_v16 }
 0x5aa   :  { %5566 = vst.msk [vmem:[#allocation4 + $0x68] sm:$0xff] %vm8025_vm8, %v5550_v28 }
 0x5ab   :  { %5567 = vst.msk [vmem:[#allocation4 + $0x70] sm:$0xff] %vm8026_vm11, %v5551_v43 }
 0x5ac   :  { %5568 = vst.msk [vmem:[#allocation4 + $0x78] sm:$0xff] %vm8027_vm14, %v5552_v41 }
 0x5ad   :  { %6250 = shalt.err (!%p6247_p4)
}
 0x5ae   :  { %s6251_s26 = scalar_lea.hbm %s7910_s7, 2048 }
 0x5af   :  { %p6252_p5 = scmp.ne.s32.totalorder %s7910_s7, %s6251_s26  ;;  %p6255_p6 = scmp.lt.u32.totalorder %s6251_s26, %s7910_s7 }
 0x5b1   :  { %p6257_p7 = pnand %p6255_p6, %p6252_p5 }
 0x5b3   :  { %6260 = shalt.err (!%p6257_p7)
}
 0x5b4   :  { %s6272_s30 = smov 128   ;;  %s6273_s2 = smov 8  }
 0x5b5   :  { %5580 = dma.vmem_to_hbm [thread:$0]  %s5575_s22, 2048, %s7910_s7, [#allocation5], %s6272_s30, %s6272_s30, %s6273_s2  }
 0x5b6   :  { %6261 = dma.done.wait [#allocation5], 2048  }
 0x5b7   :  { %6262 = vsyncadd [#allocation5], 4294965248 }
 0x5b8   :  { %5584 = vsyncpa [#allocation5], 1 }

</bundles_post_ra>
